<compile_context>
chip_gen: v7x
topology: tpu7x:2x2x1
jax: 0.10.0
libtpu: 0.0.40
codegen_flags: <defaults>
</compile_context>

<pallas_src>
import functools

import jax
import jax.numpy as jnp
from jax.experimental import pallas as pl
from jax.experimental.pallas import tpu as pltpu


# --------------------------- Pallas kernels ---------------------------

def _gemm_bn_relu_kernel(w_ref, p_ref, g_ref, b_ref, o_ref, s1_ref, s2_ref,
                         *, nsteps, tm, count, eps, groups, cpg):
    """One M-tile of a (groups*cpg, K) @ (K, tm) GEMM with fused training-mode
    BatchNorm (batch mean / biased variance, per channel shared across the
    `groups` phase-row blocks) + ReLU.

    nsteps == 1 : register-only fast path (GEMM -> stats -> BN -> ReLU -> store).
    nsteps  > 1 : the full (groups*cpg, M) output stays VMEM-resident across
                  the M-tile grid; stats accumulate per tile; the last grid
                  step normalizes + ReLUs in place."""
    i = pl.program_id(0)

    # MXU GEMM tile: (groups*cpg, K) bf16 @ (K, tm) bf16 -> f32.
    y = jnp.dot(w_ref[...], p_ref[...], preferred_element_type=jnp.float32)

    inv = jnp.float32(1.0 / count)

    if nsteps == 1:
        s1 = jnp.zeros((cpg, 1), jnp.float32)
        s2 = jnp.zeros((cpg, 1), jnp.float32)
        for g in range(groups):                      # static unroll (<= 4)
            blk = y[g * cpg:(g + 1) * cpg, :]
            s1 = s1 + jnp.sum(blk, axis=-1, keepdims=True)
            s2 = s2 + jnp.sum(blk * blk, axis=-1, keepdims=True)
        mean = s1 * inv
        var = jnp.maximum(s2 * inv - mean * mean, 0.0)
        scale = g_ref[...] * jax.lax.rsqrt(var + eps)          # (cpg, 1)
        shift = b_ref[...] - mean * scale                      # (cpg, 1)
        for g in range(groups):
            blk = y[g * cpg:(g + 1) * cpg, :]
            o_ref[g * cpg:(g + 1) * cpg, :] = jnp.maximum(blk * scale + shift, 0.0)
    else:
        @pl.when(i == 0)
        def _():
            s1_ref[...] = jnp.zeros_like(s1_ref)
            s2_ref[...] = jnp.zeros_like(s2_ref)

        for g in range(groups):
            blk = y[g * cpg:(g + 1) * cpg, :]
            s1_ref[...] += jnp.sum(blk, axis=-1, keepdims=True)
            s2_ref[...] += jnp.sum(blk * blk, axis=-1, keepdims=True)

        # Stash raw GEMM tile into the VMEM-resident output block.
        o_ref[:, pl.ds(pl.multiple_of(i * tm, tm), tm)] = y

        @pl.when(i == nsteps - 1)
        def _():
            mean = s1_ref[...] * inv
            var = jnp.maximum(s2_ref[...] * inv - mean * mean, 0.0)
            scale = g_ref[...] * jax.lax.rsqrt(var + eps)
            shift = b_ref[...] - mean * scale
            for g in range(groups):
                blk = o_ref[g * cpg:(g + 1) * cpg, :]
                o_ref[g * cpg:(g + 1) * cpg, :] = jnp.maximum(blk * scale + shift, 0.0)


def _gemm_tanh_kernel(w_ref, p_ref, o_ref):
    """Final-layer GEMM tile + tanh (lane-dense output, no cross-tile state)."""
    y = jnp.dot(w_ref[...], p_ref[...], preferred_element_type=jnp.float32)
    o_ref[...] = jnp.tanh(y)


# --------------------------- JAX glue ---------------------------

_MAX_TM = 2048  # M-tile cap; all tiles stay far below the VMEM limit.


def _tile_m(M):
    """Return (tm, M_padded) with tm | M_padded, lane-friendly tile size."""
    if M <= _MAX_TM:
        return M, M
    m_pad = pl.cdiv(M, _MAX_TM) * _MAX_TM  # remainder-safe zero padding
    return _MAX_TM, m_pad


# ---- stride-1 path (layer 1 only) ----

def _patches_s1_t(x, k, pad):
    """Stride-1 ConvTranspose2d -> regular conv over the (k-1-pad)-padded
    input with flipped taps; patches emitted transposed for the GEMM.
    x: (N, H, W, C) NHWC  ->  pT: (k*k*C, N*OH*OW)."""
    N, H, W, C = x.shape
    p = k - 1 - pad
    xp = jnp.pad(x, ((0, 0), (p, p), (p, p), (0, 0)))
    OH = xp.shape[1] - k + 1
    OW = xp.shape[2] - k + 1
    cols = [xp[:, ky:ky + OH, kx:kx + OW, :] for ky in range(k) for kx in range(k)]
    patches = jnp.stack(cols, axis=0)                  # (k*k, N, OH, OW, C)
    pT = jnp.transpose(patches, (0, 4, 1, 2, 3))       # (k*k, C, N, OH, OW)
    return pT.reshape(k * k * C, N * OH * OW), (N, OH, OW)


def _weight_s1_t(wt, k):
    """(C_in, C_out, k, k) -> (C_out, k*k*C_in) flipped-kernel GEMM matrix
    (K ordering matches _patches_s1_t)."""
    wf = wt[:, :, ::-1, ::-1]
    wT = jnp.transpose(wf, (1, 2, 3, 0))               # (C_out, ky, kx, C_in)
    return wT.reshape(wt.shape[1], k * k * wt.shape[0])


# ---- stride-2 phase-decomposed path (layers 2..5; k=4, stride=2, pad=1) ----

def _patches3_t(x):
    """3x3 im2col of the (1,1)-padded input, shared by all 4 output phases.
    x: (N, H, W, C) NHWC  ->  pT: (9*C, N*H*W)."""
    N, H, W, C = x.shape
    xp = jnp.pad(x, ((0, 0), (1, 1), (1, 1), (0, 0)))
    cols = [xp[:, dy:dy + H, dx:dx + W, :] for dy in range(3) for dx in range(3)]
    patches = jnp.stack(cols, axis=0)                  # (9, N, H, W, C)
    pT = jnp.transpose(patches, (0, 4, 1, 2, 3))       # (9, C, N, H, W)
    return pT.reshape(9 * C, N * H * W), (N, H, W)


def _phase_weight_t(wt):
    """(C_in, C_out, 4, 4) ConvTranspose2d weight -> (4*C_out, 9*C_in) GEMM
    matrix with the 4 output phases (py, px) stacked along rows.  For each
    phase only a 2x2 subset of taps is non-zero, placed at the matching 3x3
    window positions (K ordering matches _patches3_t)."""
    C_in, C_out = wt.shape[0], wt.shape[1]
    zero_y = jnp.zeros_like(wt[:, :, 0:1, :])          # (C_in, C_out, 1, 4)
    rows = []
    for py in (0, 1):
        if py == 0:   # output rows 2j:   w[ky=3]*x[j-1] + w[ky=1]*x[j]
            wy = jnp.concatenate([wt[:, :, 3:4, :], wt[:, :, 1:2, :], zero_y], axis=2)
        else:         # output rows 2j+1: w[ky=2]*x[j]   + w[ky=0]*x[j+1]
            wy = jnp.concatenate([zero_y, wt[:, :, 2:3, :], wt[:, :, 0:1, :]], axis=2)
        zero_x = jnp.zeros_like(wy[:, :, :, 0:1])      # (C_in, C_out, 3, 1)
        for px in (0, 1):
            if px == 0:
                wyx = jnp.concatenate([wy[:, :, :, 3:4], wy[:, :, :, 1:2], zero_x], axis=3)
            else:
                wyx = jnp.concatenate([zero_x, wy[:, :, :, 2:3], wy[:, :, :, 0:1]], axis=3)
            rows.append(jnp.transpose(wyx, (1, 2, 3, 0)).reshape(C_out, 9 * C_in))
    return jnp.concatenate(rows, axis=0)               # (4*C_out, 9*C_in)


def _phase_unstack(yT, N, H, W, C):
    """(4*C, N*H*W) phase-major GEMM output -> (N, 2H, 2W, C) NHWC."""
    y = yT.reshape(2, 2, C, N, H, W)                   # (py, px, c, n, j, i)
    y = jnp.transpose(y, (3, 4, 0, 5, 1, 2))           # (n, j, py, i, px, c)
    return y.reshape(N, 2 * H, 2 * W, C)


# ---- fused pallas_call wrappers ----

def _fused_gemm_bn_relu(pT, wT, gamma, beta, *, groups, cpg, eps=1e-5):
    K, M = pT.shape
    R = wT.shape[0]                                    # groups * cpg rows
    tm, m_pad = _tile_m(M)
    if m_pad != M:
        pT = jnp.pad(pT, ((0, 0), (0, m_pad - M)))     # zero cols: stats exact
    nsteps = m_pad // tm
    count = groups * M                                 # per-channel elem count
    kernel = functools.partial(_gemm_bn_relu_kernel, nsteps=nsteps, tm=tm,
                               count=count, eps=eps, groups=groups, cpg=cpg)
    yT = pl.pallas_call(
        kernel,
        out_shape=jax.ShapeDtypeStruct((R, m_pad), jnp.float32),
        grid_spec=pltpu.PrefetchScalarGridSpec(
            num_scalar_prefetch=0, grid=(nsteps,),
            in_specs=[pl.BlockSpec((R, K), lambda i: (0, 0)),     # weights
                      pl.BlockSpec((K, tm), lambda i: (0, i)),    # patches
                      pl.BlockSpec((cpg, 1), lambda i: (0, 0)),   # gamma
                      pl.BlockSpec((cpg, 1), lambda i: (0, 0))],  # beta
            out_specs=pl.BlockSpec((R, m_pad), lambda i: (0, 0)),  # resident
            scratch_shapes=[pltpu.VMEM((cpg, 1), jnp.float32),
                            pltpu.VMEM((cpg, 1), jnp.float32)]),
        compiler_params=pltpu.CompilerParams(
            dimension_semantics=("arbitrary",)),   # stats + resident output
    )(wT.astype(jnp.bfloat16), pT.astype(jnp.bfloat16),
      gamma.reshape(cpg, 1).astype(jnp.float32),
      beta.reshape(cpg, 1).astype(jnp.float32))
    return yT[:, :M]


def _fused_gemm_tanh(pT, wT):
    K, M = pT.shape
    R = wT.shape[0]
    tm, m_pad = _tile_m(M)
    if m_pad != M:
        pT = jnp.pad(pT, ((0, 0), (0, m_pad - M)))
    nsteps = m_pad // tm
    yT = pl.pallas_call(
        _gemm_tanh_kernel,
        out_shape=jax.ShapeDtypeStruct((R, m_pad), jnp.float32),
        grid_spec=pltpu.PrefetchScalarGridSpec(
            num_scalar_prefetch=0, grid=(nsteps,),
            in_specs=[pl.BlockSpec((R, K), lambda i: (0, 0)),
                      pl.BlockSpec((K, tm), lambda i: (0, i))],
            out_specs=pl.BlockSpec((R, tm), lambda i: (0, i))),
        compiler_params=pltpu.CompilerParams(
            dimension_semantics=("parallel",)),    # no cross-tile state
    )(wT.astype(jnp.bfloat16), pT.astype(jnp.bfloat16))
    return yT[:, :M]


# --------------------------- Generator layers ---------------------------

def tconv_bn_relu_s1(x, wt, gamma, beta, *, k, pad, eps=1e-5):
    """Stride-1 ConvTranspose2d + BatchNorm(train) + ReLU (layer 1)."""
    pT, (N, OH, OW) = _patches_s1_t(x, k, pad)
    wT = _weight_s1_t(wt, k)
    C = wT.shape[0]
    yT = _fused_gemm_bn_relu(pT, wT, gamma, beta, groups=1, cpg=C, eps=eps)
    return jnp.transpose(yT.reshape(C, N, OH, OW), (1, 2, 3, 0))   # NHWC


def tconv_bn_relu_s2(x, wt, gamma, beta, eps=1e-5):
    """Stride-2 (k=4, pad=1) ConvTranspose2d + BatchNorm(train) + ReLU,
    sub-pixel phase decomposed into a single lane-dense GEMM."""
    pT, (N, H, W) = _patches3_t(x)
    wT = _phase_weight_t(wt)                           # (4*C_out, 9*C_in)
    C = wt.shape[1]
    yT = _fused_gemm_bn_relu(pT, wT, gamma, beta, groups=4, cpg=C, eps=eps)
    return _phase_unstack(yT, N, H, W, C)              # NHWC (N, 2H, 2W, C)


def tconv_tanh_s2(x, wt):
    """Final stride-2 ConvTranspose2d + tanh (phase decomposed), NCHW out."""
    pT, (N, H, W) = _patches3_t(x)
    wT = _phase_weight_t(wt)
    C = wt.shape[1]
    yT = _fused_gemm_tanh(pT, wT)
    y = _phase_unstack(yT, N, H, W, C)                 # NHWC
    return jnp.transpose(y, (0, 3, 1, 2))              # NCHW


@jax.jit
def generator_forward(z, params):
    # z: (N, nz, 1, 1) NCHW like the PyTorch input
    x = jnp.transpose(z, (0, 2, 3, 1))                                # -> NHWC
    x = tconv_bn_relu_s1(x, params["w1"], params["g1"], params["b1"],
                         k=4, pad=0)                                  # (N, 4, 4, 8*ngf)
    x = tconv_bn_relu_s2(x, params["w2"], params["g2"], params["b2"])  # (N, 8, 8, 4*ngf)
    x = tconv_bn_relu_s2(x, params["w3"], params["g3"], params["b3"])  # (N, 16, 16, 2*ngf)
    x = tconv_bn_relu_s2(x, params["w4"], params["g4"], params["b4"])  # (N, 32, 32, ngf)
    return tconv_tanh_s2(x, params["w5"])                              # (N, nc, 64, 64)


# --------------------------- main ---------------------------

if __name__ == "__main__":
    # reduced widths (nz=16, ngf=8) with the same DCGAN-generator topology
    N, nz, ngf, nc = 2, 16, 8, 3
    key = jax.random.PRNGKey(0)
    ks = jax.random.split(key, 10)

    def tw(k_, cin, cout):  # ConvTranspose2d weight layout: (C_in, C_out, 4, 4)
        return 0.02 * jax.random.normal(k_, (cin, cout, 4, 4), jnp.float32)

    params = {
        "w1": tw(ks[0], nz,      ngf * 8),
        "w2": tw(ks[1], ngf * 8, ngf * 4),
        "w3": tw(ks[2], ngf * 4, ngf * 2),
        "w4": tw(ks[3], ngf * 2, ngf),
        "w5": tw(ks[4], ngf,     nc),
        "g1": 1.0 + 0.02 * jax.random.normal(ks[5], (ngf * 8,), jnp.float32),
        "b1": jnp.zeros((ngf * 8,), jnp.float32),
        "g2": 1.0 + 0.02 * jax.random.normal(ks[6], (ngf * 4,), jnp.float32),
        "b2": jnp.zeros((ngf * 4,), jnp.float32),
        "g3": 1.0 + 0.02 * jax.random.normal(ks[7], (ngf * 2,), jnp.float32),
        "b3": jnp.zeros((ngf * 2,), jnp.float32),
        "g4": 1.0 + 0.02 * jax.random.normal(ks[8], (ngf,), jnp.float32),
        "b4": jnp.zeros((ngf,), jnp.float32),
    }

    z = jax.random.normal(ks[9], (N, nz, 1, 1), jnp.float32)
    out = generator_forward(z, params)
    out = jax.block_until_ready(out)

    assert out.shape == (N, nc, 64, 64), out.shape
    assert bool(jnp.all(jnp.isfinite(out)))
    assert bool(jnp.all(jnp.abs(out) <= 1.0))
    print("KERNEL_OK")
</pallas_src>

<mosaic_0001>
module attributes {stable_mosaic.version = 11 : i64} {
  func.func @_gemm_bn_relu_kernel(%arg0: i32, %arg1: memref<64x256xbf16, #tpu.memory_space<vmem>>, %arg2: memref<256x32xbf16, #tpu.memory_space<vmem>>, %arg3: memref<64x1xf32, #tpu.memory_space<vmem>>, %arg4: memref<64x1xf32, #tpu.memory_space<vmem>>, %arg5: memref<64x32xf32, #tpu.memory_space<vmem>>, %arg6: memref<64x1xf32, #tpu.memory_space<vmem>>, %arg7: memref<64x1xf32, #tpu.memory_space<vmem>>) attributes {dimension_semantics = [#tpu.dimension_semantics<arbitrary>], iteration_bounds = array<i64: 1>, scalar_prefetch = 0 : i64, scratch_operands = 2 : i64, tpu.core_type = #tpu.core_type<tc>, window_params = [{pipeline_mode = #tpu.pipeline_mode<synchronous>, transform_indices = @transform_0, window_bounds = array<i64: 64, 256>}, {transform_indices = @transform_1, window_bounds = array<i64: 256, 32>}, {pipeline_mode = #tpu.pipeline_mode<synchronous>, transform_indices = @transform_2, window_bounds = array<i64: 64, 1>}, {pipeline_mode = #tpu.pipeline_mode<synchronous>, transform_indices = @transform_3, window_bounds = array<i64: 64, 1>}, {pipeline_mode = #tpu.pipeline_mode<synchronous>, transform_indices = @transform_4, window_bounds = array<i64: 64, 32>}]} {
    %c0 = arith.constant 0 : index
    %c0_0 = arith.constant 0 : index
    %0 = vector.load %arg1[%c0, %c0_0] : memref<64x256xbf16, #tpu.memory_space<vmem>>, vector<64x256xbf16>
    %c0_1 = arith.constant 0 : index
    %c0_2 = arith.constant 0 : index
    %1 = vector.load %arg2[%c0_1, %c0_2] : memref<256x32xbf16, #tpu.memory_space<vmem>>, vector<256x32xbf16>
    %cst = arith.constant dense<0.000000e+00> : vector<64x32xf32>
    %2 = tpu.matmul %0, %1, %cst {dimension_numbers = #tpu.dot_dimension_numbers<[1], [0], [0], [1], [0, 0, 1, 1], [], []>} : vector<64x256xbf16>, vector<256x32xbf16>, vector<64x32xf32> -> vector<64x32xf32>
    %cst_3 = arith.constant 0.000000e+00 : f32
    %3 = vector.broadcast %cst_3 : f32 to vector<64x1xf32>
    %cst_4 = arith.constant 0.000000e+00 : f32
    %4 = vector.broadcast %cst_4 : f32 to vector<64x1xf32>
    %cst_5 = arith.constant dense<0.000000e+00> : vector<64xf32>
    %5 = vector.multi_reduction <add>, %2, %cst_5 [1] : vector<64x32xf32> to vector<64xf32>
    %6 = vector.shape_cast %5 : vector<64xf32> to vector<64x1xf32>
    %7 = arith.addf %3, %6 : vector<64x1xf32>
    %8 = arith.mulf %2, %2 : vector<64x32xf32>
    %cst_6 = arith.constant dense<0.000000e+00> : vector<64xf32>
    %9 = vector.multi_reduction <add>, %8, %cst_6 [1] : vector<64x32xf32> to vector<64xf32>
    %10 = vector.shape_cast %9 : vector<64xf32> to vector<64x1xf32>
    %11 = arith.addf %4, %10 : vector<64x1xf32>
    %cst_7 = arith.constant 3.125000e-02 : f32
    %12 = vector.broadcast %cst_7 : f32 to vector<64x1xf32>
    %13 = arith.mulf %7, %12 : vector<64x1xf32>
    %cst_8 = arith.constant 3.125000e-02 : f32
    %14 = vector.broadcast %cst_8 : f32 to vector<64x1xf32>
    %15 = arith.mulf %11, %14 : vector<64x1xf32>
    %16 = arith.mulf %13, %13 : vector<64x1xf32>
    %17 = arith.subf %15, %16 : vector<64x1xf32>
    %cst_9 = arith.constant 0.000000e+00 : f32
    %18 = vector.broadcast %cst_9 : f32 to vector<64x1xf32>
    %19 = arith.maximumf %17, %18 : vector<64x1xf32>
    %c0_10 = arith.constant 0 : index
    %c0_11 = arith.constant 0 : index
    %20 = vector.load %arg3[%c0_10, %c0_11] : memref<64x1xf32, #tpu.memory_space<vmem>>, vector<64x1xf32>
    %cst_12 = arith.constant 9.99999974E-6 : f32
    %21 = vector.broadcast %cst_12 : f32 to vector<64x1xf32>
    %22 = arith.addf %19, %21 : vector<64x1xf32>
    %23 = math.rsqrt %22 : vector<64x1xf32>
    %24 = arith.mulf %20, %23 : vector<64x1xf32>
    %c0_13 = arith.constant 0 : index
    %c0_14 = arith.constant 0 : index
    %25 = vector.load %arg4[%c0_13, %c0_14] : memref<64x1xf32, #tpu.memory_space<vmem>>, vector<64x1xf32>
    %26 = arith.mulf %13, %24 : vector<64x1xf32>
    %27 = arith.subf %25, %26 : vector<64x1xf32>
    %28 = vector.broadcast %24 : vector<64x1xf32> to vector<64x32xf32>
    %29 = arith.mulf %2, %28 : vector<64x32xf32>
    %30 = vector.broadcast %27 : vector<64x1xf32> to vector<64x32xf32>
    %31 = arith.addf %29, %30 : vector<64x32xf32>
    %cst_15 = arith.constant 0.000000e+00 : f32
    %32 = vector.broadcast %cst_15 : f32 to vector<64x32xf32>
    %33 = arith.maximumf %31, %32 : vector<64x32xf32>
    %c0_16 = arith.constant 0 : index
    %c0_17 = arith.constant 0 : index
    %34 = vector.load %arg5[%c0_16, %c0_17] : memref<64x32xf32, #tpu.memory_space<vmem>>, vector<64x32xf32>
    tpu.vector_store %arg5[%c0_16, %c0_17], %33 {strides = array<i32>} : memref<64x32xf32, #tpu.memory_space<vmem>>, vector<64x32xf32>,
    return
  }
  func.func @transform_0(%arg0: i32) -> (i32, i32) {
    %c0_i32 = arith.constant 0 : i32
    %c0_i32_0 = arith.constant 0 : i32
    %c0_i32_1 = arith.constant 0 : i32
    return %c0_i32, %c0_i32_0 : i32, i32
  }
  func.func @transform_1(%arg0: i32) -> (i32, i32) {
    %c0_i32 = arith.constant 0 : i32
    %c0_i32_0 = arith.constant 0 : i32
    return %c0_i32, %arg0 : i32, i32
  }
  func.func @transform_2(%arg0: i32) -> (i32, i32) {
    %c0_i32 = arith.constant 0 : i32
    %c0_i32_0 = arith.constant 0 : i32
    %c0_i32_1 = arith.constant 0 : i32
    return %c0_i32, %c0_i32_0 : i32, i32
  }
  func.func @transform_3(%arg0: i32) -> (i32, i32) {
    %c0_i32 = arith.constant 0 : i32
    %c0_i32_0 = arith.constant 0 : i32
    %c0_i32_1 = arith.constant 0 : i32
    return %c0_i32, %c0_i32_0 : i32, i32
  }
  func.func @transform_4(%arg0: i32) -> (i32, i32) {
    %c0_i32 = arith.constant 0 : i32
    %c0_i32_0 = arith.constant 0 : i32
    %c0_i32_1 = arith.constant 0 : i32
    return %c0_i32, %c0_i32_0 : i32, i32
  }
}

module attributes {stable_mosaic.version = 11 : i64} {
  func.func @_gemm_bn_relu_kernel(%arg0: i32, %arg1: memref<128x576xbf16, #tpu.memory_space<vmem>>, %arg2: memref<576x32xbf16, #tpu.memory_space<vmem>>, %arg3: memref<32x1xf32, #tpu.memory_space<vmem>>, %arg4: memref<32x1xf32, #tpu.memory_space<vmem>>, %arg5: memref<128x32xf32, #tpu.memory_space<vmem>>, %arg6: memref<32x1xf32, #tpu.memory_space<vmem>>, %arg7: memref<32x1xf32, #tpu.memory_space<vmem>>) attributes {dimension_semantics = [#tpu.dimension_semantics<arbitrary>], iteration_bounds = array<i64: 1>, scalar_prefetch = 0 : i64, scratch_operands = 2 : i64, tpu.core_type = #tpu.core_type<tc>, window_params = [{pipeline_mode = #tpu.pipeline_mode<synchronous>, transform_indices = @transform_0, window_bounds = array<i64: 128, 576>}, {transform_indices = @transform_1, window_bounds = array<i64: 576, 32>}, {pipeline_mode = #tpu.pipeline_mode<synchronous>, transform_indices = @transform_2, window_bounds = array<i64: 32, 1>}, {pipeline_mode = #tpu.pipeline_mode<synchronous>, transform_indices = @transform_3, window_bounds = array<i64: 32, 1>}, {pipeline_mode = #tpu.pipeline_mode<synchronous>, transform_indices = @transform_4, window_bounds = array<i64: 128, 32>}]} {
    %c0 = arith.constant 0 : index
    %c0_0 = arith.constant 0 : index
    %0 = vector.load %arg1[%c0, %c0_0] : memref<128x576xbf16, #tpu.memory_space<vmem>>, vector<128x576xbf16>
    %c0_1 = arith.constant 0 : index
    %c0_2 = arith.constant 0 : index
    %1 = vector.load %arg2[%c0_1, %c0_2] : memref<576x32xbf16, #tpu.memory_space<vmem>>, vector<576x32xbf16>
    %cst = arith.constant dense<0.000000e+00> : vector<128x32xf32>
    %2 = tpu.matmul %0, %1, %cst {dimension_numbers = #tpu.dot_dimension_numbers<[1], [0], [0], [1], [0, 0, 1, 1], [], []>} : vector<128x576xbf16>, vector<576x32xbf16>, vector<128x32xf32> -> vector<128x32xf32>
    %cst_3 = arith.constant 0.000000e+00 : f32
    %3 = vector.broadcast %cst_3 : f32 to vector<32x1xf32>
    %cst_4 = arith.constant 0.000000e+00 : f32
    %4 = vector.broadcast %cst_4 : f32 to vector<32x1xf32>
    %5 = vector.extract_strided_slice %2 {offsets = [0, 0], sizes = [32, 32], strides = [1, 1]} : vector<128x32xf32> to vector<32x32xf32>
    %cst_5 = arith.constant dense<0.000000e+00> : vector<32xf32>
    %6 = vector.multi_reduction <add>, %5, %cst_5 [1] : vector<32x32xf32> to vector<32xf32>
    %7 = vector.shape_cast %6 : vector<32xf32> to vector<32x1xf32>
    %8 = arith.addf %3, %7 : vector<32x1xf32>
    %9 = arith.mulf %5, %5 : vector<32x32xf32>
    %cst_6 = arith.constant dense<0.000000e+00> : vector<32xf32>
    %10 = vector.multi_reduction <add>, %9, %cst_6 [1] : vector<32x32xf32> to vector<32xf32>
    %11 = vector.shape_cast %10 : vector<32xf32> to vector<32x1xf32>
    %12 = arith.addf %4, %11 : vector<32x1xf32>
    %13 = vector.extract_strided_slice %2 {offsets = [32, 0], sizes = [32, 32], strides = [1, 1]} : vector<128x32xf32> to vector<32x32xf32>
    %cst_7 = arith.constant dense<0.000000e+00> : vector<32xf32>
    %14 = vector.multi_reduction <add>, %13, %cst_7 [1] : vector<32x32xf32> to vector<32xf32>
    %15 = vector.shape_cast %14 : vector<32xf32> to vector<32x1xf32>
    %16 = arith.addf %8, %15 : vector<32x1xf32>
    %17 = arith.mulf %13, %13 : vector<32x32xf32>
    %cst_8 = arith.constant dense<0.000000e+00> : vector<32xf32>
    %18 = vector.multi_reduction <add>, %17, %cst_8 [1] : vector<32x32xf32> to vector<32xf32>
    %19 = vector.shape_cast %18 : vector<32xf32> to vector<32x1xf32>
    %20 = arith.addf %12, %19 : vector<32x1xf32>
    %21 = vector.extract_strided_slice %2 {offsets = [64, 0], sizes = [32, 32], strides = [1, 1]} : vector<128x32xf32> to vector<32x32xf32>
    %cst_9 = arith.constant dense<0.000000e+00> : vector<32xf32>
    %22 = vector.multi_reduction <add>, %21, %cst_9 [1] : vector<32x32xf32> to vector<32xf32>
    %23 = vector.shape_cast %22 : vector<32xf32> to vector<32x1xf32>
    %24 = arith.addf %16, %23 : vector<32x1xf32>
    %25 = arith.mulf %21, %21 : vector<32x32xf32>
    %cst_10 = arith.constant dense<0.000000e+00> : vector<32xf32>
    %26 = vector.multi_reduction <add>, %25, %cst_10 [1] : vector<32x32xf32> to vector<32xf32>
    %27 = vector.shape_cast %26 : vector<32xf32> to vector<32x1xf32>
    %28 = arith.addf %20, %27 : vector<32x1xf32>
    %29 = vector.extract_strided_slice %2 {offsets = [96, 0], sizes = [32, 32], strides = [1, 1]} : vector<128x32xf32> to vector<32x32xf32>
    %cst_11 = arith.constant dense<0.000000e+00> : vector<32xf32>
    %30 = vector.multi_reduction <add>, %29, %cst_11 [1] : vector<32x32xf32> to vector<32xf32>
    %31 = vector.shape_cast %30 : vector<32xf32> to vector<32x1xf32>
    %32 = arith.addf %24, %31 : vector<32x1xf32>
    %33 = arith.mulf %29, %29 : vector<32x32xf32>
    %cst_12 = arith.constant dense<0.000000e+00> : vector<32xf32>
    %34 = vector.multi_reduction <add>, %33, %cst_12 [1] : vector<32x32xf32> to vector<32xf32>
    %35 = vector.shape_cast %34 : vector<32xf32> to vector<32x1xf32>
    %36 = arith.addf %28, %35 : vector<32x1xf32>
    %cst_13 = arith.constant 7.812500e-03 : f32
    %37 = vector.broadcast %cst_13 : f32 to vector<32x1xf32>
    %38 = arith.mulf %32, %37 : vector<32x1xf32>
    %cst_14 = arith.constant 7.812500e-03 : f32
    %39 = vector.broadcast %cst_14 : f32 to vector<32x1xf32>
    %40 = arith.mulf %36, %39 : vector<32x1xf32>
    %41 = arith.mulf %38, %38 : vector<32x1xf32>
    %42 = arith.subf %40, %41 : vector<32x1xf32>
    %cst_15 = arith.constant 0.000000e+00 : f32
    %43 = vector.broadcast %cst_15 : f32 to vector<32x1xf32>
    %44 = arith.maximumf %42, %43 : vector<32x1xf32>
    %c0_16 = arith.constant 0 : index
    %c0_17 = arith.constant 0 : index
    %45 = vector.load %arg3[%c0_16, %c0_17] : memref<32x1xf32, #tpu.memory_space<vmem>>, vector<32x1xf32>
    %cst_18 = arith.constant 9.99999974E-6 : f32
    %46 = vector.broadcast %cst_18 : f32 to vector<32x1xf32>
    %47 = arith.addf %44, %46 : vector<32x1xf32>
    %48 = math.rsqrt %47 : vector<32x1xf32>
    %49 = arith.mulf %45, %48 : vector<32x1xf32>
    %c0_19 = arith.constant 0 : index
    %c0_20 = arith.constant 0 : index
    %50 = vector.load %arg4[%c0_19, %c0_20] : memref<32x1xf32, #tpu.memory_space<vmem>>, vector<32x1xf32>
    %51 = arith.mulf %38, %49 : vector<32x1xf32>
    %52 = arith.subf %50, %51 : vector<32x1xf32>
    %53 = vector.extract_strided_slice %2 {offsets = [0, 0], sizes = [32, 32], strides = [1, 1]} : vector<128x32xf32> to vector<32x32xf32>
    %54 = vector.broadcast %49 : vector<32x1xf32> to vector<32x32xf32>
    %55 = arith.mulf %53, %54 : vector<32x32xf32>
    %56 = vector.broadcast %52 : vector<32x1xf32> to vector<32x32xf32>
    %57 = arith.addf %55, %56 : vector<32x32xf32>
    %cst_21 = arith.constant 0.000000e+00 : f32
    %58 = vector.broadcast %cst_21 : f32 to vector<32x32xf32>
    %59 = arith.maximumf %57, %58 : vector<32x32xf32>
    %c0_22 = arith.constant 0 : index
    %c0_23 = arith.constant 0 : index
    %60 = vector.load %arg5[%c0_22, %c0_23] : memref<128x32xf32, #tpu.memory_space<vmem>>, vector<32x32xf32>
    tpu.vector_store %arg5[%c0_22, %c0_23], %59 {strides = array<i32>} : memref<128x32xf32, #tpu.memory_space<vmem>>, vector<32x32xf32>,
    %61 = vector.extract_strided_slice %2 {offsets = [32, 0], sizes = [32, 32], strides = [1, 1]} : vector<128x32xf32> to vector<32x32xf32>
    %62 = vector.broadcast %49 : vector<32x1xf32> to vector<32x32xf32>
    %63 = arith.mulf %61, %62 : vector<32x32xf32>
    %64 = vector.broadcast %52 : vector<32x1xf32> to vector<32x32xf32>
    %65 = arith.addf %63, %64 : vector<32x32xf32>
    %cst_24 = arith.constant 0.000000e+00 : f32
    %66 = vector.broadcast %cst_24 : f32 to vector<32x32xf32>
    %67 = arith.maximumf %65, %66 : vector<32x32xf32>
    %c32 = arith.constant 32 : index
    %c0_25 = arith.constant 0 : index
    %68 = vector.load %arg5[%c32, %c0_25] : memref<128x32xf32, #tpu.memory_space<vmem>>, vector<32x32xf32>
    tpu.vector_store %arg5[%c32, %c0_25], %67 {strides = array<i32>} : memref<128x32xf32, #tpu.memory_space<vmem>>, vector<32x32xf32>,
    %69 = vector.extract_strided_slice %2 {offsets = [64, 0], sizes = [32, 32], strides = [1, 1]} : vector<128x32xf32> to vector<32x32xf32>
    %70 = vector.broadcast %49 : vector<32x1xf32> to vector<32x32xf32>
    %71 = arith.mulf %69, %70 : vector<32x32xf32>
    %72 = vector.broadcast %52 : vector<32x1xf32> to vector<32x32xf32>
    %73 = arith.addf %71, %72 : vector<32x32xf32>
    %cst_26 = arith.constant 0.000000e+00 : f32
    %74 = vector.broadcast %cst_26 : f32 to vector<32x32xf32>
    %75 = arith.maximumf %73, %74 : vector<32x32xf32>
    %c64 = arith.constant 64 : index
    %c0_27 = arith.constant 0 : index
    %76 = vector.load %arg5[%c64, %c0_27] : memref<128x32xf32, #tpu.memory_space<vmem>>, vector<32x32xf32>
    tpu.vector_store %arg5[%c64, %c0_27], %75 {strides = array<i32>} : memref<128x32xf32, #tpu.memory_space<vmem>>, vector<32x32xf32>,
    %77 = vector.extract_strided_slice %2 {offsets = [96, 0], sizes = [32, 32], strides = [1, 1]} : vector<128x32xf32> to vector<32x32xf32>
    %78 = vector.broadcast %49 : vector<32x1xf32> to vector<32x32xf32>
    %79 = arith.mulf %77, %78 : vector<32x32xf32>
    %80 = vector.broadcast %52 : vector<32x1xf32> to vector<32x32xf32>
    %81 = arith.addf %79, %80 : vector<32x32xf32>
    %cst_28 = arith.constant 0.000000e+00 : f32
    %82 = vector.broadcast %cst_28 : f32 to vector<32x32xf32>
    %83 = arith.maximumf %81, %82 : vector<32x32xf32>
    %c96 = arith.constant 96 : index
    %c0_29 = arith.constant 0 : index
    %84 = vector.load %arg5[%c96, %c0_29] : memref<128x32xf32, #tpu.memory_space<vmem>>, vector<32x32xf32>
    tpu.vector_store %arg5[%c96, %c0_29], %83 {strides = array<i32>} : memref<128x32xf32, #tpu.memory_space<vmem>>, vector<32x32xf32>,
    return
  }
  func.func @transform_0(%arg0: i32) -> (i32, i32) {
    %c0_i32 = arith.constant 0 : i32
    %c0_i32_0 = arith.constant 0 : i32
    %c0_i32_1 = arith.constant 0 : i32
    return %c0_i32, %c0_i32_0 : i32, i32
  }
  func.func @transform_1(%arg0: i32) -> (i32, i32) {
    %c0_i32 = arith.constant 0 : i32
    %c0_i32_0 = arith.constant 0 : i32
    return %c0_i32, %arg0 : i32, i32
  }
  func.func @transform_2(%arg0: i32) -> (i32, i32) {
    %c0_i32 = arith.constant 0 : i32
    %c0_i32_0 = arith.constant 0 : i32
    %c0_i32_1 = arith.constant 0 : i32
    return %c0_i32, %c0_i32_0 : i32, i32
  }
  func.func @transform_3(%arg0: i32) -> (i32, i32) {
    %c0_i32 = arith.constant 0 : i32
    %c0_i32_0 = arith.constant 0 : i32
    %c0_i32_1 = arith.constant 0 : i32
    return %c0_i32, %c0_i32_0 : i32, i32
  }
  func.func @transform_4(%arg0: i32) -> (i32, i32) {
    %c0_i32 = arith.constant 0 : i32
    %c0_i32_0 = arith.constant 0 : i32
    %c0_i32_1 = arith.constant 0 : i32
    return %c0_i32, %c0_i32_0 : i32, i32
  }
}

module attributes {stable_mosaic.version = 11 : i64} {
  func.func @_gemm_bn_relu_kernel(%arg0: i32, %arg1: memref<64x288xbf16, #tpu.memory_space<vmem>>, %arg2: memref<288x128xbf16, #tpu.memory_space<vmem>>, %arg3: memref<16x1xf32, #tpu.memory_space<vmem>>, %arg4: memref<16x1xf32, #tpu.memory_space<vmem>>, %arg5: memref<64x128xf32, #tpu.memory_space<vmem>>, %arg6: memref<16x1xf32, #tpu.memory_space<vmem>>, %arg7: memref<16x1xf32, #tpu.memory_space<vmem>>) attributes {dimension_semantics = [#tpu.dimension_semantics<arbitrary>], iteration_bounds = array<i64: 1>, scalar_prefetch = 0 : i64, scratch_operands = 2 : i64, tpu.core_type = #tpu.core_type<tc>, window_params = [{pipeline_mode = #tpu.pipeline_mode<synchronous>, transform_indices = @transform_0, window_bounds = array<i64: 64, 288>}, {transform_indices = @transform_1, window_bounds = array<i64: 288, 128>}, {pipeline_mode = #tpu.pipeline_mode<synchronous>, transform_indices = @transform_2, window_bounds = array<i64: 16, 1>}, {pipeline_mode = #tpu.pipeline_mode<synchronous>, transform_indices = @transform_3, window_bounds = array<i64: 16, 1>}, {pipeline_mode = #tpu.pipeline_mode<synchronous>, transform_indices = @transform_4, window_bounds = array<i64: 64, 128>}]} {
    %c0 = arith.constant 0 : index
    %c0_0 = arith.constant 0 : index
    %0 = vector.load %arg1[%c0, %c0_0] : memref<64x288xbf16, #tpu.memory_space<vmem>>, vector<64x288xbf16>
    %c0_1 = arith.constant 0 : index
    %c0_2 = arith.constant 0 : index
    %1 = vector.load %arg2[%c0_1, %c0_2] : memref<288x128xbf16, #tpu.memory_space<vmem>>, vector<288x128xbf16>
    %cst = arith.constant dense<0.000000e+00> : vector<64x128xf32>
    %2 = tpu.matmul %0, %1, %cst {dimension_numbers = #tpu.dot_dimension_numbers<[1], [0], [0], [1], [0, 0, 1, 1], [], []>} : vector<64x288xbf16>, vector<288x128xbf16>, vector<64x128xf32> -> vector<64x128xf32>
    %cst_3 = arith.constant 0.000000e+00 : f32
    %3 = vector.broadcast %cst_3 : f32 to vector<16x1xf32>
    %cst_4 = arith.constant 0.000000e+00 : f32
    %4 = vector.broadcast %cst_4 : f32 to vector<16x1xf32>
    %5 = vector.extract_strided_slice %2 {offsets = [0, 0], sizes = [16, 128], strides = [1, 1]} : vector<64x128xf32> to vector<16x128xf32>
    %cst_5 = arith.constant dense<0.000000e+00> : vector<16xf32>
    %6 = vector.multi_reduction <add>, %5, %cst_5 [1] : vector<16x128xf32> to vector<16xf32>
    %7 = vector.shape_cast %6 : vector<16xf32> to vector<16x1xf32>
    %8 = arith.addf %3, %7 : vector<16x1xf32>
    %9 = arith.mulf %5, %5 : vector<16x128xf32>
    %cst_6 = arith.constant dense<0.000000e+00> : vector<16xf32>
    %10 = vector.multi_reduction <add>, %9, %cst_6 [1] : vector<16x128xf32> to vector<16xf32>
    %11 = vector.shape_cast %10 : vector<16xf32> to vector<16x1xf32>
    %12 = arith.addf %4, %11 : vector<16x1xf32>
    %13 = vector.extract_strided_slice %2 {offsets = [16, 0], sizes = [16, 128], strides = [1, 1]} : vector<64x128xf32> to vector<16x128xf32>
    %cst_7 = arith.constant dense<0.000000e+00> : vector<16xf32>
    %14 = vector.multi_reduction <add>, %13, %cst_7 [1] : vector<16x128xf32> to vector<16xf32>
    %15 = vector.shape_cast %14 : vector<16xf32> to vector<16x1xf32>
    %16 = arith.addf %8, %15 : vector<16x1xf32>
    %17 = arith.mulf %13, %13 : vector<16x128xf32>
    %cst_8 = arith.constant dense<0.000000e+00> : vector<16xf32>
    %18 = vector.multi_reduction <add>, %17, %cst_8 [1] : vector<16x128xf32> to vector<16xf32>
    %19 = vector.shape_cast %18 : vector<16xf32> to vector<16x1xf32>
    %20 = arith.addf %12, %19 : vector<16x1xf32>
    %21 = vector.extract_strided_slice %2 {offsets = [32, 0], sizes = [16, 128], strides = [1, 1]} : vector<64x128xf32> to vector<16x128xf32>
    %cst_9 = arith.constant dense<0.000000e+00> : vector<16xf32>
    %22 = vector.multi_reduction <add>, %21, %cst_9 [1] : vector<16x128xf32> to vector<16xf32>
    %23 = vector.shape_cast %22 : vector<16xf32> to vector<16x1xf32>
    %24 = arith.addf %16, %23 : vector<16x1xf32>
    %25 = arith.mulf %21, %21 : vector<16x128xf32>
    %cst_10 = arith.constant dense<0.000000e+00> : vector<16xf32>
    %26 = vector.multi_reduction <add>, %25, %cst_10 [1] : vector<16x128xf32> to vector<16xf32>
    %27 = vector.shape_cast %26 : vector<16xf32> to vector<16x1xf32>
    %28 = arith.addf %20, %27 : vector<16x1xf32>
    %29 = vector.extract_strided_slice %2 {offsets = [48, 0], sizes = [16, 128], strides = [1, 1]} : vector<64x128xf32> to vector<16x128xf32>
    %cst_11 = arith.constant dense<0.000000e+00> : vector<16xf32>
    %30 = vector.multi_reduction <add>, %29, %cst_11 [1] : vector<16x128xf32> to vector<16xf32>
    %31 = vector.shape_cast %30 : vector<16xf32> to vector<16x1xf32>
    %32 = arith.addf %24, %31 : vector<16x1xf32>
    %33 = arith.mulf %29, %29 : vector<16x128xf32>
    %cst_12 = arith.constant dense<0.000000e+00> : vector<16xf32>
    %34 = vector.multi_reduction <add>, %33, %cst_12 [1] : vector<16x128xf32> to vector<16xf32>
    %35 = vector.shape_cast %34 : vector<16xf32> to vector<16x1xf32>
    %36 = arith.addf %28, %35 : vector<16x1xf32>
    %cst_13 = arith.constant 0.001953125 : f32
    %37 = vector.broadcast %cst_13 : f32 to vector<16x1xf32>
    %38 = arith.mulf %32, %37 : vector<16x1xf32>
    %cst_14 = arith.constant 0.001953125 : f32
    %39 = vector.broadcast %cst_14 : f32 to vector<16x1xf32>
    %40 = arith.mulf %36, %39 : vector<16x1xf32>
    %41 = arith.mulf %38, %38 : vector<16x1xf32>
    %42 = arith.subf %40, %41 : vector<16x1xf32>
    %cst_15 = arith.constant 0.000000e+00 : f32
    %43 = vector.broadcast %cst_15 : f32 to vector<16x1xf32>
    %44 = arith.maximumf %42, %43 : vector<16x1xf32>
    %c0_16 = arith.constant 0 : index
    %c0_17 = arith.constant 0 : index
    %45 = vector.load %arg3[%c0_16, %c0_17] : memref<16x1xf32, #tpu.memory_space<vmem>>, vector<16x1xf32>
    %cst_18 = arith.constant 9.99999974E-6 : f32
    %46 = vector.broadcast %cst_18 : f32 to vector<16x1xf32>
    %47 = arith.addf %44, %46 : vector<16x1xf32>
    %48 = math.rsqrt %47 : vector<16x1xf32>
    %49 = arith.mulf %45, %48 : vector<16x1xf32>
    %c0_19 = arith.constant 0 : index
    %c0_20 = arith.constant 0 : index
    %50 = vector.load %arg4[%c0_19, %c0_20] : memref<16x1xf32, #tpu.memory_space<vmem>>, vector<16x1xf32>
    %51 = arith.mulf %38, %49 : vector<16x1xf32>
    %52 = arith.subf %50, %51 : vector<16x1xf32>
    %53 = vector.extract_strided_slice %2 {offsets = [0, 0], sizes = [16, 128], strides = [1, 1]} : vector<64x128xf32> to vector<16x128xf32>
    %54 = vector.broadcast %49 : vector<16x1xf32> to vector<16x128xf32>
    %55 = arith.mulf %53, %54 : vector<16x128xf32>
    %56 = vector.broadcast %52 : vector<16x1xf32> to vector<16x128xf32>
    %57 = arith.addf %55, %56 : vector<16x128xf32>
    %cst_21 = arith.constant 0.000000e+00 : f32
    %58 = vector.broadcast %cst_21 : f32 to vector<16x128xf32>
    %59 = arith.maximumf %57, %58 : vector<16x128xf32>
    %c0_22 = arith.constant 0 : index
    %c0_23 = arith.constant 0 : index
    %60 = vector.load %arg5[%c0_22, %c0_23] : memref<64x128xf32, #tpu.memory_space<vmem>>, vector<16x128xf32>
    tpu.vector_store %arg5[%c0_22, %c0_23], %59 {strides = array<i32>} : memref<64x128xf32, #tpu.memory_space<vmem>>, vector<16x128xf32>,
    %61 = vector.extract_strided_slice %2 {offsets = [16, 0], sizes = [16, 128], strides = [1, 1]} : vector<64x128xf32> to vector<16x128xf32>
    %62 = vector.broadcast %49 : vector<16x1xf32> to vector<16x128xf32>
    %63 = arith.mulf %61, %62 : vector<16x128xf32>
    %64 = vector.broadcast %52 : vector<16x1xf32> to vector<16x128xf32>
    %65 = arith.addf %63, %64 : vector<16x128xf32>
    %cst_24 = arith.constant 0.000000e+00 : f32
    %66 = vector.broadcast %cst_24 : f32 to vector<16x128xf32>
    %67 = arith.maximumf %65, %66 : vector<16x128xf32>
    %c16 = arith.constant 16 : index
    %c0_25 = arith.constant 0 : index
    %68 = vector.load %arg5[%c16, %c0_25] : memref<64x128xf32, #tpu.memory_space<vmem>>, vector<16x128xf32>
    tpu.vector_store %arg5[%c16, %c0_25], %67 {strides = array<i32>} : memref<64x128xf32, #tpu.memory_space<vmem>>, vector<16x128xf32>,
    %69 = vector.extract_strided_slice %2 {offsets = [32, 0], sizes = [16, 128], strides = [1, 1]} : vector<64x128xf32> to vector<16x128xf32>
    %70 = vector.broadcast %49 : vector<16x1xf32> to vector<16x128xf32>
    %71 = arith.mulf %69, %70 : vector<16x128xf32>
    %72 = vector.broadcast %52 : vector<16x1xf32> to vector<16x128xf32>
    %73 = arith.addf %71, %72 : vector<16x128xf32>
    %cst_26 = arith.constant 0.000000e+00 : f32
    %74 = vector.broadcast %cst_26 : f32 to vector<16x128xf32>
    %75 = arith.maximumf %73, %74 : vector<16x128xf32>
    %c32 = arith.constant 32 : index
    %c0_27 = arith.constant 0 : index
    %76 = vector.load %arg5[%c32, %c0_27] : memref<64x128xf32, #tpu.memory_space<vmem>>, vector<16x128xf32>
    tpu.vector_store %arg5[%c32, %c0_27], %75 {strides = array<i32>} : memref<64x128xf32, #tpu.memory_space<vmem>>, vector<16x128xf32>,
    %77 = vector.extract_strided_slice %2 {offsets = [48, 0], sizes = [16, 128], strides = [1, 1]} : vector<64x128xf32> to vector<16x128xf32>
    %78 = vector.broadcast %49 : vector<16x1xf32> to vector<16x128xf32>
    %79 = arith.mulf %77, %78 : vector<16x128xf32>
    %80 = vector.broadcast %52 : vector<16x1xf32> to vector<16x128xf32>
    %81 = arith.addf %79, %80 : vector<16x128xf32>
    %cst_28 = arith.constant 0.000000e+00 : f32
    %82 = vector.broadcast %cst_28 : f32 to vector<16x128xf32>
    %83 = arith.maximumf %81, %82 : vector<16x128xf32>
    %c48 = arith.constant 48 : index
    %c0_29 = arith.constant 0 : index
    %84 = vector.load %arg5[%c48, %c0_29] : memref<64x128xf32, #tpu.memory_space<vmem>>, vector<16x128xf32>
    tpu.vector_store %arg5[%c48, %c0_29], %83 {strides = array<i32>} : memref<64x128xf32, #tpu.memory_space<vmem>>, vector<16x128xf32>,
    return
  }
  func.func @transform_0(%arg0: i32) -> (i32, i32) {
    %c0_i32 = arith.constant 0 : i32
    %c0_i32_0 = arith.constant 0 : i32
    %c0_i32_1 = arith.constant 0 : i32
    return %c0_i32, %c0_i32_0 : i32, i32
  }
  func.func @transform_1(%arg0: i32) -> (i32, i32) {
    %c0_i32 = arith.constant 0 : i32
    %c0_i32_0 = arith.constant 0 : i32
    return %c0_i32, %arg0 : i32, i32
  }
  func.func @transform_2(%arg0: i32) -> (i32, i32) {
    %c0_i32 = arith.constant 0 : i32
    %c0_i32_0 = arith.constant 0 : i32
    %c0_i32_1 = arith.constant 0 : i32
    return %c0_i32, %c0_i32_0 : i32, i32
  }
  func.func @transform_3(%arg0: i32) -> (i32, i32) {
    %c0_i32 = arith.constant 0 : i32
    %c0_i32_0 = arith.constant 0 : i32
    %c0_i32_1 = arith.constant 0 : i32
    return %c0_i32, %c0_i32_0 : i32, i32
  }
  func.func @transform_4(%arg0: i32) -> (i32, i32) {
    %c0_i32 = arith.constant 0 : i32
    %c0_i32_0 = arith.constant 0 : i32
    %c0_i32_1 = arith.constant 0 : i32
    return %c0_i32, %c0_i32_0 : i32, i32
  }
}

module attributes {stable_mosaic.version = 11 : i64} {
  func.func @_gemm_bn_relu_kernel(%arg0: i32, %arg1: memref<32x144xbf16, #tpu.memory_space<vmem>>, %arg2: memref<144x512xbf16, #tpu.memory_space<vmem>>, %arg3: memref<8x1xf32, #tpu.memory_space<vmem>>, %arg4: memref<8x1xf32, #tpu.memory_space<vmem>>, %arg5: memref<32x512xf32, #tpu.memory_space<vmem>>, %arg6: memref<8x1xf32, #tpu.memory_space<vmem>>, %arg7: memref<8x1xf32, #tpu.memory_space<vmem>>) attributes {dimension_semantics = [#tpu.dimension_semantics<arbitrary>], iteration_bounds = array<i64: 1>, scalar_prefetch = 0 : i64, scratch_operands = 2 : i64, tpu.core_type = #tpu.core_type<tc>, window_params = [{pipeline_mode = #tpu.pipeline_mode<synchronous>, transform_indices = @transform_0, window_bounds = array<i64: 32, 144>}, {transform_indices = @transform_1, window_bounds = array<i64: 144, 512>}, {pipeline_mode = #tpu.pipeline_mode<synchronous>, transform_indices = @transform_2, window_bounds = array<i64: 8, 1>}, {pipeline_mode = #tpu.pipeline_mode<synchronous>, transform_indices = @transform_3, window_bounds = array<i64: 8, 1>}, {pipeline_mode = #tpu.pipeline_mode<synchronous>, transform_indices = @transform_4, window_bounds = array<i64: 32, 512>}]} {
    %c0 = arith.constant 0 : index
    %c0_0 = arith.constant 0 : index
    %0 = vector.load %arg1[%c0, %c0_0] : memref<32x144xbf16, #tpu.memory_space<vmem>>, vector<32x144xbf16>
    %c0_1 = arith.constant 0 : index
    %c0_2 = arith.constant 0 : index
    %1 = vector.load %arg2[%c0_1, %c0_2] : memref<144x512xbf16, #tpu.memory_space<vmem>>, vector<144x512xbf16>
    %cst = arith.constant dense<0.000000e+00> : vector<32x512xf32>
    %2 = tpu.matmul %0, %1, %cst {dimension_numbers = #tpu.dot_dimension_numbers<[1], [0], [0], [1], [0, 0, 1, 1], [], []>} : vector<32x144xbf16>, vector<144x512xbf16>, vector<32x512xf32> -> vector<32x512xf32>
    %cst_3 = arith.constant 0.000000e+00 : f32
    %3 = vector.broadcast %cst_3 : f32 to vector<8x1xf32>
    %cst_4 = arith.constant 0.000000e+00 : f32
    %4 = vector.broadcast %cst_4 : f32 to vector<8x1xf32>
    %5 = vector.extract_strided_slice %2 {offsets = [0, 0], sizes = [8, 512], strides = [1, 1]} : vector<32x512xf32> to vector<8x512xf32>
    %cst_5 = arith.constant dense<0.000000e+00> : vector<8xf32>
    %6 = vector.multi_reduction <add>, %5, %cst_5 [1] : vector<8x512xf32> to vector<8xf32>
    %7 = vector.shape_cast %6 : vector<8xf32> to vector<8x1xf32>
    %8 = arith.addf %3, %7 : vector<8x1xf32>
    %9 = arith.mulf %5, %5 : vector<8x512xf32>
    %cst_6 = arith.constant dense<0.000000e+00> : vector<8xf32>
    %10 = vector.multi_reduction <add>, %9, %cst_6 [1] : vector<8x512xf32> to vector<8xf32>
    %11 = vector.shape_cast %10 : vector<8xf32> to vector<8x1xf32>
    %12 = arith.addf %4, %11 : vector<8x1xf32>
    %13 = vector.extract_strided_slice %2 {offsets = [8, 0], sizes = [8, 512], strides = [1, 1]} : vector<32x512xf32> to vector<8x512xf32>
    %cst_7 = arith.constant dense<0.000000e+00> : vector<8xf32>
    %14 = vector.multi_reduction <add>, %13, %cst_7 [1] : vector<8x512xf32> to vector<8xf32>
    %15 = vector.shape_cast %14 : vector<8xf32> to vector<8x1xf32>
    %16 = arith.addf %8, %15 : vector<8x1xf32>
    %17 = arith.mulf %13, %13 : vector<8x512xf32>
    %cst_8 = arith.constant dense<0.000000e+00> : vector<8xf32>
    %18 = vector.multi_reduction <add>, %17, %cst_8 [1] : vector<8x512xf32> to vector<8xf32>
    %19 = vector.shape_cast %18 : vector<8xf32> to vector<8x1xf32>
    %20 = arith.addf %12, %19 : vector<8x1xf32>
    %21 = vector.extract_strided_slice %2 {offsets = [16, 0], sizes = [8, 512], strides = [1, 1]} : vector<32x512xf32> to vector<8x512xf32>
    %cst_9 = arith.constant dense<0.000000e+00> : vector<8xf32>
    %22 = vector.multi_reduction <add>, %21, %cst_9 [1] : vector<8x512xf32> to vector<8xf32>
    %23 = vector.shape_cast %22 : vector<8xf32> to vector<8x1xf32>
    %24 = arith.addf %16, %23 : vector<8x1xf32>
    %25 = arith.mulf %21, %21 : vector<8x512xf32>
    %cst_10 = arith.constant dense<0.000000e+00> : vector<8xf32>
    %26 = vector.multi_reduction <add>, %25, %cst_10 [1] : vector<8x512xf32> to vector<8xf32>
    %27 = vector.shape_cast %26 : vector<8xf32> to vector<8x1xf32>
    %28 = arith.addf %20, %27 : vector<8x1xf32>
    %29 = vector.extract_strided_slice %2 {offsets = [24, 0], sizes = [8, 512], strides = [1, 1]} : vector<32x512xf32> to vector<8x512xf32>
    %cst_11 = arith.constant dense<0.000000e+00> : vector<8xf32>
    %30 = vector.multi_reduction <add>, %29, %cst_11 [1] : vector<8x512xf32> to vector<8xf32>
    %31 = vector.shape_cast %30 : vector<8xf32> to vector<8x1xf32>
    %32 = arith.addf %24, %31 : vector<8x1xf32>
    %33 = arith.mulf %29, %29 : vector<8x512xf32>
    %cst_12 = arith.constant dense<0.000000e+00> : vector<8xf32>
    %34 = vector.multi_reduction <add>, %33, %cst_12 [1] : vector<8x512xf32> to vector<8xf32>
    %35 = vector.shape_cast %34 : vector<8xf32> to vector<8x1xf32>
    %36 = arith.addf %28, %35 : vector<8x1xf32>
    %cst_13 = arith.constant 4.8828125E-4 : f32
    %37 = vector.broadcast %cst_13 : f32 to vector<8x1xf32>
    %38 = arith.mulf %32, %37 : vector<8x1xf32>
    %cst_14 = arith.constant 4.8828125E-4 : f32
    %39 = vector.broadcast %cst_14 : f32 to vector<8x1xf32>
    %40 = arith.mulf %36, %39 : vector<8x1xf32>
    %41 = arith.mulf %38, %38 : vector<8x1xf32>
    %42 = arith.subf %40, %41 : vector<8x1xf32>
    %cst_15 = arith.constant 0.000000e+00 : f32
    %43 = vector.broadcast %cst_15 : f32 to vector<8x1xf32>
    %44 = arith.maximumf %42, %43 : vector<8x1xf32>
    %c0_16 = arith.constant 0 : index
    %c0_17 = arith.constant 0 : index
    %45 = vector.load %arg3[%c0_16, %c0_17] : memref<8x1xf32, #tpu.memory_space<vmem>>, vector<8x1xf32>
    %cst_18 = arith.constant 9.99999974E-6 : f32
    %46 = vector.broadcast %cst_18 : f32 to vector<8x1xf32>
    %47 = arith.addf %44, %46 : vector<8x1xf32>
    %48 = math.rsqrt %47 : vector<8x1xf32>
    %49 = arith.mulf %45, %48 : vector<8x1xf32>
    %c0_19 = arith.constant 0 : index
    %c0_20 = arith.constant 0 : index
    %50 = vector.load %arg4[%c0_19, %c0_20] : memref<8x1xf32, #tpu.memory_space<vmem>>, vector<8x1xf32>
    %51 = arith.mulf %38, %49 : vector<8x1xf32>
    %52 = arith.subf %50, %51 : vector<8x1xf32>
    %53 = vector.extract_strided_slice %2 {offsets = [0, 0], sizes = [8, 512], strides = [1, 1]} : vector<32x512xf32> to vector<8x512xf32>
    %54 = vector.broadcast %49 : vector<8x1xf32> to vector<8x512xf32>
    %55 = arith.mulf %53, %54 : vector<8x512xf32>
    %56 = vector.broadcast %52 : vector<8x1xf32> to vector<8x512xf32>
    %57 = arith.addf %55, %56 : vector<8x512xf32>
    %cst_21 = arith.constant 0.000000e+00 : f32
    %58 = vector.broadcast %cst_21 : f32 to vector<8x512xf32>
    %59 = arith.maximumf %57, %58 : vector<8x512xf32>
    %c0_22 = arith.constant 0 : index
    %c0_23 = arith.constant 0 : index
    %60 = vector.load %arg5[%c0_22, %c0_23] : memref<32x512xf32, #tpu.memory_space<vmem>>, vector<8x512xf32>
    tpu.vector_store %arg5[%c0_22, %c0_23], %59 {strides = array<i32>} : memref<32x512xf32, #tpu.memory_space<vmem>>, vector<8x512xf32>,
    %61 = vector.extract_strided_slice %2 {offsets = [8, 0], sizes = [8, 512], strides = [1, 1]} : vector<32x512xf32> to vector<8x512xf32>
    %62 = vector.broadcast %49 : vector<8x1xf32> to vector<8x512xf32>
    %63 = arith.mulf %61, %62 : vector<8x512xf32>
    %64 = vector.broadcast %52 : vector<8x1xf32> to vector<8x512xf32>
    %65 = arith.addf %63, %64 : vector<8x512xf32>
    %cst_24 = arith.constant 0.000000e+00 : f32
    %66 = vector.broadcast %cst_24 : f32 to vector<8x512xf32>
    %67 = arith.maximumf %65, %66 : vector<8x512xf32>
    %c8 = arith.constant 8 : index
    %c0_25 = arith.constant 0 : index
    %68 = vector.load %arg5[%c8, %c0_25] : memref<32x512xf32, #tpu.memory_space<vmem>>, vector<8x512xf32>
    tpu.vector_store %arg5[%c8, %c0_25], %67 {strides = array<i32>} : memref<32x512xf32, #tpu.memory_space<vmem>>, vector<8x512xf32>,
    %69 = vector.extract_strided_slice %2 {offsets = [16, 0], sizes = [8, 512], strides = [1, 1]} : vector<32x512xf32> to vector<8x512xf32>
    %70 = vector.broadcast %49 : vector<8x1xf32> to vector<8x512xf32>
    %71 = arith.mulf %69, %70 : vector<8x512xf32>
    %72 = vector.broadcast %52 : vector<8x1xf32> to vector<8x512xf32>
    %73 = arith.addf %71, %72 : vector<8x512xf32>
    %cst_26 = arith.constant 0.000000e+00 : f32
    %74 = vector.broadcast %cst_26 : f32 to vector<8x512xf32>
    %75 = arith.maximumf %73, %74 : vector<8x512xf32>
    %c16 = arith.constant 16 : index
    %c0_27 = arith.constant 0 : index
    %76 = vector.load %arg5[%c16, %c0_27] : memref<32x512xf32, #tpu.memory_space<vmem>>, vector<8x512xf32>
    tpu.vector_store %arg5[%c16, %c0_27], %75 {strides = array<i32>} : memref<32x512xf32, #tpu.memory_space<vmem>>, vector<8x512xf32>,
    %77 = vector.extract_strided_slice %2 {offsets = [24, 0], sizes = [8, 512], strides = [1, 1]} : vector<32x512xf32> to vector<8x512xf32>
    %78 = vector.broadcast %49 : vector<8x1xf32> to vector<8x512xf32>
    %79 = arith.mulf %77, %78 : vector<8x512xf32>
    %80 = vector.broadcast %52 : vector<8x1xf32> to vector<8x512xf32>
    %81 = arith.addf %79, %80 : vector<8x512xf32>
    %cst_28 = arith.constant 0.000000e+00 : f32
    %82 = vector.broadcast %cst_28 : f32 to vector<8x512xf32>
    %83 = arith.maximumf %81, %82 : vector<8x512xf32>
    %c24 = arith.constant 24 : index
    %c0_29 = arith.constant 0 : index
    %84 = vector.load %arg5[%c24, %c0_29] : memref<32x512xf32, #tpu.memory_space<vmem>>, vector<8x512xf32>
    tpu.vector_store %arg5[%c24, %c0_29], %83 {strides = array<i32>} : memref<32x512xf32, #tpu.memory_space<vmem>>, vector<8x512xf32>,
    return
  }
  func.func @transform_0(%arg0: i32) -> (i32, i32) {
    %c0_i32 = arith.constant 0 : i32
    %c0_i32_0 = arith.constant 0 : i32
    %c0_i32_1 = arith.constant 0 : i32
    return %c0_i32, %c0_i32_0 : i32, i32
  }
  func.func @transform_1(%arg0: i32) -> (i32, i32) {
    %c0_i32 = arith.constant 0 : i32
    %c0_i32_0 = arith.constant 0 : i32
    return %c0_i32, %arg0 : i32, i32
  }
  func.func @transform_2(%arg0: i32) -> (i32, i32) {
    %c0_i32 = arith.constant 0 : i32
    %c0_i32_0 = arith.constant 0 : i32
    %c0_i32_1 = arith.constant 0 : i32
    return %c0_i32, %c0_i32_0 : i32, i32
  }
  func.func @transform_3(%arg0: i32) -> (i32, i32) {
    %c0_i32 = arith.constant 0 : i32
    %c0_i32_0 = arith.constant 0 : i32
    %c0_i32_1 = arith.constant 0 : i32
    return %c0_i32, %c0_i32_0 : i32, i32
  }
  func.func @transform_4(%arg0: i32) -> (i32, i32) {
    %c0_i32 = arith.constant 0 : i32
    %c0_i32_0 = arith.constant 0 : i32
    %c0_i32_1 = arith.constant 0 : i32
    return %c0_i32, %c0_i32_0 : i32, i32
  }
}

module attributes {stable_mosaic.version = 11 : i64} {
  func.func @_gemm_tanh_kernel(%arg0: i32, %arg1: memref<12x72xbf16, #tpu.memory_space<vmem>>, %arg2: memref<72x2048xbf16, #tpu.memory_space<vmem>>, %arg3: memref<12x2048xf32, #tpu.memory_space<vmem>>) attributes {dimension_semantics = [#tpu.dimension_semantics<parallel>], iteration_bounds = array<i64: 1>, scalar_prefetch = 0 : i64, scratch_operands = 0 : i64, tpu.core_type = #tpu.core_type<tc>, window_params = [{pipeline_mode = #tpu.pipeline_mode<synchronous>, transform_indices = @transform_0, window_bounds = array<i64: 12, 72>}, {transform_indices = @transform_1, window_bounds = array<i64: 72, 2048>}, {transform_indices = @transform_2, window_bounds = array<i64: 12, 2048>}]} {
    %c0 = arith.constant 0 : index
    %c0_0 = arith.constant 0 : index
    %0 = vector.load %arg1[%c0, %c0_0] : memref<12x72xbf16, #tpu.memory_space<vmem>>, vector<12x72xbf16>
    %c0_1 = arith.constant 0 : index
    %c0_2 = arith.constant 0 : index
    %1 = vector.load %arg2[%c0_1, %c0_2] : memref<72x2048xbf16, #tpu.memory_space<vmem>>, vector<72x2048xbf16>
    %cst = arith.constant dense<0.000000e+00> : vector<12x2048xf32>
    %2 = tpu.matmul %0, %1, %cst {dimension_numbers = #tpu.dot_dimension_numbers<[1], [0], [0], [1], [0, 0, 1, 1], [], []>} : vector<12x72xbf16>, vector<72x2048xbf16>, vector<12x2048xf32> -> vector<12x2048xf32>
    %3 = math.tanh %2 : vector<12x2048xf32>
    %c0_3 = arith.constant 0 : index
    %c0_4 = arith.constant 0 : index
    %4 = vector.load %arg3[%c0_3, %c0_4] : memref<12x2048xf32, #tpu.memory_space<vmem>>, vector<12x2048xf32>
    tpu.vector_store %arg3[%c0_3, %c0_4], %3 {strides = array<i32>} : memref<12x2048xf32, #tpu.memory_space<vmem>>, vector<12x2048xf32>,
    return
  }
  func.func @transform_0(%arg0: i32) -> (i32, i32) {
    %c0_i32 = arith.constant 0 : i32
    %c0_i32_0 = arith.constant 0 : i32
    %c0_i32_1 = arith.constant 0 : i32
    return %c0_i32, %c0_i32_0 : i32, i32
  }
  func.func @transform_1(%arg0: i32) -> (i32, i32) {
    %c0_i32 = arith.constant 0 : i32
    %c0_i32_0 = arith.constant 0 : i32
    return %c0_i32, %arg0 : i32, i32
  }
  func.func @transform_2(%arg0: i32) -> (i32, i32) {
    %c0_i32 = arith.constant 0 : i32
    %c0_i32_0 = arith.constant 0 : i32
    return %c0_i32, %arg0 : i32, i32
  }
}

</mosaic_0001>

<bundles_post_ra>
// kernel: generator_forward.5
= control target key start
LH: loop header
LB: loop body
LE: loop exit
PB: predicated region body
PF: predicated region fallthrough
CT: control target
= control target key end

     0   :  { %vm259_vm0 = vcmask 261120   ;;  %s948_s1 = inlined_call_operand.vmem [shape: bf16[256,32], index: 1, kind: input, shape index: {}]   ;;  %s949_s0 = inlined_call_operand.vmem [shape: bf16[64,256], index: 0, kind: input, shape index: {}]   ;;  %s950_s2 = inlined_call_operand.vmem [shape: f32[64,1], index: 2, kind: input, shape index: {}]   ;;  %s951_s3 = inlined_call_operand.vmem [shape: f32[64,1], index: 3, kind: input, shape index: {}]   ;;  %s952_s4 = inlined_call_operand.vmem [shape: f32[64,32], index: 4, kind: output, shape index: {}]  }
   0x1   :  { %v627_v0 = vld [vmem:[%s948_s1 + $0x40] sm:$0xff]   ;;  %v629_v2 = vld [vmem:[%s948_s1 + $0x48] sm:$0xff]   ;;  %v631_v4 = vld [vmem:[%s948_s1 + $0x50] sm:$0xff]  }
   0x2   :  { %v628_v1 = vld [vmem:[%s948_s1] sm:$0xff]   ;;  %568 = vmatprep.subr.bf16.mxu0 %v627_v0  ;;  %608 = vmatprep.subr.bf16.mxu1 %v627_v0  ;;  %v630_v3 = vld [vmem:[%s948_s1 + $0x8] sm:$0xff]   ;;  %v632_v5 = vld [vmem:[%s948_s1 + $0x10] sm:$0xff]  }
   0x3   :  { %569 = vmatpush3.bf16.msra.mxu0 %v628_v1  ;;  %616 = vmatpush3.bf16.msra.mxu1 %v628_v1  ;;  %v633_v6 = vld [vmem:[%s948_s1 + $0x58] sm:$0xff]   ;;  %v635_v8 = vld [vmem:[%s948_s1 + $0x60] sm:$0xff]   ;;  %v637_v10 = vld [vmem:[%s948_s1 + $0x68] sm:$0xff]  }
   0x4   :  { %570 = vmatprep.subr.bf16.mxu0 %v629_v2  ;;  %609 = vmatprep.subr.bf16.mxu1 %v629_v2  ;;  %v634_v7 = vld [vmem:[%s948_s1 + $0x18] sm:$0xff]   ;;  %v636_v9 = vld [vmem:[%s948_s1 + $0x20] sm:$0xff]   ;;  %v638_v13 = vld [vmem:[%s948_s1 + $0x28] sm:$0xff]  }
   0x5   :  { %v645_v11 = vld [vmem:[%s949_s0 + $0x4] ss:$8 sps:$4 sm:$0xff]   ;;  %v639_v14 = vld [vmem:[%s948_s1 + $0x70] sm:$0xff]   ;;  %v641_v16 = vld [vmem:[%s948_s1 + $0x78] sm:$0xff]  }
   0x6   :  { %v648_v12 = vld [vmem:[%s949_s0 + $0x24] ss:$8 sps:$4 sm:$0xff]   ;;  %226 = vmatprep.mubr.bf16.mxu0 %v645_v11  ;;  %v640_v15 = vld [vmem:[%s948_s1 + $0x30] sm:$0xff]   ;;  %v642_v17 = vld [vmem:[%s948_s1 + $0x38] sm:$0xff]  }
   0x7   :  { %571 = vmatpush3.bf16.msra.mxu0 %v630_v3  ;;  %617 = vmatpush3.bf16.msra.mxu1 %v630_v3  ;;  %v643_v18 = vld [vmem:[%s949_s0] ss:$8 sps:$4 sm:$0xff]   ;;  %v649_v20 = vld [vmem:[%s949_s0 + $0x14] ss:$8 sps:$4 sm:$0xff]   ;;  %v651_v22 = vld [vmem:[%s949_s0 + $0x10] ss:$8 sps:$4 sm:$0xff]  }
   0x8   :  { %572 = vmatprep.subr.bf16.mxu0 %v631_v4  ;;  %610 = vmatprep.subr.bf16.mxu1 %v631_v4  ;;  %v646_v19 = vld [vmem:[%s949_s0 + $0x20] ss:$8 sps:$4 sm:$0xff]   ;;  %v652_v21 = vld [vmem:[%s949_s0 + $0x34] ss:$8 sps:$4 sm:$0xff]   ;;  %v654_v23 = vld [vmem:[%s949_s0 + $0x30] ss:$8 sps:$4 sm:$0xff]  }
   0x9   :  { %242 = vmatprep.mubr.bf16.mxu1 %v648_v12 }
   0xb   :  { %573 = vmatpush3.bf16.msra.mxu0 %v632_v5  ;;  %618 = vmatpush3.bf16.msra.mxu1 %v632_v5 }
   0xc   :  { %574 = vmatprep.subr.bf16.mxu0 %v633_v6  ;;  %611 = vmatprep.subr.bf16.mxu1 %v633_v6 }
   0xf   :  { %575 = vmatpush3.bf16.msra.mxu0 %v634_v7  ;;  %619 = vmatpush3.bf16.msra.mxu1 %v634_v7 }
  0x10   :  { %576 = vmatprep.subr.bf16.mxu0 %v635_v8  ;;  %612 = vmatprep.subr.bf16.mxu1 %v635_v8  ;;  %v671_v8 = vmov 0  }
  0x11   :  { %625 = vset.pattern.permute.xlu0 %v671_v8  ;;  %626 = vset.pattern.permute.xlu1 %v671_v8 }
  0x13   :  { %577 = vmatpush3.bf16.msra.mxu0 %v636_v9  ;;  %620 = vmatpush3.bf16.msra.mxu1 %v636_v9 }
  0x14   :  { %578 = vmatprep.subr.bf16.mxu0 %v637_v10  ;;  %613 = vmatprep.subr.bf16.mxu1 %v637_v10 }
  0x17   :  { %579 = vmatpush3.bf16.msra.mxu0 %v638_v13  ;;  %621 = vmatpush3.bf16.msra.mxu1 %v638_v13 }
  0x18   :  { %580 = vmatprep.subr.bf16.mxu0 %v639_v14  ;;  %614 = vmatprep.subr.bf16.mxu1 %v639_v14 }
  0x1b   :  { %581 = vmatpush3.bf16.msra.mxu0 %v640_v15  ;;  %622 = vmatpush3.bf16.msra.mxu1 %v640_v15 }
  0x1c   :  { %582 = vmatprep.subr.bf16.mxu0 %v641_v16  ;;  %615 = vmatprep.subr.bf16.mxu1 %v641_v16 }
  0x1f   :  { %583 = vmatpush3.bf16.msra.mxu0 %v642_v17  ;;  %623 = vmatpush3.bf16.msra.mxu1 %v642_v17 }
  0x22   :  { %227 = vmatmul.mubr.bf16.vlgmr.msra.gmra.mrb[0].mxu0 %v643_v18  ;;  %243 = vmatmul.mubr.bf16.vlgmr.msra.gmra.mrb[0].mxu1 %v646_v19 }
  0x23   :  { %234 = vmatprep.mubr.bf16.mxu0 %v649_v20  ;;  %250 = vmatprep.mubr.bf16.mxu1 %v652_v21 }
  0x2a   :  { %235 = vmatmul.mubr.bf16.gmra.mrb[4].mxu0 %v651_v22  ;;  %251 = vmatmul.mubr.bf16.gmra.mrb[4].mxu1 %v654_v23 }
  0xf5   :  { %v584_v24 = vpop.f32.mrb[0].mxu0  ;;  %v596_v25 = vpop.f32.mrb[0].mxu1 }
  0xf6   :  { %v585_v26 = vpop.f32.mrb[1].mxu0  ;;  %v597_v27 = vpop.f32.mrb[1].mxu1 }
  0xf7   :  { %v769_v28 = vadd.f32 %v585_v26, %v584_v24  ;;  %v771_v29 = vadd.f32 %v597_v27, %v596_v25  ;;  %v587_v30 = vpop.f32.mrb[2].mxu0  ;;  %v599_v31 = vpop.f32.mrb[2].mxu1 }
  0xf8   :  { %v588_v32 = vpop.f32.mrb[3].mxu0  ;;  %v600_v33 = vpop.f32.mrb[3].mxu1 }
  0xf9   :  { %v773_v34 = vadd.f32 %v588_v32, %v587_v30  ;;  %v775_v35 = vadd.f32 %v600_v33, %v599_v31  ;;  %v260_v36 = vsel %vm259_vm0, %v769_v28, 0.0  ;;  %v272_v38 = vsel %vm259_vm0, %v771_v29, 0.0 }
  0xfa   :  { %261 = vadd.xlane.f32.xlu0 %v260_v36  ;;  %v292_v53 = vmul.f32 %v769_v28, %v769_v28  ;;  %v296_v59 = vmul.f32 %v771_v29, %v771_v29 }
  0xfb   :  { %v275_v37 = vsel %vm259_vm0, %v775_v35, 0.0  ;;  %v293_v39 = vmul.f32 %v773_v34, %v773_v34  ;;  %v297_v46 = vmul.f32 %v775_v35, %v775_v35  ;;  %v263_v52 = vsel %vm259_vm0, %v773_v34, 0.0 }
  0xfc   :  { %276 = vadd.xlane.f32.xlu1 %v275_v37  ;;  %v300_v57 = vsel %vm259_vm0, %v292_v53, 0.0  ;;  %v312_v60 = vsel %vm259_vm0, %v296_v59, 0.0  ;;  %v373_v59 = vld [vmem:[%s950_s2 + $0x8] sm:$0xff] }
  0xfd   :  { %v590_v40 = vpop.f32.mrb[4].mxu0  ;;  %v602_v41 = vpop.f32.mrb[4].mxu1  ;;  %v303_v44 = vsel %vm259_vm0, %v293_v39, 0.0  ;;  %v315_v56 = vsel %vm259_vm0, %v297_v46, 0.0 }
  0xfe   :  { %273 = vadd.xlane.f32.xlu0 %v272_v38  ;;  %v591_v42 = vpop.f32.mrb[5].mxu0  ;;  %v603_v43 = vpop.f32.mrb[5].mxu1 }
  0xff   :  { %v786_v45 = vadd.f32 %v591_v42, %v590_v40  ;;  %v593_v47 = vpop.f32.mrb[6].mxu0  ;;  %v790_v48 = vadd.f32 %v603_v43, %v602_v41  ;;  %v605_v49 = vpop.f32.mrb[6].mxu1 }
 0x100   :  { %304 = vadd.xlane.f32.xlu1 %v303_v44  ;;  %v594_v50 = vpop.f32.mrb[7].mxu0  ;;  %v606_v51 = vpop.f32.mrb[7].mxu1 }
 0x101   :  { %v796_v54 = vadd.f32 %v594_v50, %v593_v47  ;;  %v798_v55 = vadd.f32 %v606_v51, %v605_v49  ;;  %v266_v58 = vsel %vm259_vm0, %v786_v45, 0.0  ;;  %v278_v62 = vsel %vm259_vm0, %v790_v48, 0.0 }
 0x102   :  { %264 = vadd.xlane.f32.xlu0 %v263_v52  ;;  %v294_v63 = vmul.f32 %v786_v45, %v786_v45  ;;  %v298_v3 = vmul.f32 %v790_v48, %v790_v48 }
 0x103   :  { %v269_v61 = vsel %vm259_vm0, %v796_v54, 0.0  ;;  %v281_v0 = vsel %vm259_vm0, %v798_v55, 0.0  ;;  %v295_v1 = vmul.f32 %v796_v54, %v796_v54  ;;  %v299_v5 = vmul.f32 %v798_v55, %v798_v55 }
 0x104   :  { %316 = vadd.xlane.f32.xlu1 %v315_v56  ;;  %v306_v2 = vsel %vm259_vm0, %v294_v63, 0.0  ;;  %v318_v6 = vsel %vm259_vm0, %v298_v3, 0.0 }
 0x105   :  { %v309_v4 = vsel %vm259_vm0, %v295_v1, 0.0  ;;  %v321_v7 = vsel %vm259_vm0, %v299_v5, 0.0  ;;  %v377_v5 = vld [vmem:[%s950_s2 + $0x28] sm:$0xff] }
 0x106   :  { %301 = vadd.xlane.f32.xlu0 %v300_v57 }
 0x108   :  { %267 = vadd.xlane.f32.xlu1 %v266_v58 }
 0x10a   :  { %313 = vadd.xlane.f32.xlu0 %v312_v60 }
 0x10c   :  { %270 = vadd.xlane.f32.xlu1 %v269_v61 }
 0x10e   :  { %279 = vadd.xlane.f32.xlu0 %v278_v62 }
 0x110   :  { %282 = vadd.xlane.f32.xlu1 %v281_v0 }
 0x112   :  { %307 = vadd.xlane.f32.xlu0 %v306_v2 }
 0x114   :  { %310 = vadd.xlane.f32.xlu1 %v309_v4  ;;  %v372_v4 = vld [vmem:[%s950_s2] sm:$0xff] }
 0x116   :  { %319 = vadd.xlane.f32.xlu0 %v318_v6 }
 0x118   :  { %322 = vadd.xlane.f32.xlu1 %v321_v7 }
 0x187   :  { %v262_v9 = vpop.xlane.xlu0 %261 }
 0x188   :  { %v827_v15 = vmul.f32 0.03125, %v262_v9 }
 0x189   :  { %v277_v10 = vpop.xlane.xlu1 %276 }
 0x18a   :  { %v825_v13 = vmul.f32 0.03125, %v277_v10  ;;  %v348_v23 = vmul.f32 %v827_v15, %v827_v15 }
 0x18b   :  { %v274_v11 = vpop.xlane.xlu0 %273 }
 0x18c   :  { %v353_v18 = vmul.f32 %v825_v13, %v825_v13  ;;  %v833_v27 = vmul.f32 0.03125, %v274_v11 }
 0x18d   :  { %v305_v12 = vpop.xlane.xlu1 %304 }
 0x18e   :  { %v341_v19 = vmul.f32 0.03125, %v305_v12  ;;  %v352_v40 = vmul.f32 %v833_v27, %v833_v27 }
 0x18f   :  { %v265_v14 = vpop.xlane.xlu0 %264 }
 0x190   :  { %v333_v16 = vmul.f32 0.03125, %v265_v14 }
 0x191   :  { %v317_v17 = vpop.xlane.xlu1 %316 }
 0x192   :  { %v349_v20 = vmul.f32 %v333_v16, %v333_v16  ;;  %v345_v21 = vmul.f32 0.03125, %v317_v17 }
 0x193   :  { %v302_v22 = vpop.xlane.xlu0 %301 }
 0x194   :  { %v357_v24 = vsub.f32 %v341_v19, %v349_v20  ;;  %v361_v25 = vsub.f32 %v345_v21, %v353_v18  ;;  %v340_v26 = vmul.f32 0.03125, %v302_v22 }
 0x195   :  { %v268_v30 = vpop.xlane.xlu1 %267 }
 0x196   :  { %v365_v31 = vmax.f32 %v357_v24, 0.0  ;;  %v369_v32 = vmax.f32 %v361_v25, 0.0  ;;  %v356_v33 = vsub.f32 %v340_v26, %v348_v23  ;;  %v839_v51 = vmul.f32 0.03125, %v268_v30  ;;  %v405_v23 = vld [vmem:[%s951_s3 + $0x8] sm:$0xff]  ;;  %v376_v24 = vld [vmem:[%s950_s2 + $0x20] sm:$0xff] }
 0x197   :  { %v314_v36 = vpop.xlane.xlu0 %313 }
 0x198   :  { %v381_v37 = vadd.f32 1e-05, %v365_v31  ;;  %v385_v38 = vadd.f32 1e-05, %v369_v32  ;;  %v364_v39 = vmax.f32 %v356_v33, 0.0  ;;  %v344_v41 = vmul.f32 0.03125, %v314_v36 }
 0x199   :  { %v271_v42 = vpop.xlane.xlu1 %270  ;;  %v350_v60 = vmul.f32 %v839_v51, %v839_v51 }
 0x19a   :  { %655 = vrsqrt.f32 %v381_v37  ;;  %v380_v43 = vadd.f32 1e-05, %v364_v39  ;;  %v360_v44 = vsub.f32 %v344_v41, %v352_v40  ;;  %v837_v47 = vmul.f32 0.03125, %v271_v42  ;;  %v409_v37 = vld [vmem:[%s951_s3 + $0x28] sm:$0xff]  ;;  %v375_v41 = vld [vmem:[%s950_s2 + $0x18] sm:$0xff] }
 0x19b   :  { %657 = vrsqrt.f32 %v385_v38  ;;  %v280_v46 = vpop.xlane.xlu0 %279 }
 0x19c   :  { %659 = vrsqrt.f32 %v380_v43  ;;  %v368_v49 = vmax.f32 %v360_v44, 0.0  ;;  %v351_v56 = vmul.f32 %v837_v47, %v837_v47  ;;  %v850_v61 = vmul.f32 0.03125, %v280_v46  ;;  %v404_v44 = vld [vmem:[%s951_s3] sm:$0xff] }
 0x19d   :  { %v283_v50 = vpop.xlane.xlu1 %282 }
 0x19e   :  { %v384_v52 = vadd.f32 1e-05, %v368_v49  ;;  %v843_v57 = vmul.f32 0.03125, %v283_v50  ;;  %v354_v10 = vmul.f32 %v850_v61, %v850_v61  ;;  %v407_v49 = vld [vmem:[%s951_s3 + $0x18] sm:$0xff] }
 0x19f   :  { %v308_v53 = vpop.xlane.xlu0 %307  ;;  %v379_v50 = vld [vmem:[%s950_s2 + $0x38] sm:$0xff] }
 0x1a0   :  { %661 = vrsqrt.f32 %v384_v52  ;;  %v342_v62 = vmul.f32 0.03125, %v308_v53  ;;  %v355_v1 = vmul.f32 %v843_v57, %v843_v57 }
 0x1a1   :  { %v311_v58 = vpop.xlane.xlu1 %310 }
 0x1a2   :  { %v343_v63 = vmul.f32 0.03125, %v311_v58  ;;  %v358_v11 = vsub.f32 %v342_v62, %v350_v60  ;;  %v411_v62 = vld [vmem:[%s951_s3 + $0x38] sm:$0xff] }
 0x1a3   :  { %v320_v3 = vpop.xlane.xlu0 %319 }
 0x1a4   :  { %v656_v0 = vpop.eup %655  ;;  %v359_v2 = vsub.f32 %v343_v63, %v351_v56  ;;  %v346_v18 = vmul.f32 0.03125, %v320_v3  ;;  %v366_v30 = vmax.f32 %v358_v11, 0.0 }
 0x1a5   :  { %v658_v6 = vpop.eup %657  ;;  %v397_v7 = vmul.f32 %v656_v0, %v373_v59  ;;  %v323_v8 = vpop.xlane.xlu1 %322  ;;  %v408_v59 = vld [vmem:[%s951_s3 + $0x20] sm:$0xff] }
 0x1a6   :  { %v660_v9 = vpop.eup %659  ;;  %v367_v12 = vmax.f32 %v359_v2, 0.0  ;;  %v347_v14 = vmul.f32 0.03125, %v323_v8  ;;  %v401_v20 = vmul.f32 %v658_v6, %v377_v5  ;;  %v362_v31 = vsub.f32 %v346_v18, %v354_v10  ;;  %v406_v6 = vld [vmem:[%s951_s3 + $0x10] sm:$0xff] }
 0x1a7   :  { %v413_v17 = vmul.f32 %v397_v7, %v333_v16  ;;  %v396_v19 = vmul.f32 %v660_v9, %v372_v4  ;;  %v382_v38 = vadd.f32 1e-05, %v366_v30  ;;  %v378_v4 = vld [vmem:[%s950_s2 + $0x30] sm:$0xff] }
 0x1a8   :  { %v383_v21 = vadd.f32 1e-05, %v367_v12  ;;  %v363_v22 = vsub.f32 %v347_v14, %v355_v1  ;;  %v417_v32 = vmul.f32 %v401_v20, %v825_v13  ;;  %v370_v39 = vmax.f32 %v362_v31, 0.0  ;;  %v410_v9 = vld [vmem:[%s951_s3 + $0x30] sm:$0xff] }
 0x1a9   :  { %430 = vperm.xlu0 %625, %v396_v19   ;;  %v421_v16 = vsub.f32 %v405_v23, %v413_v17  ;;  %v412_v43 = vmul.f32 %v396_v19, %v827_v15 }
 0x1aa   :  { %663 = vrsqrt.f32 %v383_v21  ;;  %v371_v25 = vmax.f32 %v363_v22, 0.0  ;;  %v662_v26 = vpop.eup %661  ;;  %v425_v40 = vsub.f32 %v409_v37, %v417_v32  ;;  %v386_v13 = vadd.f32 1e-05, %v370_v39 }
 0x1ab   :  { %v400_v36 = vmul.f32 %v662_v26, %v376_v24  ;;  %v420_v56 = vsub.f32 %v404_v44, %v412_v43 }
 0x1ac   :  { %v387_v33 = vadd.f32 1e-05, %v371_v25 }
 0x1ad   :  { %483 = vperm.xlu0 %625, %v421_v16   ;;  %450 = vperm.xlu1 %626, %v400_v36   ;;  %v416_v15 = vmul.f32 %v400_v36, %v833_v27  ;;  %v374_v27 = vld [vmem:[%s950_s2 + $0x10] sm:$0xff] }
 0x1ae   :  { %665 = vrsqrt.f32 %v387_v33 }
 0x1af   :  { %667 = vrsqrt.f32 %v382_v38  ;;  %v424_v0 = vsub.f32 %v408_v59, %v416_v15 }
 0x1b0   :  { %669 = vrsqrt.f32 %v386_v13 }
 0x1b1   :  { %503 = vperm.xlu0 %625, %v425_v40   ;;  %435 = vperm.xlu1 %626, %v397_v7  }
 0x1b4   :  { %v664_v42 = vpop.eup %663 }
 0x1b5   :  { %v399_v46 = vmul.f32 %v664_v42, %v375_v41  ;;  %455 = vperm.xlu1 %626, %v401_v20  }
 0x1b7   :  { %v415_v52 = vmul.f32 %v399_v46, %v837_v47 }
 0x1b8   :  { %v666_v53 = vpop.eup %665 }
 0x1b9   :  { %v423_v58 = vsub.f32 %v407_v49, %v415_v52  ;;  %v403_v60 = vmul.f32 %v666_v53, %v379_v50  ;;  %478 = vperm.xlu1 %626, %v420_v56   ;;  %v668_v47 = vpop.eup %667 }
 0x1ba   :  { %v398_v2 = vmul.f32 %v668_v47, %v374_v27  ;;  %v670_v3 = vpop.eup %669 }
 0x1bb   :  { %493 = vperm.xlu0 %625, %v423_v58   ;;  %v419_v63 = vmul.f32 %v403_v60, %v843_v57  ;;  %v402_v5 = vmul.f32 %v670_v3, %v378_v4 }
 0x1bc   :  { %v414_v57 = vmul.f32 %v398_v2, %v839_v51 }
 0x1bd   :  { %v427_v1 = vsub.f32 %v411_v62, %v419_v63  ;;  %498 = vperm.xlu1 %626, %v424_v0   ;;  %v418_v8 = vmul.f32 %v402_v5, %v850_v61 }
 0x1be   :  { %v422_v7 = vsub.f32 %v406_v6, %v414_v57 }
 0x1bf   :  { %513 = vperm.xlu0 %625, %v427_v1   ;;  %v426_v10 = vsub.f32 %v410_v9, %v418_v8 }
 0x1c1   :  { %440 = vperm.xlu1 %626, %v398_v2  }
 0x1c5   :  { %460 = vperm.xlu1 %626, %v402_v5  }
 0x1c9   :  { %445 = vperm.xlu1 %626, %v399_v46  }
 0x1cd   :  { %465 = vperm.xlu1 %626, %v403_v60  }
 0x1d1   :  { %488 = vperm.xlu1 %626, %v422_v7  }
 0x1d5   :  { %508 = vperm.xlu1 %626, %v426_v10  }
 0x228   :  { %v431_v11 = vpop.permute.xlu0 %430 }
 0x229   :  { %v468_v61 = vmul.f32 %v769_v28, %v431_v11 }
 0x22c   :  { %v451_v12 = vpop.permute.xlu1 %450  ;;  %v484_v14 = vpop.permute.xlu0 %483 }
 0x22d   :  { %v472_v30 = vmul.f32 %v771_v29, %v451_v12 }
 0x230   :  { %v436_v17 = vpop.permute.xlu1 %435  ;;  %v504_v22 = vpop.permute.xlu0 %503 }
 0x231   :  { %v469_v51 = vmul.f32 %v773_v34, %v436_v17 }
 0x233   :  { %v517_v18 = vadd.f32 %v484_v14, %v469_v51 }
 0x234   :  { %v456_v19 = vpop.permute.xlu1 %455 }
 0x235   :  { %v525_v20 = vmax.f32 %v517_v18, 0.0  ;;  %v473_v21 = vmul.f32 %v775_v35, %v456_v19 }
 0x237   :  { %533 = vst.msk [vmem:[%s952_s4 + $0x8] sm:$0xff] %vm259_vm0, %v525_v20  ;;  %v521_v23 = vadd.f32 %v504_v22, %v473_v21 }
 0x238   :  { %v479_v24 = vpop.permute.xlu1 %478 }
 0x239   :  { %v529_v25 = vmax.f32 %v521_v23, 0.0  ;;  %v516_v26 = vadd.f32 %v479_v24, %v468_v61 }
 0x23a   :  { %v494_v32 = vpop.permute.xlu0 %493 }
 0x23b   :  { %537 = vst.msk [vmem:[%s952_s4 + $0x28] sm:$0xff] %vm259_vm0, %v529_v25  ;;  %v524_v34 = vmax.f32 %v516_v26, 0.0 }
 0x23c   :  { %v499_v35 = vpop.permute.xlu1 %498 }
 0x23d   :  { %532 = vst.msk [vmem:[%s952_s4] sm:$0xff] %vm259_vm0, %v524_v34  ;;  %v520_v28 = vadd.f32 %v499_v35, %v472_v30 }
 0x23e   :  { %v514_v41 = vpop.permute.xlu0 %513 }
 0x23f   :  { %v528_v31 = vmax.f32 %v520_v28, 0.0 }
 0x240   :  { %v441_v16 = vpop.permute.xlu1 %440 }
 0x241   :  { %536 = vst.msk [vmem:[%s952_s4 + $0x20] sm:$0xff] %vm259_vm0, %v528_v31  ;;  %v470_v13 = vmul.f32 %v786_v45, %v441_v16 }
 0x244   :  { %v461_v29 = vpop.permute.xlu1 %460 }
 0x245   :  { %v474_v49 = vmul.f32 %v790_v48, %v461_v29 }
 0x248   :  { %v446_v33 = vpop.permute.xlu1 %445 }
 0x249   :  { %v471_v36 = vmul.f32 %v796_v54, %v446_v33 }
 0x24b   :  { %v519_v37 = vadd.f32 %v494_v32, %v471_v36 }
 0x24c   :  { %v466_v38 = vpop.permute.xlu1 %465 }
 0x24d   :  { %v527_v39 = vmax.f32 %v519_v37, 0.0  ;;  %v475_v40 = vmul.f32 %v798_v55, %v466_v38 }
 0x24f   :  { %535 = vst.msk [vmem:[%s952_s4 + $0x18] sm:$0xff] %vm259_vm0, %v527_v39  ;;  %v523_v42 = vadd.f32 %v514_v41, %v475_v40 }
 0x250   :  { %v489_v43 = vpop.permute.xlu1 %488 }
 0x251   :  { %v531_v44 = vmax.f32 %v523_v42, 0.0  ;;  %v518_v46 = vadd.f32 %v489_v43, %v470_v13 }
 0x253   :  { %539 = vst.msk [vmem:[%s952_s4 + $0x38] sm:$0xff] %vm259_vm0, %v531_v44  ;;  %v526_v54 = vmax.f32 %v518_v46, 0.0 }
 0x254   :  { %v509_v55 = vpop.permute.xlu1 %508 }
 0x255   :  { %534 = vst.msk [vmem:[%s952_s4 + $0x10] sm:$0xff] %vm259_vm0, %v526_v54  ;;  %v522_v45 = vadd.f32 %v509_v55, %v474_v49 }
 0x257   :  { %v530_v50 = vmax.f32 %v522_v45, 0.0 }
 0x259   :  { %538 = vst.msk [vmem:[%s952_s4 + $0x30] sm:$0xff] %vm259_vm0, %v530_v50 }

// kernel: generator_forward.6
= control target key start
LH: loop header
LB: loop body
LE: loop exit
PB: predicated region body
PF: predicated region fallthrough
CT: control target
= control target key end

     0   :  { %vm554_vm0 = vcmask 523264   ;;  %vm870_vm1 = vcmask 261120   ;;  %s2032_s1 = inlined_call_operand.vmem [shape: bf16[576,32], index: 1, kind: input, shape index: {}]   ;;  %s2033_s0 = inlined_call_operand.vmem [shape: bf16[128,576], index: 0, kind: input, shape index: {}]   ;;  %s2034_s2 = inlined_call_operand.vmem [shape: f32[32,1], index: 2, kind: input, shape index: {}]   ;;  %s2035_s3 = inlined_call_operand.vmem [shape: f32[32,1], index: 3, kind: input, shape index: {}]   ;;  %s2036_s4 = inlined_call_operand.vmem [shape: f32[128,32], index: 4, kind: output, shape index: {}]  }
   0x1   :  { %v1430_v0 = vld [vmem:[%s2032_s1 + $0x40] sm:$0xff]   ;;  %v1434_v4 = vld [vmem:[%s2032_s1 + $0x48] sm:$0xff]   ;;  %v1438_v8 = vld [vmem:[%s2032_s1 + $0x50] sm:$0xff]  }
   0x2   :  { %v1431_v1 = vld [vmem:[%s2032_s1 + $0xc0] sm:$0xff]   ;;  %1255 = vmatprep.subr.bf16.mxu0 %v1430_v0  ;;  %v1435_v5 = vld [vmem:[%s2032_s1 + $0xc8] sm:$0xff]   ;;  %v1439_v9 = vld [vmem:[%s2032_s1 + $0xd0] sm:$0xff]  }
   0x3   :  { %v1432_v2 = vld [vmem:[%s2032_s1] sm:$0xff]   ;;  %1319 = vmatprep.subr.bf16.mxu1 %v1431_v1  ;;  %v1436_v6 = vld [vmem:[%s2032_s1 + $0x8] sm:$0xff]   ;;  %v1440_v10 = vld [vmem:[%s2032_s1 + $0x10] sm:$0xff]  }
   0x4   :  { %v1433_v3 = vld [vmem:[%s2032_s1 + $0x80] sm:$0xff]   ;;  %1256 = vmatpush3.bf16.msra.mxu0 %v1432_v2  ;;  %v1437_v7 = vld [vmem:[%s2032_s1 + $0x88] sm:$0xff]   ;;  %v1441_v11 = vld [vmem:[%s2032_s1 + $0x90] sm:$0xff]  }
   0x5   :  { %1320 = vmatpush3.bf16.msra.mxu1 %v1433_v3  ;;  %1257 = vmatprep.subr.bf16.mxu0 %v1434_v4  ;;  %v1442_v12 = vld [vmem:[%s2032_s1 + $0x58] sm:$0xff]   ;;  %v1446_v16 = vld [vmem:[%s2032_s1 + $0x60] sm:$0xff]   ;;  %v1450_v20 = vld [vmem:[%s2032_s1 + $0x68] sm:$0xff]  }
   0x6   :  { %1321 = vmatprep.subr.bf16.mxu1 %v1435_v5  ;;  %v1443_v13 = vld [vmem:[%s2032_s1 + $0xd8] sm:$0xff]   ;;  %v1447_v17 = vld [vmem:[%s2032_s1 + $0xe0] sm:$0xff]   ;;  %v1451_v21 = vld [vmem:[%s2032_s1 + $0xe8] sm:$0xff]  }
   0x7   :  { %v1444_v14 = vld [vmem:[%s2032_s1 + $0x18] sm:$0xff]   ;;  %v1448_v18 = vld [vmem:[%s2032_s1 + $0x20] sm:$0xff]   ;;  %v1452_v22 = vld [vmem:[%s2032_s1 + $0x28] sm:$0xff]  }
   0x8   :  { %1258 = vmatpush3.bf16.msra.mxu0 %v1436_v6  ;;  %v1445_v15 = vld [vmem:[%s2032_s1 + $0x98] sm:$0xff]   ;;  %v1449_v19 = vld [vmem:[%s2032_s1 + $0xa0] sm:$0xff]   ;;  %v1453_v23 = vld [vmem:[%s2032_s1 + $0xa8] sm:$0xff]  }
   0x9   :  { %1322 = vmatpush3.bf16.msra.mxu1 %v1437_v7  ;;  %1259 = vmatprep.subr.bf16.mxu0 %v1438_v8  ;;  %v1454_v24 = vld [vmem:[%s2032_s1 + $0x70] sm:$0xff]   ;;  %v1458_v28 = vld [vmem:[%s2032_s1 + $0x78] sm:$0xff]   ;;  %v1467_v35 = vld [vmem:[%s2033_s0 + $0xc] ss:$20 sps:$4 sm:$0xff]  }
   0xa   :  { %1323 = vmatprep.subr.bf16.mxu1 %v1439_v9  ;;  %v1455_v25 = vld [vmem:[%s2032_s1 + $0xf0] sm:$0xff]   ;;  %v1459_v29 = vld [vmem:[%s2032_s1 + $0xf8] sm:$0xff]   ;;  %v1468_v36 = vld [vmem:[%s2032_s1 + $0x100] sm:$0xff]   ;;  %708 = vmatprep.mubr.bf16.mxu1 %v1467_v35 }
   0xb   :  { %v1456_v26 = vld [vmem:[%s2032_s1 + $0x30] sm:$0xff]   ;;  %v1460_v30 = vld [vmem:[%s2032_s1 + $0x38] sm:$0xff]   ;;  %v1469_v37 = vld [vmem:[%s2033_s0 + $0x2c] ss:$20 sps:$4 sm:$0xff]  }
   0xc   :  { %1260 = vmatpush3.bf16.msra.mxu0 %v1440_v10  ;;  %v1457_v27 = vld [vmem:[%s2032_s1 + $0xb0] sm:$0xff]   ;;  %v1461_v31 = vld [vmem:[%s2032_s1 + $0xb8] sm:$0xff]   ;;  %v1481_v42 = vld [vmem:[%s2032_s1 + $0x108] sm:$0xff]  }
   0xd   :  { %1324 = vmatpush3.bf16.msra.mxu1 %v1441_v11  ;;  %1261 = vmatprep.subr.bf16.mxu0 %v1442_v12  ;;  %v1462_v32 = vld [vmem:[%s2033_s0] ss:$20 sps:$4 sm:$0xff]   ;;  %v1464_v33 = vld [vmem:[%s2033_s0 + $0x4] ss:$20 sps:$4 sm:$0xff]   ;;  %v1465_v34 = vld [vmem:[%s2033_s0 + $0x8] ss:$20 sps:$4 sm:$0xff]  }
   0xe   :  { %1325 = vmatprep.subr.bf16.mxu1 %v1443_v13  ;;  %611 = vmatprep.mubr.bf16.mxu0 %v1464_v33  ;;  %v1471_v38 = vld [vmem:[%s2033_s0 + $0x34] ss:$20 sps:$4 sm:$0xff]   ;;  %v1474_v40 = vld [vmem:[%s2033_s0 + $0x30] ss:$20 sps:$4 sm:$0xff]   ;;  %v1480_v45 = vld [vmem:[%s2033_s0 + $0x58] ss:$20 sps:$4 sm:$0xff]  }
   0xf   :  { %v1473_v39 = vld [vmem:[%s2033_s0 + $0x28] ss:$20 sps:$4 sm:$0xff]   ;;  %v1479_v44 = vld [vmem:[%s2033_s0 + $0x50] ss:$20 sps:$4 sm:$0xff]   ;;  %v1486_v50 = vld [vmem:[%s2033_s0 + $0x78] ss:$20 sps:$4 sm:$0xff]  }
  0x10   :  { %1262 = vmatpush3.bf16.msra.mxu0 %v1444_v14  ;;  %v1475_v41 = vld [vmem:[%s2033_s0 + $0x54] ss:$20 sps:$4 sm:$0xff]   ;;  %v1477_v43 = vld [vmem:[%s2033_s0 + $0x5c] ss:$20 sps:$4 sm:$0xff]   ;;  %v1484_v48 = vld [vmem:[%s2033_s0 + $0x84] ss:$20 sps:$4 sm:$0xff]  }
  0x11   :  { %1326 = vmatpush3.bf16.msra.mxu1 %v1445_v15  ;;  %1263 = vmatprep.subr.bf16.mxu0 %v1446_v16  ;;  %v1494_v46 = vld [vmem:[%s2032_s1 + $0x110] sm:$0xff]   ;;  %v1507_v49 = vld [vmem:[%s2032_s1 + $0x118] sm:$0xff]   ;;  %v1490_v53 = vld [vmem:[%s2033_s0 + $0xac] ss:$20 sps:$4 sm:$0xff]  }
  0x12   :  { %1327 = vmatprep.subr.bf16.mxu1 %v1447_v17  ;;  %v1482_v47 = vld [vmem:[%s2033_s0 + $0x7c] ss:$20 sps:$4 sm:$0xff]   ;;  %v1487_v51 = vld [vmem:[%s2033_s0 + $0x80] ss:$20 sps:$4 sm:$0xff]   ;;  %v1488_v52 = vld [vmem:[%s2033_s0 + $0xa4] ss:$20 sps:$4 sm:$0xff]  }
  0x13   :  { %v1492_v54 = vld [vmem:[%s2033_s0 + $0xa0] ss:$20 sps:$4 sm:$0xff]   ;;  %v1493_v55 = vld [vmem:[%s2033_s0 + $0xa8] ss:$20 sps:$4 sm:$0xff]   ;;  %v1500_v59 = vld [vmem:[%s2033_s0 + $0xd0] ss:$20 sps:$4 sm:$0xff]  }
  0x14   :  { %1264 = vmatpush3.bf16.msra.mxu0 %v1448_v18  ;;  %v1495_v56 = vld [vmem:[%s2033_s0 + $0xcc] ss:$20 sps:$4 sm:$0xff]   ;;  %v1497_v57 = vld [vmem:[%s2033_s0 + $0xd4] ss:$20 sps:$4 sm:$0xff]   ;;  %v1503_v61 = vld [vmem:[%s2033_s0 + $0xfc] ss:$20 sps:$4 sm:$0xff]  }
  0x15   :  { %1328 = vmatpush3.bf16.msra.mxu1 %v1449_v19  ;;  %1265 = vmatprep.subr.bf16.mxu0 %v1450_v20  ;;  %v1499_v58 = vld [vmem:[%s2033_s0 + $0xc8] ss:$20 sps:$4 sm:$0xff]   ;;  %v1505_v62 = vld [vmem:[%s2033_s0 + $0xf0] ss:$20 sps:$4 sm:$0xff]   ;;  %v1506_v63 = vld [vmem:[%s2033_s0 + $0xf8] ss:$20 sps:$4 sm:$0xff]  }
  0x16   :  { %1329 = vmatprep.subr.bf16.mxu1 %v1451_v21  ;;  %v1501_v60 = vld [vmem:[%s2033_s0 + $0xf4] ss:$20 sps:$4 sm:$0xff]   ;;  %v1508_v0 = vld [vmem:[%s2033_s0 + $0x11c] ss:$20 sps:$4 sm:$0xff]   ;;  %v1510_v1 = vld [vmem:[%s2033_s0 + $0x124] ss:$20 sps:$4 sm:$0xff]  }
  0x17   :  { %v1512_v2 = vld [vmem:[%s2033_s0 + $0x118] ss:$20 sps:$4 sm:$0xff]   ;;  %v1513_v3 = vld [vmem:[%s2033_s0 + $0x120] ss:$20 sps:$4 sm:$0xff]   ;;  %v1514_v4 = vld [vmem:[%s2033_s0 + $0x10] ss:$20 sps:$4 sm:$0xff]  }
  0x18   :  { %1266 = vmatpush3.bf16.msra.mxu0 %v1452_v22  ;;  %v1515_v5 = vld [vmem:[%s2033_s0 + $0xb0] ss:$20 sps:$4 sm:$0xff]   ;;  %v1516_v6 = vld [vmem:[%s2033_s0 + $0x38] ss:$20 sps:$4 sm:$0xff]   ;;  %v1518_v8 = vld [vmem:[%s2033_s0 + $0x60] ss:$20 sps:$4 sm:$0xff]  }
  0x19   :  { %1330 = vmatpush3.bf16.msra.mxu1 %v1453_v23  ;;  %1267 = vmatprep.subr.bf16.mxu0 %v1454_v24  ;;  %v1517_v7 = vld [vmem:[%s2033_s0 + $0xd8] ss:$20 sps:$4 sm:$0xff]   ;;  %v1519_v9 = vld [vmem:[%s2033_s0 + $0x100] ss:$20 sps:$4 sm:$0xff]   ;;  %v1520_v10 = vld [vmem:[%s2033_s0 + $0x88] ss:$20 sps:$4 sm:$0xff]  }
  0x1a   :  { %1331 = vmatprep.subr.bf16.mxu1 %v1455_v25  ;;  %v1521_v11 = vld [vmem:[%s2033_s0 + $0x128] ss:$20 sps:$4 sm:$0xff]  }
  0x1c   :  { %1268 = vmatpush3.bf16.msra.mxu0 %v1456_v26 }
  0x1d   :  { %1332 = vmatpush3.bf16.msra.mxu1 %v1457_v27  ;;  %1269 = vmatprep.subr.bf16.mxu0 %v1458_v28 }
  0x1e   :  { %1333 = vmatprep.subr.bf16.mxu1 %v1459_v29 }
  0x20   :  { %1270 = vmatpush3.bf16.msra.mxu0 %v1460_v30 }
  0x21   :  { %1334 = vmatpush3.bf16.msra.mxu1 %v1461_v31  ;;  %1395 = vmatprep.subr.bf16.mxu0 %v1468_v36 }
  0x22   :  { %1419 = vmatprep.subr.bf16.mxu1 %v1468_v36 }
  0x23   :  { %612 = vmatmul.mubr.bf16.vlgmr.msra.gmra.mrb[0].mxu0 %v1462_v32 }
  0x24   :  { %709 = vmatmul.mubr.bf16.vlgmr.msra.gmra.mrb[0].mxu1 %v1465_v34  ;;  %1396 = vmatpush3.bf16.msra.mxu0 %v1468_v36 }
  0x25   :  { %1423 = vmatpush3.bf16.msra.mxu1 %v1468_v36  ;;  %619 = vmatprep.mubr.bf16.mxu0 %v1469_v37 }
  0x26   :  { %716 = vmatprep.mubr.bf16.mxu1 %v1471_v38  ;;  %1420 = vmatprep.subr.bf16.mxu1 %v1481_v42 }
  0x27   :  { %1397 = vmatprep.subr.bf16.mxu0 %v1481_v42 }
  0x28   :  { %1398 = vmatpush3.bf16.msra.mxu0 %v1481_v42 }
  0x29   :  { %1424 = vmatpush3.bf16.msra.mxu1 %v1481_v42  ;;  %1399 = vmatprep.subr.bf16.mxu0 %v1494_v46 }
  0x2a   :  { %1421 = vmatprep.subr.bf16.mxu1 %v1494_v46 }
  0x2b   :  { %620 = vmatmul.mubr.bf16.gmra.mrb[4].mxu0 %v1473_v39 }
  0x2c   :  { %717 = vmatmul.mubr.bf16.gmra.mrb[4].mxu1 %v1474_v40  ;;  %627 = vmatprep.mubr.bf16.mxu0 %v1475_v41 }
  0x2d   :  { %724 = vmatprep.mubr.bf16.mxu1 %v1477_v43  ;;  %1425 = vmatpush3.bf16.msra.mxu1 %v1494_v46 }
  0x2e   :  { %1400 = vmatpush3.bf16.msra.mxu0 %v1494_v46  ;;  %1422 = vmatprep.subr.bf16.mxu1 %v1507_v49 }
  0x2f   :  { %1401 = vmatprep.subr.bf16.mxu0 %v1507_v49 }
  0x31   :  { %1426 = vmatpush3.bf16.msra.mxu1 %v1507_v49 }
  0x32   :  { %1402 = vmatpush3.bf16.msra.mxu0 %v1507_v49 }
  0x33   :  { %628 = vmatmul.mubr.bf16.gmra.mrb[8].mxu0 %v1479_v44 }
  0x34   :  { %725 = vmatmul.mubr.bf16.gmra.mrb[8].mxu1 %v1480_v45  ;;  %635 = vmatprep.mubr.bf16.mxu0 %v1482_v47 }
  0x35   :  { %732 = vmatprep.mubr.bf16.mxu1 %v1484_v48 }
  0x3b   :  { %636 = vmatmul.mubr.bf16.gmra.mrb[12].mxu0 %v1486_v50 }
  0x3c   :  { %733 = vmatmul.mubr.bf16.gmra.mrb[12].mxu1 %v1487_v51  ;;  %643 = vmatprep.mubr.bf16.mxu0 %v1488_v52 }
  0x3d   :  { %740 = vmatprep.mubr.bf16.mxu1 %v1490_v53 }
  0x43   :  { %644 = vmatmul.mubr.bf16.gmra.mrb[16].mxu0 %v1492_v54 }
  0x44   :  { %741 = vmatmul.mubr.bf16.gmra.mrb[16].mxu1 %v1493_v55  ;;  %651 = vmatprep.mubr.bf16.mxu0 %v1495_v56 }
  0x45   :  { %748 = vmatprep.mubr.bf16.mxu1 %v1497_v57 }
  0x4b   :  { %652 = vmatmul.mubr.bf16.gmra.mrb[20].mxu0 %v1499_v58 }
  0x4c   :  { %749 = vmatmul.mubr.bf16.gmra.mrb[20].mxu1 %v1500_v59  ;;  %659 = vmatprep.mubr.bf16.mxu0 %v1501_v60 }
  0x4d   :  { %756 = vmatprep.mubr.bf16.mxu1 %v1503_v61 }
  0x53   :  { %660 = vmatmul.mubr.bf16.gmra.mrb[24].mxu0 %v1505_v62 }
  0x54   :  { %757 = vmatmul.mubr.bf16.gmra.mrb[24].mxu1 %v1506_v63  ;;  %667 = vmatprep.mubr.bf16.mxu0 %v1508_v0 }
  0x55   :  { %764 = vmatprep.mubr.bf16.mxu1 %v1510_v1 }
  0x5b   :  { %668 = vmatmul.mubr.bf16.gmra.mrb[28].mxu0 %v1512_v2 }
  0x5c   :  { %765 = vmatmul.mubr.bf16.gmra.mrb[28].mxu1 %v1513_v3  ;;  %1403 = vmatprep.mubr.msk.bf16.mxu0 %vm554_vm0, %v1514_v4 }
  0x5d   :  { %1411 = vmatprep.mubr.msk.bf16.mxu1 %vm554_vm0, %v1515_v5 }
  0x63   :  { %1404 = vmatmul.mubr.msk.bf16.vlgmr.msra.gmra.mrb[32].mxu0 %vm554_vm0, %v1516_v6 }
  0x64   :  { %1412 = vmatmul.mubr.msk.bf16.vlgmr.msra.gmra.mrb[32].mxu1 %vm554_vm0, %v1517_v7  ;;  %1407 = vmatprep.mubr.msk.bf16.mxu0 %vm554_vm0, %v1518_v8 }
  0x65   :  { %1415 = vmatprep.mubr.msk.bf16.mxu1 %vm554_vm0, %v1519_v9 }
  0x6b   :  { %1408 = vmatmul.mubr.msk.bf16.gmra.mrb[36].mxu0 %vm554_vm0, %v1520_v10 }
  0x6c   :  { %1416 = vmatmul.mubr.msk.bf16.gmra.mrb[36].mxu1 %vm554_vm0, %v1521_v11 }
  0xf6   :  { %v1271_v12 = vpop.f32.mrb[0].mxu0 }
  0xf7   :  { %v1335_v13 = vpop.f32.mrb[0].mxu1  ;;  %v1272_v14 = vpop.f32.mrb[1].mxu0 }
  0xf8   :  { %v1273_v15 = vadd.f32 %v1272_v14, %v1271_v12  ;;  %v1336_v16 = vpop.f32.mrb[1].mxu1  ;;  %v1274_v17 = vpop.f32.mrb[2].mxu0 }
  0xf9   :  { %v1337_v18 = vadd.f32 %v1336_v16, %v1335_v13  ;;  %v1338_v19 = vpop.f32.mrb[2].mxu1  ;;  %v1275_v20 = vpop.f32.mrb[3].mxu0 }
  0xfa   :  { %v1276_v21 = vadd.f32 %v1275_v20, %v1274_v17  ;;  %v1339_v22 = vpop.f32.mrb[3].mxu1 }
  0xfb   :  { %v1340_v23 = vadd.f32 %v1339_v22, %v1338_v19  ;;  %v1792_v24 = vadd.f32 %v1337_v18, %v1273_v15 }
  0xfd   :  { %v1794_v25 = vadd.f32 %v1340_v23, %v1276_v21 }
  0xfe   :  { %v1277_v26 = vpop.f32.mrb[4].mxu0 }
  0xff   :  { %v1341_v27 = vpop.f32.mrb[4].mxu1  ;;  %v1278_v28 = vpop.f32.mrb[5].mxu0 }
 0x100   :  { %v1279_v29 = vadd.f32 %v1278_v28, %v1277_v26  ;;  %v1342_v30 = vpop.f32.mrb[5].mxu1  ;;  %v1280_v31 = vpop.f32.mrb[6].mxu0 }
 0x101   :  { %v1343_v32 = vadd.f32 %v1342_v30, %v1341_v27  ;;  %v1344_v33 = vpop.f32.mrb[6].mxu1  ;;  %v1281_v34 = vpop.f32.mrb[7].mxu0 }
 0x102   :  { %v1282_v35 = vadd.f32 %v1281_v34, %v1280_v31  ;;  %v1345_v36 = vpop.f32.mrb[7].mxu1 }
 0x103   :  { %v1346_v37 = vadd.f32 %v1345_v36, %v1344_v33  ;;  %v1796_v38 = vadd.f32 %v1343_v32, %v1279_v29 }
 0x105   :  { %v1798_v39 = vadd.f32 %v1346_v37, %v1282_v35 }
 0x106   :  { %v1283_v40 = vpop.f32.mrb[8].mxu0 }
 0x107   :  { %v1347_v41 = vpop.f32.mrb[8].mxu1  ;;  %v1284_v42 = vpop.f32.mrb[9].mxu0 }
 0x108   :  { %v1285_v43 = vadd.f32 %v1284_v42, %v1283_v40  ;;  %v1348_v44 = vpop.f32.mrb[9].mxu1  ;;  %v1286_v45 = vpop.f32.mrb[10].mxu0 }
 0x109   :  { %v1349_v46 = vadd.f32 %v1348_v44, %v1347_v41  ;;  %v1350_v47 = vpop.f32.mrb[10].mxu1  ;;  %v1287_v48 = vpop.f32.mrb[11].mxu0 }
 0x10a   :  { %v1288_v49 = vadd.f32 %v1287_v48, %v1286_v45  ;;  %v1351_v50 = vpop.f32.mrb[11].mxu1 }
 0x10b   :  { %v1352_v51 = vadd.f32 %v1351_v50, %v1350_v47  ;;  %v1800_v52 = vadd.f32 %v1349_v46, %v1285_v43 }
 0x10d   :  { %v1802_v53 = vadd.f32 %v1352_v51, %v1288_v49 }
 0x10e   :  { %v1289_v54 = vpop.f32.mrb[12].mxu0 }
 0x10f   :  { %v1353_v55 = vpop.f32.mrb[12].mxu1  ;;  %v1290_v56 = vpop.f32.mrb[13].mxu0 }
 0x110   :  { %v1291_v57 = vadd.f32 %v1290_v56, %v1289_v54  ;;  %v1354_v58 = vpop.f32.mrb[13].mxu1  ;;  %v1292_v59 = vpop.f32.mrb[14].mxu0 }
 0x111   :  { %v1355_v60 = vadd.f32 %v1354_v58, %v1353_v55  ;;  %v1356_v61 = vpop.f32.mrb[14].mxu1  ;;  %v1293_v62 = vpop.f32.mrb[15].mxu0 }
 0x112   :  { %v1294_v63 = vadd.f32 %v1293_v62, %v1292_v59  ;;  %v1357_v0 = vpop.f32.mrb[15].mxu1 }
 0x113   :  { %v1358_v1 = vadd.f32 %v1357_v0, %v1356_v61  ;;  %v1804_v2 = vadd.f32 %v1355_v60, %v1291_v57 }
 0x115   :  { %v1806_v3 = vadd.f32 %v1358_v1, %v1294_v63 }
 0x116   :  { %v1295_v4 = vpop.f32.mrb[16].mxu0 }
 0x117   :  { %v1359_v5 = vpop.f32.mrb[16].mxu1  ;;  %v1296_v6 = vpop.f32.mrb[17].mxu0 }
 0x118   :  { %v1297_v7 = vadd.f32 %v1296_v6, %v1295_v4  ;;  %v1360_v8 = vpop.f32.mrb[17].mxu1  ;;  %v1298_v9 = vpop.f32.mrb[18].mxu0 }
 0x119   :  { %v1361_v10 = vadd.f32 %v1360_v8, %v1359_v5  ;;  %v1362_v11 = vpop.f32.mrb[18].mxu1  ;;  %v1299_v12 = vpop.f32.mrb[19].mxu0 }
 0x11a   :  { %v1300_v13 = vadd.f32 %v1299_v12, %v1298_v9  ;;  %v1363_v14 = vpop.f32.mrb[19].mxu1 }
 0x11b   :  { %v1364_v15 = vadd.f32 %v1363_v14, %v1362_v11  ;;  %v743_v16 = vadd.f32 %v1361_v10, %v1297_v7 }
 0x11d   :  { %v746_v17 = vadd.f32 %v1364_v15, %v1300_v13 }
 0x11e   :  { %v1301_v18 = vpop.f32.mrb[20].mxu0 }
 0x11f   :  { %v1365_v19 = vpop.f32.mrb[20].mxu1  ;;  %v1302_v20 = vpop.f32.mrb[21].mxu0 }
 0x120   :  { %v1303_v21 = vadd.f32 %v1302_v20, %v1301_v18  ;;  %v1366_v22 = vpop.f32.mrb[21].mxu1  ;;  %v1304_v23 = vpop.f32.mrb[22].mxu0 }
 0x121   :  { %v1367_v26 = vadd.f32 %v1366_v22, %v1365_v19  ;;  %v1368_v27 = vpop.f32.mrb[22].mxu1  ;;  %v1305_v28 = vpop.f32.mrb[23].mxu0 }
 0x122   :  { %v1306_v29 = vadd.f32 %v1305_v28, %v1304_v23  ;;  %v1369_v30 = vpop.f32.mrb[23].mxu1 }
 0x123   :  { %v1370_v31 = vadd.f32 %v1369_v30, %v1368_v27  ;;  %v751_v32 = vadd.f32 %v1367_v26, %v1303_v21 }
 0x125   :  { %v754_v33 = vadd.f32 %v1370_v31, %v1306_v29 }
 0x126   :  { %v1307_v34 = vpop.f32.mrb[24].mxu0 }
 0x127   :  { %v1371_v35 = vpop.f32.mrb[24].mxu1  ;;  %v1308_v36 = vpop.f32.mrb[25].mxu0 }
 0x128   :  { %v1309_v37 = vadd.f32 %v1308_v36, %v1307_v34  ;;  %v1372_v40 = vpop.f32.mrb[25].mxu1  ;;  %v1310_v41 = vpop.f32.mrb[26].mxu0 }
 0x129   :  { %v1373_v42 = vadd.f32 %v1372_v40, %v1371_v35  ;;  %v1374_v43 = vpop.f32.mrb[26].mxu1  ;;  %v1311_v44 = vpop.f32.mrb[27].mxu0 }
 0x12a   :  { %v1312_v45 = vadd.f32 %v1311_v44, %v1310_v41  ;;  %v1375_v46 = vpop.f32.mrb[27].mxu1 }
 0x12b   :  { %v1376_v47 = vadd.f32 %v1375_v46, %v1374_v43  ;;  %v759_v48 = vadd.f32 %v1373_v42, %v1309_v37 }
 0x12d   :  { %v762_v49 = vadd.f32 %v1376_v47, %v1312_v45 }
 0x12e   :  { %v1313_v50 = vpop.f32.mrb[28].mxu0 }
 0x12f   :  { %v1377_v51 = vpop.f32.mrb[28].mxu1  ;;  %v1314_v54 = vpop.f32.mrb[29].mxu0 }
 0x130   :  { %v1315_v55 = vadd.f32 %v1314_v54, %v1313_v50  ;;  %v1378_v56 = vpop.f32.mrb[29].mxu1  ;;  %v1316_v57 = vpop.f32.mrb[30].mxu0 }
 0x131   :  { %v1379_v58 = vadd.f32 %v1378_v56, %v1377_v51  ;;  %v1380_v59 = vpop.f32.mrb[30].mxu1  ;;  %v1317_v60 = vpop.f32.mrb[31].mxu0 }
 0x132   :  { %v1318_v61 = vadd.f32 %v1317_v60, %v1316_v57  ;;  %v1381_v62 = vpop.f32.mrb[31].mxu1 }
 0x133   :  { %v1382_v63 = vadd.f32 %v1381_v62, %v1380_v59  ;;  %v767_v0 = vadd.f32 %v1379_v58, %v1315_v55 }
 0x135   :  { %v770_v1 = vadd.f32 %v1382_v63, %v1318_v61 }
 0x136   :  { %v1405_v4 = vpop.f32.mrb[32].mxu0 }
 0x137   :  { %v1809_v5 = vadd.f32 %v1405_v4, %v1796_v38  ;;  %v1413_v6 = vpop.f32.mrb[32].mxu1  ;;  %v807_v7 = vpop.f32.mrb[33].mxu0 }
 0x138   :  { %v1811_v8 = vadd.f32 %v1413_v6, %v751_v32  ;;  %v1814_v9 = vadd.f32 %v807_v7, %v1792_v24  ;;  %v839_v10 = vpop.f32.mrb[33].mxu1  ;;  %v1406_v11 = vpop.f32.mrb[34].mxu0 }
 0x139   :  { %v1816_v12 = vadd.f32 %v839_v10, %v743_v16  ;;  %v1819_v13 = vadd.f32 %v1406_v11, %v1798_v39  ;;  %v1414_v14 = vpop.f32.mrb[34].mxu1  ;;  %v810_v15 = vpop.f32.mrb[35].mxu0  ;;  %v877_v38 = vsel %vm870_vm1, %v1809_v5, 0.0  ;;  %v889_v37 = vmul.f32 %v1809_v5, %v1809_v5 }
 0x13a   :  { %v1823_v18 = vadd.f32 %v1414_v14, %v754_v33  ;;  %v1826_v19 = vadd.f32 %v810_v15, %v1794_v25  ;;  %v842_v20 = vpop.f32.mrb[35].mxu1  ;;  %v949_v24 = vsel %vm870_vm1, %v1811_v8, 0.0  ;;  %878 = vadd.xlane.f32.xlu1 %v877_v38  ;;  %v871_v22 = vsel %vm870_vm1, %v1814_v9, 0.0 }
 0x13b   :  { %v1830_v16 = vadd.f32 %v842_v20, %v746_v17  ;;  %950 = vadd.xlane.f32.xlu0 %v949_v24  ;;  %v880_v39 = vsel %vm870_vm1, %v1819_v13, 0.0  ;;  %v890_v41 = vmul.f32 %v1819_v13, %v1819_v13  ;;  %v961_v42 = vmul.f32 %v1811_v8, %v1811_v8 }
 0x13c   :  { %v962_v44 = vmul.f32 %v1823_v18, %v1823_v18  ;;  %v888_v47 = vmul.f32 %v1826_v19, %v1826_v19  ;;  %v959_v55 = vmul.f32 %v1816_v12, %v1816_v12 }
 0x13d   :  { %v946_v40 = vsel %vm870_vm1, %v1830_v16, 0.0  ;;  %v900_v43 = vsel %vm870_vm1, %v890_v41, 0.0  ;;  %v969_v45 = vsel %vm870_vm1, %v961_v42, 0.0  ;;  %v960_v51 = vmul.f32 %v1830_v16, %v1830_v16 }
 0x13e   :  { %v1409_v21 = vpop.f32.mrb[36].mxu0  ;;  %881 = vadd.xlane.f32.xlu1 %v880_v39  ;;  %v972_v46 = vsel %vm870_vm1, %v962_v44, 0.0  ;;  %v894_v50 = vsel %vm870_vm1, %v888_v47, 0.0  ;;  %v963_v57 = vsel %vm870_vm1, %v959_v55, 0.0 }
 0x13f   :  { %v1837_v23 = vadd.f32 %v1409_v21, %v1804_v2  ;;  %v1417_v25 = vpop.f32.mrb[36].mxu1  ;;  %872 = vadd.xlane.f32.xlu0 %v871_v22  ;;  %v823_v26 = vpop.f32.mrb[37].mxu0  ;;  %v952_v2 = vsel %vm870_vm1, %v1823_v18, 0.0  ;;  %v966_v56 = vsel %vm870_vm1, %v960_v51, 0.0 }
 0x140   :  { %v1839_v27 = vadd.f32 %v1417_v25, %v767_v0  ;;  %v1842_v17 = vadd.f32 %v823_v26, %v1800_v52  ;;  %v855_v28 = vpop.f32.mrb[37].mxu1  ;;  %v1410_v29 = vpop.f32.mrb[38].mxu0  ;;  %v943_v52 = vsel %vm870_vm1, %v1816_v12, 0.0 }
 0x141   :  { %v1844_v30 = vadd.f32 %v855_v28, %v759_v48  ;;  %v1847_v31 = vadd.f32 %v1410_v29, %v1806_v3  ;;  %v1418_v32 = vpop.f32.mrb[38].mxu1  ;;  %v826_v33 = vpop.f32.mrb[39].mxu0  ;;  %v874_v48 = vsel %vm870_vm1, %v1826_v19, 0.0  ;;  %v913_v59 = vsel %vm870_vm1, %v1837_v23, 0.0 }
 0x142   :  { %v1851_v34 = vadd.f32 %v1418_v32, %v770_v1  ;;  %v1854_v35 = vadd.f32 %v826_v33, %v1802_v53  ;;  %v858_v36 = vpop.f32.mrb[39].mxu1  ;;  %953 = vadd.xlane.f32.xlu1 %v952_v2  ;;  %v897_v53 = vsel %vm870_vm1, %v889_v37, 0.0  ;;  %v985_v61 = vsel %vm870_vm1, %v1839_v27, 0.0 }
 0x143   :  { %v1860_v3 = vadd.f32 %v858_v36, %v762_v49  ;;  %944 = vadd.xlane.f32.xlu0 %v943_v52  ;;  %v887_v49 = vmul.f32 %v1814_v9, %v1814_v9  ;;  %v916_v58 = vsel %vm870_vm1, %v1847_v31, 0.0  ;;  %v907_v63 = vsel %vm870_vm1, %v1842_v17, 0.0 }
 0x144   :  { %v988_v60 = vsel %vm870_vm1, %v1851_v34, 0.0  ;;  %v910_v62 = vsel %vm870_vm1, %v1854_v35, 0.0  ;;  %v926_v1 = vmul.f32 %v1847_v31, %v1847_v31  ;;  %v979_v4 = vsel %vm870_vm1, %v1844_v30, 0.0 }
 0x145   :  { %v891_v54 = vsel %vm870_vm1, %v887_v49, 0.0  ;;  %v982_v0 = vsel %vm870_vm1, %v1860_v3, 0.0  ;;  %v925_v6 = vmul.f32 %v1837_v23, %v1837_v23  ;;  %v924_v10 = vmul.f32 %v1854_v35, %v1854_v35 }
 0x146   :  { %947 = vadd.xlane.f32.xlu1 %v946_v40  ;;  %v936_v7 = vsel %vm870_vm1, %v926_v1, 0.0  ;;  %v923_v14 = vmul.f32 %v1842_v17, %v1842_v17  ;;  %v996_v38 = vmul.f32 %v1860_v3, %v1860_v3  ;;  %v995_v24 = vmul.f32 %v1844_v30, %v1844_v30 }
 0x147   :  { %898 = vadd.xlane.f32.xlu0 %v897_v53  ;;  %v933_v11 = vsel %vm870_vm1, %v925_v6, 0.0  ;;  %v930_v15 = vsel %vm870_vm1, %v924_v10, 0.0  ;;  %v998_v21 = vmul.f32 %v1851_v34, %v1851_v34  ;;  %v997_v25 = vmul.f32 %v1839_v27, %v1839_v27 }
 0x148   :  { %v927_v20 = vsel %vm870_vm1, %v923_v14, 0.0  ;;  %v1002_v39 = vsel %vm870_vm1, %v996_v38, 0.0  ;;  %v999_v22 = vsel %vm870_vm1, %v995_v24, 0.0  ;;  %v1530_v29 = vmov 0  }
 0x149   :  { %v1008_v26 = vsel %vm870_vm1, %v998_v21, 0.0  ;;  %v1005_v28 = vsel %vm870_vm1, %v997_v25, 0.0  ;;  %1428 = vset.pattern.permute.xlu0 %v1530_v29  ;;  %1429 = vset.pattern.permute.xlu1 %v1530_v29 }
 0x14a   :  { %901 = vadd.xlane.f32.xlu1 %v900_v43 }
 0x14b   :  { %970 = vadd.xlane.f32.xlu0 %v969_v45 }
 0x14e   :  { %973 = vadd.xlane.f32.xlu1 %v972_v46 }
 0x14f   :  { %875 = vadd.xlane.f32.xlu0 %v874_v48 }
 0x152   :  { %895 = vadd.xlane.f32.xlu1 %v894_v50 }
 0x153   :  { %892 = vadd.xlane.f32.xlu0 %v891_v54 }
 0x156   :  { %967 = vadd.xlane.f32.xlu1 %v966_v56 }
 0x157   :  { %964 = vadd.xlane.f32.xlu0 %v963_v57 }
 0x15a   :  { %917 = vadd.xlane.f32.xlu1 %v916_v58 }
 0x15b   :  { %914 = vadd.xlane.f32.xlu0 %v913_v59 }
 0x15e   :  { %989 = vadd.xlane.f32.xlu1 %v988_v60 }
 0x15f   :  { %986 = vadd.xlane.f32.xlu0 %v985_v61 }
 0x162   :  { %911 = vadd.xlane.f32.xlu1 %v910_v62 }
 0x163   :  { %908 = vadd.xlane.f32.xlu0 %v907_v63 }
 0x166   :  { %983 = vadd.xlane.f32.xlu1 %v982_v0 }
 0x167   :  { %980 = vadd.xlane.f32.xlu0 %v979_v4 }
 0x16a   :  { %937 = vadd.xlane.f32.xlu1 %v936_v7 }
 0x16b   :  { %934 = vadd.xlane.f32.xlu0 %v933_v11 }
 0x16e   :  { %931 = vadd.xlane.f32.xlu1 %v930_v15 }
 0x16f   :  { %928 = vadd.xlane.f32.xlu0 %v927_v20 }
 0x172   :  { %1003 = vadd.xlane.f32.xlu1 %v1002_v39 }
 0x173   :  { %1000 = vadd.xlane.f32.xlu0 %v999_v22 }
 0x176   :  { %1009 = vadd.xlane.f32.xlu1 %v1008_v26 }
 0x177   :  { %1006 = vadd.xlane.f32.xlu0 %v1005_v28 }
 0x1c7   :  { %v879_v32 = vpop.xlane.xlu1 %878 }
 0x1c8   :  { %v951_v33 = vpop.xlane.xlu0 %950 }
 0x1cb   :  { %v882_v2 = vpop.xlane.xlu1 %881 }
 0x1cc   :  { %v873_v36 = vpop.xlane.xlu0 %872 }
 0x1cf   :  { %v954_v52 = vpop.xlane.xlu1 %953 }
 0x1d0   :  { %v945_v37 = vpop.xlane.xlu0 %944 }
 0x1d3   :  { %v948_v40 = vpop.xlane.xlu1 %947 }
 0x1d4   :  { %v899_v41 = vpop.xlane.xlu0 %898 }
 0x1d7   :  { %v902_v53 = vpop.xlane.xlu1 %901 }
 0x1d8   :  { %v971_v42 = vpop.xlane.xlu0 %970 }
 0x1db   :  { %v974_v43 = vpop.xlane.xlu1 %973 }
 0x1dc   :  { %v876_v44 = vpop.xlane.xlu0 %875 }
 0x1df   :  { %v896_v45 = vpop.xlane.xlu1 %895 }
 0x1e0   :  { %v893_v46 = vpop.xlane.xlu0 %892 }
 0x1e3   :  { %v968_v47 = vpop.xlane.xlu1 %967 }
 0x1e4   :  { %v965_v48 = vpop.xlane.xlu0 %964 }
 0x1e7   :  { %v918_v49 = vpop.xlane.xlu1 %917 }
 0x1e8   :  { %v915_v50 = vpop.xlane.xlu0 %914  ;;  %v922_v60 = vadd.f32 %v918_v49, %v882_v2 }
 0x1e9   :  { %v921_v61 = vadd.f32 %v915_v50, %v879_v32 }
 0x1ea   :  { %v958_v4 = vadd.f32 %v954_v52, %v922_v60 }
 0x1eb   :  { %v990_v51 = vpop.xlane.xlu1 %989  ;;  %v957_v6 = vadd.f32 %v951_v33, %v921_v61 }
 0x1ec   :  { %v987_v54 = vpop.xlane.xlu0 %986  ;;  %v994_v20 = vadd.f32 %v990_v51, %v958_v4 }
 0x1ed   :  { %v993_v24 = vadd.f32 %v987_v54, %v957_v6  ;;  %v1035_v6 = vld [vmem:[%s2034_s2] sm:$0xff] }
 0x1ee   :  { %v1018_v52 = vmul.f32 0.0078125, %v994_v20  ;;  %v1038_v20 = vld [vmem:[%s2034_s2 + $0x18] sm:$0xff] }
 0x1ef   :  { %v912_v55 = vpop.xlane.xlu1 %911  ;;  %v1017_v33 = vmul.f32 0.0078125, %v993_v24 }
 0x1f0   :  { %v909_v56 = vpop.xlane.xlu0 %908  ;;  %v920_v62 = vadd.f32 %v912_v55, %v876_v44  ;;  %v1026_v55 = vmul.f32 %v1018_v52, %v1018_v52 }
 0x1f1   :  { %v919_v57 = vadd.f32 %v909_v56, %v873_v36  ;;  %v1025_v56 = vmul.f32 %v1017_v33, %v1017_v33 }
 0x1f2   :  { %v956_v7 = vadd.f32 %v948_v40, %v920_v62 }
 0x1f3   :  { %v984_v58 = vpop.xlane.xlu1 %983  ;;  %v955_v63 = vadd.f32 %v945_v37, %v919_v57 }
 0x1f4   :  { %v981_v59 = vpop.xlane.xlu0 %980  ;;  %v992_v22 = vadd.f32 %v984_v58, %v956_v7 }
 0x1f5   :  { %v991_v10 = vadd.f32 %v981_v59, %v955_v63 }
 0x1f6   :  { %v1016_v40 = vmul.f32 0.0078125, %v992_v22 }
 0x1f7   :  { %v938_v0 = vpop.xlane.xlu1 %937  ;;  %v1015_v25 = vmul.f32 0.0078125, %v991_v10 }
 0x1f8   :  { %v935_v1 = vpop.xlane.xlu0 %934  ;;  %v942_v39 = vadd.f32 %v938_v0, %v902_v53 }
 0x1f9   :  { %v941_v26 = vadd.f32 %v935_v1, %v899_v41  ;;  %v1023_v44 = vmul.f32 %v1015_v25, %v1015_v25 }
 0x1fa   :  { %v978_v37 = vadd.f32 %v974_v43, %v942_v39 }
 0x1fb   :  { %v932_v11 = vpop.xlane.xlu1 %931 }
 0x1fc   :  { %v940_v14 = vadd.f32 %v932_v11, %v896_v45  ;;  %v929_v15 = vpop.xlane.xlu0 %928  ;;  %v1037_v11 = vld [vmem:[%s2034_s2 + $0x10] sm:$0xff] }
 0x1fd   :  { %v939_v38 = vadd.f32 %v929_v15, %v893_v46  ;;  %v977_v46 = vadd.f32 %v971_v42, %v941_v26 }
 0x1fe   :  { %v976_v21 = vadd.f32 %v968_v47, %v940_v14 }
 0x1ff   :  { %v1004_v28 = vpop.xlane.xlu1 %1003  ;;  %v975_v29 = vadd.f32 %v965_v48, %v939_v38  ;;  %v1024_v48 = vmul.f32 %v1016_v40, %v1016_v40 }
 0x200   :  { %v1001_v32 = vpop.xlane.xlu0 %1000  ;;  %v1012_v2 = vadd.f32 %v1004_v28, %v976_v21  ;;  %v1036_v21 = vld [vmem:[%s2034_s2 + $0x8] sm:$0xff]  ;;  %v1053_v28 = vld [vmem:[%s2035_s3 + $0x10] sm:$0xff] }
 0x201   :  { %v1011_v36 = vadd.f32 %v1001_v32, %v975_v29 }
 0x202   :  { %v1020_v53 = vmul.f32 0.0078125, %v1012_v2  ;;  %v1051_v2 = vld [vmem:[%s2035_s3] sm:$0xff] }
 0x203   :  { %v1019_v45 = vmul.f32 0.0078125, %v1011_v36  ;;  %v1010_v49 = vpop.xlane.xlu1 %1009 }
 0x204   :  { %v1014_v50 = vadd.f32 %v1010_v49, %v978_v37  ;;  %v1007_v51 = vpop.xlane.xlu0 %1006  ;;  %v1028_v60 = vsub.f32 %v1020_v53, %v1024_v48  ;;  %v1054_v49 = vld [vmem:[%s2035_s3 + $0x18] sm:$0xff] }
 0x205   :  { %v1027_v47 = vsub.f32 %v1019_v45, %v1023_v44  ;;  %v1013_v54 = vadd.f32 %v1007_v51, %v977_v46  ;;  %v1052_v44 = vld [vmem:[%s2035_s3 + $0x8] sm:$0xff] }
 0x206   :  { %v1022_v41 = vmul.f32 0.0078125, %v1014_v50  ;;  %v1032_v0 = vmax.f32 %v1028_v60, 0.0 }
 0x207   :  { %v1031_v57 = vmax.f32 %v1027_v47, 0.0  ;;  %v1021_v58 = vmul.f32 0.0078125, %v1013_v54 }
 0x208   :  { %v1030_v59 = vsub.f32 %v1022_v41, %v1026_v55  ;;  %v1040_v4 = vadd.f32 1e-05, %v1032_v0 }
 0x209   :  { %v1039_v61 = vadd.f32 1e-05, %v1031_v57  ;;  %v1029_v43 = vsub.f32 %v1021_v58, %v1025_v56 }
 0x20a   :  { %v1034_v62 = vmax.f32 %v1030_v59, 0.0 }
 0x20b   :  { %1522 = vrsqrt.f32 %v1039_v61  ;;  %v1033_v63 = vmax.f32 %v1029_v43, 0.0 }
 0x20c   :  { %v1042_v42 = vadd.f32 1e-05, %v1034_v62 }
 0x20d   :  { %v1041_v1 = vadd.f32 1e-05, %v1033_v63 }
 0x20f   :  { %1524 = vrsqrt.f32 %v1041_v1 }
 0x210   :  { %1526 = vrsqrt.f32 %v1042_v42 }
 0x211   :  { %1528 = vrsqrt.f32 %v1040_v4 }
 0x215   :  { %v1523_v7 = vpop.eup %1522 }
 0x216   :  { %v1047_v10 = vmul.f32 %v1523_v7, %v1035_v6 }
 0x218   :  { %1065 = vperm.xlu0 %1428, %v1047_v10   ;;  %v1055_v32 = vmul.f32 %v1047_v10, %v1015_v25 }
 0x219   :  { %v1525_v14 = vpop.eup %1524 }
 0x21a   :  { %v1049_v15 = vmul.f32 %v1525_v14, %v1037_v11  ;;  %v1527_v38 = vpop.eup %1526  ;;  %v1059_v36 = vsub.f32 %v1051_v2, %v1055_v32 }
 0x21b   :  { %v1050_v24 = vmul.f32 %v1527_v38, %v1038_v20  ;;  %v1529_v39 = vpop.eup %1528 }
 0x21c   :  { %1075 = vperm.xlu1 %1429, %v1049_v15   ;;  %v1048_v22 = vmul.f32 %v1529_v39, %v1036_v21  ;;  %v1057_v26 = vmul.f32 %v1049_v15, %v1017_v33 }
 0x21d   :  { %v1058_v45 = vmul.f32 %v1050_v24, %v1018_v52 }
 0x21e   :  { %v1061_v29 = vsub.f32 %v1053_v28, %v1057_v26  ;;  %v1056_v37 = vmul.f32 %v1048_v22, %v1016_v40 }
 0x21f   :  { %v1062_v25 = vsub.f32 %v1054_v49, %v1058_v45 }
 0x220   :  { %1080 = vperm.xlu1 %1429, %v1050_v24   ;;  %v1060_v33 = vsub.f32 %v1052_v44, %v1056_v37 }
 0x224   :  { %1070 = vperm.xlu1 %1429, %v1048_v22  }
 0x228   :  { %1099 = vperm.xlu1 %1429, %v1061_v29  }
 0x22c   :  { %1089 = vperm.xlu1 %1429, %v1059_v36  }
 0x230   :  { %1094 = vperm.xlu1 %1429, %v1060_v33  }
 0x234   :  { %1104 = vperm.xlu1 %1429, %v1062_v25  }
 0x297   :  { %v1066_v53 = vpop.permute.xlu0 %1065 }
 0x298   :  { %v1083_v58 = vmul.f32 %v1066_v53, %v1814_v9  ;;  %v1119_v59 = vmul.f32 %v1066_v53, %v1842_v17  ;;  %v1135_v60 = vmul.f32 %v1066_v53, %v1816_v12  ;;  %v1151_v61 = vmul.f32 %v1066_v53, %v1844_v30 }
 0x29b   :  { %v1076_v46 = vpop.permute.xlu1 %1075 }
 0x29c   :  { %v1085_v40 = vmul.f32 %v1076_v46, %v1809_v5  ;;  %v1121_v47 = vmul.f32 %v1076_v46, %v1837_v23  ;;  %v1137_v54 = vmul.f32 %v1076_v46, %v1811_v8  ;;  %v1153_v55 = vmul.f32 %v1076_v46, %v1839_v27 }
 0x29f   :  { %v1081_v50 = vpop.permute.xlu1 %1080 }
 0x2a0   :  { %v1086_v11 = vmul.f32 %v1081_v50, %v1819_v13  ;;  %v1122_v14 = vmul.f32 %v1081_v50, %v1847_v31  ;;  %v1138_v15 = vmul.f32 %v1081_v50, %v1823_v18  ;;  %v1154_v38 = vmul.f32 %v1081_v50, %v1851_v34 }
 0x2a3   :  { %v1071_v51 = vpop.permute.xlu1 %1070 }
 0x2a4   :  { %v1084_v30 = vmul.f32 %v1071_v51, %v1826_v19  ;;  %v1120_v63 = vmul.f32 %v1071_v51, %v1854_v35  ;;  %v1136_v0 = vmul.f32 %v1071_v51, %v1830_v16  ;;  %v1152_v42 = vmul.f32 %v1071_v51, %v1860_v3 }
 0x2a7   :  { %v1100_v52 = vpop.permute.xlu1 %1099 }
 0x2a8   :  { %v1109_v41 = vadd.f32 %v1100_v52, %v1085_v40  ;;  %v1125_v56 = vadd.f32 %v1121_v47, %v1100_v52  ;;  %v1141_v48 = vadd.f32 %v1137_v54, %v1100_v52  ;;  %v1157_v57 = vadd.f32 %v1153_v55, %v1100_v52 }
 0x2aa   :  { %v1113_v5 = vmax.f32 %v1109_v41, 0.0  ;;  %v1129_v43 = vmax.f32 %v1125_v56, 0.0  ;;  %v1145_v23 = vmax.f32 %v1141_v48, 0.0  ;;  %v1161_v62 = vmax.f32 %v1157_v57, 0.0 }
 0x2ab   :  { %v1090_v8 = vpop.permute.xlu1 %1089 }
 0x2ac   :  { %1117 = vst.msk [vmem:[%s2036_s4 + $0x10] sm:$0xff] %vm870_vm1, %v1113_v5  ;;  %1133 = vst.msk [vmem:[%s2036_s4 + $0x30] sm:$0xff] %vm870_vm1, %v1129_v43  ;;  %v1107_v9 = vadd.f32 %v1090_v8, %v1083_v58  ;;  %v1123_v12 = vadd.f32 %v1119_v59, %v1090_v8  ;;  %v1139_v27 = vadd.f32 %v1135_v60, %v1090_v8 }
 0x2ad   :  { %1149 = vst.msk [vmem:[%s2036_s4 + $0x50] sm:$0xff] %vm870_vm1, %v1145_v23  ;;  %1165 = vst.msk [vmem:[%s2036_s4 + $0x70] sm:$0xff] %vm870_vm1, %v1161_v62  ;;  %v1155_v17 = vadd.f32 %v1151_v61, %v1090_v8 }
 0x2ae   :  { %v1111_v1 = vmax.f32 %v1107_v9, 0.0  ;;  %v1127_v4 = vmax.f32 %v1123_v12, 0.0  ;;  %v1143_v6 = vmax.f32 %v1139_v27, 0.0 }
 0x2af   :  { %v1159_v7 = vmax.f32 %v1155_v17, 0.0  ;;  %v1095_v10 = vpop.permute.xlu1 %1094 }
 0x2b0   :  { %1115 = vst.msk [vmem:[%s2036_s4] sm:$0xff] %vm870_vm1, %v1111_v1  ;;  %1131 = vst.msk [vmem:[%s2036_s4 + $0x20] sm:$0xff] %vm870_vm1, %v1127_v4  ;;  %v1108_v19 = vadd.f32 %v1095_v10, %v1084_v30  ;;  %v1124_v16 = vadd.f32 %v1120_v63, %v1095_v10  ;;  %v1140_v35 = vadd.f32 %v1136_v0, %v1095_v10 }
 0x2b1   :  { %1147 = vst.msk [vmem:[%s2036_s4 + $0x40] sm:$0xff] %vm870_vm1, %v1143_v6  ;;  %1163 = vst.msk [vmem:[%s2036_s4 + $0x60] sm:$0xff] %vm870_vm1, %v1159_v7  ;;  %v1156_v3 = vadd.f32 %v1152_v42, %v1095_v10 }
 0x2b2   :  { %v1112_v20 = vmax.f32 %v1108_v19, 0.0  ;;  %v1128_v24 = vmax.f32 %v1124_v16, 0.0  ;;  %v1144_v39 = vmax.f32 %v1140_v35, 0.0 }
 0x2b3   :  { %v1160_v21 = vmax.f32 %v1156_v3, 0.0  ;;  %v1105_v22 = vpop.permute.xlu1 %1104 }
 0x2b4   :  { %1116 = vst.msk [vmem:[%s2036_s4 + $0x8] sm:$0xff] %vm870_vm1, %v1112_v20  ;;  %1132 = vst.msk [vmem:[%s2036_s4 + $0x28] sm:$0xff] %vm870_vm1, %v1128_v24  ;;  %v1110_v13 = vadd.f32 %v1105_v22, %v1086_v11  ;;  %v1126_v18 = vadd.f32 %v1122_v14, %v1105_v22  ;;  %v1142_v31 = vadd.f32 %v1138_v15, %v1105_v22 }
 0x2b5   :  { %1148 = vst.msk [vmem:[%s2036_s4 + $0x48] sm:$0xff] %vm870_vm1, %v1144_v39  ;;  %1164 = vst.msk [vmem:[%s2036_s4 + $0x68] sm:$0xff] %vm870_vm1, %v1160_v21  ;;  %v1158_v34 = vadd.f32 %v1154_v38, %v1105_v22 }
 0x2b6   :  { %v1114_v26 = vmax.f32 %v1110_v13, 0.0  ;;  %v1130_v28 = vmax.f32 %v1126_v18, 0.0  ;;  %v1146_v29 = vmax.f32 %v1142_v31, 0.0 }
 0x2b7   :  { %v1162_v32 = vmax.f32 %v1158_v34, 0.0 }
 0x2b8   :  { %1118 = vst.msk [vmem:[%s2036_s4 + $0x18] sm:$0xff] %vm870_vm1, %v1114_v26  ;;  %1134 = vst.msk [vmem:[%s2036_s4 + $0x38] sm:$0xff] %vm870_vm1, %v1130_v28 }
 0x2b9   :  { %1150 = vst.msk [vmem:[%s2036_s4 + $0x58] sm:$0xff] %vm870_vm1, %v1146_v29  ;;  %1166 = vst.msk [vmem:[%s2036_s4 + $0x78] sm:$0xff] %vm870_vm1, %v1162_v32 }

// kernel: generator_forward.7
= control target key start
LH: loop header
LB: loop body
LE: loop exit
PB: predicated region body
PF: predicated region fallthrough
CT: control target
= control target key end

     0   :  { %vm238_vm0 = vcmask 261120   ;;  %s870_s1 = inlined_call_operand.vmem [shape: bf16[288,128], index: 1, kind: input, shape index: {}]   ;;  %s871_s0 = inlined_call_operand.vmem [shape: bf16[64,288], index: 0, kind: input, shape index: {}]   ;;  %s872_s2 = inlined_call_operand.vmem [shape: f32[16,1], index: 2, kind: input, shape index: {}]   ;;  %s873_s3 = inlined_call_operand.vmem [shape: f32[16,1], index: 3, kind: input, shape index: {}]   ;;  %s874_s4 = inlined_call_operand.vmem [shape: f32[64,128], index: 4, kind: output, shape index: {}]  }
   0x1   :  { %v628_v0 = vld [vmem:[%s870_s1 + $0x40] sm:$0xff]   ;;  %v630_v2 = vld [vmem:[%s870_s1 + $0x48] sm:$0xff]   ;;  %v632_v4 = vld [vmem:[%s870_s1 + $0x50] sm:$0xff]  }
   0x2   :  { %v629_v1 = vld [vmem:[%s870_s1] sm:$0xff]   ;;  %551 = vmatprep.subr.bf16.mxu0 %v628_v0  ;;  %609 = vmatprep.subr.bf16.mxu1 %v628_v0  ;;  %v631_v3 = vld [vmem:[%s870_s1 + $0x8] sm:$0xff]   ;;  %v633_v5 = vld [vmem:[%s870_s1 + $0x10] sm:$0xff]  }
   0x3   :  { %552 = vmatpush3.bf16.msra.mxu0 %v629_v1  ;;  %617 = vmatpush3.bf16.msra.mxu1 %v629_v1  ;;  %v634_v6 = vld [vmem:[%s870_s1 + $0x58] sm:$0xff]   ;;  %v636_v8 = vld [vmem:[%s870_s1 + $0x60] sm:$0xff]   ;;  %v638_v10 = vld [vmem:[%s870_s1 + $0x68] sm:$0xff]  }
   0x4   :  { %553 = vmatprep.subr.bf16.mxu0 %v630_v2  ;;  %610 = vmatprep.subr.bf16.mxu1 %v630_v2  ;;  %v635_v7 = vld [vmem:[%s870_s1 + $0x18] sm:$0xff]   ;;  %v637_v9 = vld [vmem:[%s870_s1 + $0x20] sm:$0xff]   ;;  %v639_v13 = vld [vmem:[%s870_s1 + $0x28] sm:$0xff]  }
   0x5   :  { %v646_v11 = vld [vmem:[%s871_s0 + $0x4] ss:$12 sps:$4 sm:$0xff]   ;;  %v649_v12 = vld [vmem:[%s871_s0 + $0x4c] ss:$12 sps:$4 sm:$0xff]   ;;  %v647_v20 = vld [vmem:[%s871_s0 + $0x48] ss:$12 sps:$4 sm:$0xff]  }
   0x6   :  { %v640_v14 = vld [vmem:[%s870_s1 + $0x70] sm:$0xff]   ;;  %283 = vmatprep.mubr.bf16.mxu0 %v646_v11  ;;  %307 = vmatprep.mubr.bf16.mxu1 %v649_v12  ;;  %v642_v16 = vld [vmem:[%s870_s1 + $0x78] sm:$0xff]   ;;  %v650_v18 = vld [vmem:[%s870_s1 + $0x80] sm:$0xff]  }
   0x7   :  { %554 = vmatpush3.bf16.msra.mxu0 %v631_v3  ;;  %618 = vmatpush3.bf16.msra.mxu1 %v631_v3  ;;  %v641_v15 = vld [vmem:[%s870_s1 + $0x30] sm:$0xff]   ;;  %v643_v17 = vld [vmem:[%s870_s1 + $0x38] sm:$0xff]   ;;  %v644_v19 = vld [vmem:[%s871_s0] ss:$12 sps:$4 sm:$0xff]  }
   0x8   :  { %555 = vmatprep.subr.bf16.mxu0 %v632_v4  ;;  %611 = vmatprep.subr.bf16.mxu1 %v632_v4  ;;  %v652_v21 = vld [vmem:[%s871_s0 + $0x1c] ss:$12 sps:$4 sm:$0xff]   ;;  %v655_v24 = vld [vmem:[%s871_s0 + $0x18] ss:$12 sps:$4 sm:$0xff]   ;;  %v656_v25 = vld [vmem:[%s871_s0 + $0x20] ss:$12 sps:$4 sm:$0xff]  }
   0x9   :  { %v651_v22 = vld [vmem:[%s870_s1 + $0x88] sm:$0xff]   ;;  %v657_v26 = vld [vmem:[%s871_s0 + $0x38] ss:$12 sps:$4 sm:$0xff]   ;;  %v659_v27 = vld [vmem:[%s871_s0 + $0x34] ss:$12 sps:$4 sm:$0xff]  }
   0xa   :  { %v654_v23 = vld [vmem:[%s871_s0 + $0x8] ss:$12 sps:$4 sm:$0xff]   ;;  %v658_v28 = vld [vmem:[%s871_s0 + $0x50] ss:$12 sps:$4 sm:$0xff]  }
   0xb   :  { %556 = vmatpush3.bf16.msra.mxu0 %v633_v5  ;;  %619 = vmatpush3.bf16.msra.mxu1 %v633_v5  ;;  %v661_v29 = vld [vmem:[%s871_s0 + $0x30] ss:$12 sps:$4 sm:$0xff]  }
   0xc   :  { %557 = vmatprep.subr.bf16.mxu0 %v634_v6  ;;  %612 = vmatprep.subr.bf16.mxu1 %v634_v6 }
   0xf   :  { %558 = vmatpush3.bf16.msra.mxu0 %v635_v7  ;;  %620 = vmatpush3.bf16.msra.mxu1 %v635_v7 }
  0x10   :  { %559 = vmatprep.subr.bf16.mxu0 %v636_v8  ;;  %613 = vmatprep.subr.bf16.mxu1 %v636_v8 }
  0x13   :  { %560 = vmatpush3.bf16.msra.mxu0 %v637_v9  ;;  %621 = vmatpush3.bf16.msra.mxu1 %v637_v9 }
  0x14   :  { %561 = vmatprep.subr.bf16.mxu0 %v638_v10  ;;  %614 = vmatprep.subr.bf16.mxu1 %v638_v10 }
  0x17   :  { %562 = vmatpush3.bf16.msra.mxu0 %v639_v13  ;;  %622 = vmatpush3.bf16.msra.mxu1 %v639_v13 }
  0x18   :  { %563 = vmatprep.subr.bf16.mxu0 %v640_v14  ;;  %615 = vmatprep.subr.bf16.mxu1 %v640_v14  ;;  %v666_v14 = vmov 0  }
  0x19   :  { %626 = vset.pattern.permute.xlu0 %v666_v14  ;;  %627 = vset.pattern.permute.xlu1 %v666_v14 }
  0x1b   :  { %564 = vmatpush3.bf16.msra.mxu0 %v641_v15  ;;  %623 = vmatpush3.bf16.msra.mxu1 %v641_v15 }
  0x1c   :  { %565 = vmatprep.subr.bf16.mxu0 %v642_v16  ;;  %616 = vmatprep.subr.bf16.mxu1 %v642_v16 }
  0x1f   :  { %566 = vmatpush3.bf16.msra.mxu0 %v643_v17  ;;  %624 = vmatpush3.bf16.msra.mxu1 %v643_v17 }
  0x20   :  { %597 = vmatprep.subr.bf16.mxu1 %v650_v18 }
  0x22   :  { %284 = vmatmul.mubr.bf16.vlgmr.msra.gmra.mrb[0].mxu0 %v644_v19  ;;  %308 = vmatmul.mubr.bf16.vlgmr.msra.gmra.mrb[0].mxu1 %v647_v20 }
  0x23   :  { %598 = vmatpush3.bf16.msra.mxu1 %v650_v18  ;;  %291 = vmatprep.mubr.bf16.mxu0 %v652_v21 }
  0x24   :  { %599 = vmatprep.subr.bf16.mxu1 %v651_v22  ;;  %601 = vmatprep.mubr.msk.bf16.mxu1 %vm238_vm0, %v654_v23 }
  0x27   :  { %600 = vmatpush3.bf16.msra.mxu1 %v651_v22 }
  0x2a   :  { %292 = vmatmul.mubr.bf16.gmra.mrb[4].mxu0 %v655_v24  ;;  %602 = vmatmul.mubr.msk.bf16.vlgmr.msra.gmra.mrb[4].mxu1 %vm238_vm0, %v656_v25 }
  0x2b   :  { %605 = vmatprep.mubr.msk.bf16.mxu1 %vm238_vm0, %v657_v26  ;;  %299 = vmatprep.mubr.bf16.mxu0 %v659_v27 }
  0x32   :  { %606 = vmatmul.mubr.msk.bf16.gmra.mrb[8].mxu1 %vm238_vm0, %v658_v28  ;;  %300 = vmatmul.mubr.bf16.gmra.mrb[8].mxu0 %v661_v29 }
  0xf5   :  { %v567_v30 = vpop.f32.mrb[0].mxu0  ;;  %v585_v31 = vpop.f32.mrb[0].mxu1 }
  0xf6   :  { %v568_v32 = vpop.f32.mrb[1].mxu0  ;;  %v586_v33 = vpop.f32.mrb[1].mxu1 }
  0xf7   :  { %v569_v34 = vadd.f32 %v568_v32, %v567_v30  ;;  %v587_v35 = vadd.f32 %v586_v33, %v585_v31  ;;  %v570_v36 = vpop.f32.mrb[2].mxu0  ;;  %v588_v37 = vpop.f32.mrb[2].mxu1 }
  0xf8   :  { %v571_v38 = vpop.f32.mrb[3].mxu0  ;;  %v589_v39 = vpop.f32.mrb[3].mxu1 }
  0xf9   :  { %v572_v40 = vadd.f32 %v571_v38, %v570_v36  ;;  %v590_v41 = vadd.f32 %v589_v39, %v588_v37 }
  0xfd   :  { %v573_v42 = vpop.f32.mrb[4].mxu0  ;;  %v603_v43 = vpop.f32.mrb[4].mxu1 }
  0xfe   :  { %v574_v44 = vpop.f32.mrb[5].mxu0  ;;  %v350_v45 = vpop.f32.mrb[5].mxu1 }
  0xff   :  { %v575_v46 = vadd.f32 %v574_v44, %v573_v42  ;;  %v786_v47 = vadd.f32 %v569_v34, %v350_v45  ;;  %v576_v48 = vpop.f32.mrb[6].mxu0  ;;  %v604_v49 = vpop.f32.mrb[6].mxu1 }
 0x100   :  { %v577_v50 = vpop.f32.mrb[7].mxu0  ;;  %v353_v51 = vpop.f32.mrb[7].mxu1 }
 0x101   :  { %v788_v52 = vadd.f32 %v603_v43, %v575_v46  ;;  %v578_v53 = vadd.f32 %v577_v50, %v576_v48  ;;  %v790_v54 = vadd.f32 %v572_v40, %v353_v51  ;;  %381 = vadd.xlane.f32.xlu0 %v786_v47  ;;  %v387_v62 = vmul.f32 %v786_v47, %v786_v47 }
 0x103   :  { %v793_v55 = vadd.f32 %v604_v49, %v578_v53  ;;  %395 = vadd.xlane.f32.xlu1 %v788_v52  ;;  %v388_v5 = vmul.f32 %v790_v54, %v790_v54  ;;  %v401_v7 = vmul.f32 %v788_v52, %v788_v52 }
 0x105   :  { %v607_v56 = vpop.f32.mrb[8].mxu1  ;;  %383 = vadd.xlane.f32.xlu0 %v790_v54  ;;  %v579_v57 = vpop.f32.mrb[8].mxu0  ;;  %v402_v9 = vmul.f32 %v793_v55, %v793_v55 }
 0x106   :  { %v797_v58 = vadd.f32 %v607_v56, %v587_v35  ;;  %v366_v59 = vpop.f32.mrb[9].mxu1  ;;  %v580_v60 = vpop.f32.mrb[9].mxu0 }
 0x107   :  { %v608_v61 = vpop.f32.mrb[10].mxu1  ;;  %397 = vadd.xlane.f32.xlu1 %v793_v55  ;;  %v581_v63 = vadd.f32 %v580_v60, %v579_v57  ;;  %v582_v0 = vpop.f32.mrb[10].mxu0  ;;  %v447_v60 = vld [vmem:[%s872_s2] sm:$0xff] }
 0x108   :  { %v802_v1 = vadd.f32 %v608_v61, %v590_v41  ;;  %v583_v2 = vpop.f32.mrb[11].mxu0  ;;  %v369_v3 = vpop.f32.mrb[11].mxu1  ;;  %v429_v12 = vmul.f32 %v797_v58, %v797_v58 }
 0x109   :  { %389 = vadd.xlane.f32.xlu0 %v387_v62  ;;  %v804_v4 = vadd.f32 %v581_v63, %v366_v59  ;;  %v584_v6 = vadd.f32 %v583_v2, %v582_v0  ;;  %v448_v62 = vld [vmem:[%s872_s2 + $0x8] sm:$0xff] }
 0x10a   :  { %v430_v13 = vmul.f32 %v802_v1, %v802_v1 }
 0x10b   :  { %391 = vadd.xlane.f32.xlu1 %v388_v5  ;;  %v810_v8 = vadd.f32 %v584_v6, %v369_v3  ;;  %v415_v10 = vmul.f32 %v804_v4, %v804_v4  ;;  %v455_v5 = vld [vmem:[%s873_s3] sm:$0xff] }
 0x10d   :  { %403 = vadd.xlane.f32.xlu0 %v401_v7  ;;  %v416_v11 = vmul.f32 %v810_v8, %v810_v8 }
 0x10f   :  { %405 = vadd.xlane.f32.xlu1 %v402_v9  ;;  %v456_v9 = vld [vmem:[%s873_s3 + $0x8] sm:$0xff] }
 0x111   :  { %423 = vadd.xlane.f32.xlu0 %v797_v58 }
 0x113   :  { %425 = vadd.xlane.f32.xlu1 %v802_v1 }
 0x115   :  { %409 = vadd.xlane.f32.xlu0 %v804_v4 }
 0x117   :  { %411 = vadd.xlane.f32.xlu1 %v810_v8 }
 0x119   :  { %417 = vadd.xlane.f32.xlu0 %v415_v10 }
 0x11b   :  { %419 = vadd.xlane.f32.xlu1 %v416_v11 }
 0x11d   :  { %431 = vadd.xlane.f32.xlu0 %v429_v12 }
 0x11f   :  { %433 = vadd.xlane.f32.xlu1 %v430_v13 }
 0x18e   :  { %v382_v15 = vpop.xlane.xlu0 %381 }
 0x190   :  { %v396_v16 = vpop.xlane.xlu1 %395 }
 0x191   :  { %v399_v25 = vadd.f32 %v396_v16, %v382_v15 }
 0x192   :  { %v384_v17 = vpop.xlane.xlu0 %383 }
 0x194   :  { %v398_v18 = vpop.xlane.xlu1 %397 }
 0x195   :  { %v400_v27 = vadd.f32 %v398_v18, %v384_v17 }
 0x196   :  { %v390_v19 = vpop.xlane.xlu0 %389 }
 0x198   :  { %v392_v20 = vpop.xlane.xlu1 %391 }
 0x19a   :  { %v404_v21 = vpop.xlane.xlu0 %403 }
 0x19b   :  { %v407_v33 = vadd.f32 %v404_v21, %v390_v19 }
 0x19c   :  { %v406_v22 = vpop.xlane.xlu1 %405 }
 0x19d   :  { %v408_v36 = vadd.f32 %v406_v22, %v392_v20 }
 0x19e   :  { %v424_v23 = vpop.xlane.xlu0 %423 }
 0x1a0   :  { %v426_v24 = vpop.xlane.xlu1 %425 }
 0x1a2   :  { %v410_v26 = vpop.xlane.xlu0 %409 }
 0x1a3   :  { %v413_v28 = vadd.f32 %v410_v26, %v399_v25 }
 0x1a4   :  { %v412_v29 = vpop.xlane.xlu1 %411 }
 0x1a5   :  { %v427_v30 = vadd.f32 %v424_v23, %v413_v28  ;;  %v414_v31 = vadd.f32 %v412_v29, %v400_v27 }
 0x1a6   :  { %v418_v32 = vpop.xlane.xlu0 %417 }
 0x1a7   :  { %v428_v34 = vadd.f32 %v426_v24, %v414_v31  ;;  %v437_v37 = vmul.f32 0.001953125, %v427_v30  ;;  %v421_v38 = vadd.f32 %v418_v32, %v407_v33 }
 0x1a8   :  { %v420_v35 = vpop.xlane.xlu1 %419 }
 0x1a9   :  { %v438_v40 = vmul.f32 0.001953125, %v428_v34  ;;  %v422_v41 = vadd.f32 %v420_v35, %v408_v36  ;;  %v441_v44 = vmul.f32 %v437_v37, %v437_v37 }
 0x1aa   :  { %v432_v39 = vpop.xlane.xlu0 %431 }
 0x1ab   :  { %v435_v42 = vadd.f32 %v432_v39, %v421_v38  ;;  %v442_v50 = vmul.f32 %v438_v40, %v438_v40 }
 0x1ac   :  { %v434_v43 = vpop.xlane.xlu1 %433 }
 0x1ad   :  { %v439_v45 = vmul.f32 0.001953125, %v435_v42  ;;  %v436_v46 = vadd.f32 %v434_v43, %v422_v41 }
 0x1af   :  { %v443_v48 = vsub.f32 %v439_v45, %v441_v44  ;;  %v440_v49 = vmul.f32 0.001953125, %v436_v46 }
 0x1b1   :  { %v445_v51 = vmax.f32 %v443_v48, 0.0  ;;  %v444_v53 = vsub.f32 %v440_v49, %v442_v50 }
 0x1b3   :  { %v449_v56 = vadd.f32 1e-05, %v445_v51  ;;  %v446_v57 = vmax.f32 %v444_v53, 0.0 }
 0x1b5   :  { %662 = vrsqrt.f32 %v449_v56  ;;  %v450_v59 = vadd.f32 1e-05, %v446_v57 }
 0x1b7   :  { %664 = vrsqrt.f32 %v450_v59 }
 0x1bf   :  { %v663_v61 = vpop.eup %662 }
 0x1c0   :  { %v453_v63 = vmul.f32 %v663_v61, %v447_v60 }
 0x1c1   :  { %v665_v0 = vpop.eup %664 }
 0x1c2   :  { %463 = vperm.xlu0 %626, %v453_v63   ;;  %v454_v2 = vmul.f32 %v665_v0, %v448_v62  ;;  %v457_v3 = vmul.f32 %v453_v63, %v437_v37 }
 0x1c4   :  { %468 = vperm.xlu1 %627, %v454_v2   ;;  %v459_v6 = vsub.f32 %v455_v5, %v457_v3  ;;  %v458_v7 = vmul.f32 %v454_v2, %v438_v40 }
 0x1c6   :  { %v460_v10 = vsub.f32 %v456_v9, %v458_v7 }
 0x1c8   :  { %475 = vperm.xlu1 %627, %v459_v6  }
 0x1cc   :  { %480 = vperm.xlu1 %627, %v460_v10  }
 0x241   :  { %v464_v11 = vpop.permute.xlu0 %463 }
 0x242   :  { %v471_v13 = vmul.f32 %v464_v11, %v786_v47  ;;  %v489_v14 = vmul.f32 %v464_v11, %v788_v52  ;;  %v497_v15 = vmul.f32 %v464_v11, %v804_v4  ;;  %v505_v16 = vmul.f32 %v464_v11, %v797_v58 }
 0x243   :  { %v469_v12 = vpop.permute.xlu1 %468 }
 0x244   :  { %v472_v22 = vmul.f32 %v469_v12, %v790_v54  ;;  %v490_v23 = vmul.f32 %v469_v12, %v793_v55  ;;  %v498_v24 = vmul.f32 %v469_v12, %v810_v8  ;;  %v506_v25 = vmul.f32 %v469_v12, %v802_v1 }
 0x247   :  { %v476_v17 = vpop.permute.xlu1 %475 }
 0x248   :  { %v483_v18 = vadd.f32 %v476_v17, %v471_v13  ;;  %v491_v19 = vadd.f32 %v489_v14, %v476_v17  ;;  %v499_v20 = vadd.f32 %v497_v15, %v476_v17  ;;  %v507_v21 = vadd.f32 %v505_v16, %v476_v17 }
 0x24a   :  { %v485_v47 = vmax.f32 %v483_v18, 0.0  ;;  %v493_v26 = vmax.f32 %v491_v19, 0.0  ;;  %v501_v52 = vmax.f32 %v499_v20, 0.0  ;;  %v509_v27 = vmax.f32 %v507_v21, 0.0 }
 0x24b   :  { %v481_v4 = vpop.permute.xlu1 %480 }
 0x24c   :  { %487 = vst [vmem:[%s874_s4] sm:$0xff] %v485_v47  ;;  %495 = vst [vmem:[%s874_s4 + $0x10] sm:$0xff] %v493_v26  ;;  %v484_v54 = vadd.f32 %v481_v4, %v472_v22  ;;  %v492_v55 = vadd.f32 %v490_v23, %v481_v4  ;;  %v500_v58 = vadd.f32 %v498_v24, %v481_v4 }
 0x24d   :  { %503 = vst [vmem:[%s874_s4 + $0x20] sm:$0xff] %v501_v52  ;;  %511 = vst [vmem:[%s874_s4 + $0x30] sm:$0xff] %v509_v27  ;;  %v508_v1 = vadd.f32 %v506_v25, %v481_v4 }
 0x24e   :  { %v486_v8 = vmax.f32 %v484_v54, 0.0  ;;  %v494_v28 = vmax.f32 %v492_v55, 0.0  ;;  %v502_v29 = vmax.f32 %v500_v58, 0.0 }
 0x24f   :  { %v510_v30 = vmax.f32 %v508_v1, 0.0 }
 0x250   :  { %488 = vst [vmem:[%s874_s4 + $0x8] sm:$0xff] %v486_v8  ;;  %496 = vst [vmem:[%s874_s4 + $0x18] sm:$0xff] %v494_v28 }
 0x251   :  { %504 = vst [vmem:[%s874_s4 + $0x28] sm:$0xff] %v502_v29  ;;  %512 = vst [vmem:[%s874_s4 + $0x38] sm:$0xff] %v510_v30 }

// kernel: generator_forward.8
= control target key start
LH: loop header
LB: loop body
LE: loop exit
PB: predicated region body
PF: predicated region fallthrough
CT: control target
= control target key end

     0   :  { %vm256_vm0 = vcmask 130048   ;;  %s932_s1 = inlined_call_operand.vmem [shape: bf16[144,512], index: 1, kind: input, shape index: {}]   ;;  %s933_s0 = inlined_call_operand.vmem [shape: bf16[32,144], index: 0, kind: input, shape index: {}]   ;;  %s934_s2 = inlined_call_operand.vmem [shape: f32[8,1], index: 2, kind: input, shape index: {}]   ;;  %s935_s3 = inlined_call_operand.vmem [shape: f32[8,1], index: 3, kind: input, shape index: {}]   ;;  %s936_s4 = inlined_call_operand.vmem [shape: f32[32,512], index: 4, kind: output, shape index: {}]  }
   0x1   :  { %v570_v0 = vld [vmem:[%s932_s1 + $0x4] ss:$16 sps:$4 sm:$0xff]   ;;  %v572_v1 = vld [vmem:[%s932_s1 + $0xc] ss:$16 sps:$4 sm:$0xff]   ;;  %v574_v2 = vld [vmem:[%s932_s1] ss:$16 sps:$4 sm:$0xff]  }
   0x2   :  { %263 = vmatprep.subr.bf16.mxu0 %v570_v0  ;;  %v575_v3 = vld [vmem:[%s932_s1 + $0x8] ss:$16 sps:$4 sm:$0xff]   ;;  %316 = vmatprep.subr.bf16.mxu1 %v572_v1  ;;  %v576_v4 = vld [vmem:[%s932_s1 + $0x24] ss:$16 sps:$4 sm:$0xff]   ;;  %v578_v5 = vld [vmem:[%s932_s1 + $0x2c] ss:$16 sps:$4 sm:$0xff]  }
   0x3   :  { %264 = vmatpush1.bf16.msra.mxu0 %v574_v2  ;;  %317 = vmatpush1.bf16.msra.mxu1 %v575_v3  ;;  %v580_v6 = vld [vmem:[%s932_s1 + $0x20] ss:$16 sps:$4 sm:$0xff]   ;;  %v581_v7 = vld [vmem:[%s932_s1 + $0x28] ss:$16 sps:$4 sm:$0xff]   ;;  %v582_v8 = vld [vmem:[%s932_s1 + $0x44] ss:$16 sps:$4 sm:$0xff]  }
   0x4   :  { %265 = vmatprep.subr.bf16.mxu0 %v576_v4  ;;  %318 = vmatprep.subr.bf16.mxu1 %v578_v5  ;;  %v584_v9 = vld [vmem:[%s932_s1 + $0x4c] ss:$16 sps:$4 sm:$0xff]   ;;  %v586_v10 = vld [vmem:[%s932_s1 + $0x40] ss:$16 sps:$4 sm:$0xff]   ;;  %v587_v11 = vld [vmem:[%s932_s1 + $0x48] ss:$16 sps:$4 sm:$0xff]  }
   0x5   :  { %v588_v12 = vld [vmem:[%s932_s1 + $0x64] ss:$16 sps:$4 sm:$0xff]   ;;  %v590_v13 = vld [vmem:[%s932_s1 + $0x6c] ss:$16 sps:$4 sm:$0xff]   ;;  %v592_v14 = vld [vmem:[%s932_s1 + $0x60] ss:$16 sps:$4 sm:$0xff]  }
   0x6   :  { %v593_v15 = vld [vmem:[%s932_s1 + $0x68] ss:$16 sps:$4 sm:$0xff]   ;;  %v594_v16 = vld [vmem:[%s932_s1 + $0x84] ss:$16 sps:$4 sm:$0xff]   ;;  %v596_v17 = vld [vmem:[%s932_s1 + $0x8c] ss:$16 sps:$4 sm:$0xff]  }
   0x7   :  { %266 = vmatpush1.bf16.msra.mxu0 %v580_v6  ;;  %319 = vmatpush1.bf16.msra.mxu1 %v581_v7  ;;  %v598_v18 = vld [vmem:[%s932_s1 + $0x80] ss:$16 sps:$4 sm:$0xff]   ;;  %v599_v19 = vld [vmem:[%s932_s1 + $0x88] ss:$16 sps:$4 sm:$0xff]   ;;  %v600_v20 = vld [vmem:[%s932_s1 + $0xa4] ss:$16 sps:$4 sm:$0xff]  }
   0x8   :  { %267 = vmatprep.subr.bf16.mxu0 %v582_v8  ;;  %320 = vmatprep.subr.bf16.mxu1 %v584_v9  ;;  %v602_v21 = vld [vmem:[%s932_s1 + $0xac] ss:$16 sps:$4 sm:$0xff]   ;;  %v604_v22 = vld [vmem:[%s932_s1 + $0xa0] ss:$16 sps:$4 sm:$0xff]   ;;  %v605_v23 = vld [vmem:[%s932_s1 + $0xa8] ss:$16 sps:$4 sm:$0xff]  }
   0x9   :  { %v606_v24 = vld [vmem:[%s932_s1 + $0xc4] ss:$16 sps:$4 sm:$0xff]   ;;  %v608_v25 = vld [vmem:[%s932_s1 + $0xcc] ss:$16 sps:$4 sm:$0xff]   ;;  %v610_v26 = vld [vmem:[%s932_s1 + $0xc0] ss:$16 sps:$4 sm:$0xff]  }
   0xa   :  { %v611_v27 = vld [vmem:[%s932_s1 + $0xc8] ss:$16 sps:$4 sm:$0xff]   ;;  %v612_v28 = vld [vmem:[%s932_s1 + $0xe4] ss:$16 sps:$4 sm:$0xff]   ;;  %v614_v29 = vld [vmem:[%s932_s1 + $0xec] ss:$16 sps:$4 sm:$0xff]  }
   0xb   :  { %268 = vmatpush1.bf16.msra.mxu0 %v586_v10  ;;  %321 = vmatpush1.bf16.msra.mxu1 %v587_v11  ;;  %v626_v30 = vld [vmem:[%s933_s0 + $0x4] ss:$8 sps:$4 sm:$0xff]   ;;  %v616_v31 = vld [vmem:[%s932_s1 + $0xe0] ss:$16 sps:$4 sm:$0xff]   ;;  %v617_v32 = vld [vmem:[%s932_s1 + $0xe8] ss:$16 sps:$4 sm:$0xff]  }
   0xc   :  { %269 = vmatprep.subr.bf16.mxu0 %v588_v12  ;;  %322 = vmatprep.subr.bf16.mxu1 %v590_v13  ;;  %v618_v33 = vld [vmem:[%s932_s1 + $0x104] ss:$16 sps:$4 sm:$0xff]   ;;  %v620_v34 = vld [vmem:[%s932_s1 + $0x10c] ss:$16 sps:$4 sm:$0xff]   ;;  %v622_v35 = vld [vmem:[%s932_s1 + $0x100] ss:$16 sps:$4 sm:$0xff]  }
   0xd   :  { %563 = vmatprep.mubr.msk.bf16.mxu0 %vm256_vm0, %v626_v30  ;;  %565 = vmatprep.mubr.msk.bf16.mxu1 %vm256_vm0, %v626_v30  ;;  %v623_v36 = vld [vmem:[%s932_s1 + $0x108] ss:$16 sps:$4 sm:$0xff]   ;;  %v627_v38 = vld [vmem:[%s933_s0 + $0x14] ss:$8 sps:$4 sm:$0xff]  }
   0xe   :  { %v624_v37 = vld [vmem:[%s933_s0] ss:$8 sps:$4 sm:$0xff]   ;;  %v629_v39 = vld [vmem:[%s933_s0 + $0x10] ss:$8 sps:$4 sm:$0xff]  }
   0xf   :  { %270 = vmatpush1.bf16.msra.mxu0 %v592_v14  ;;  %323 = vmatpush1.bf16.msra.mxu1 %v593_v15 }
  0x10   :  { %271 = vmatprep.subr.bf16.mxu0 %v594_v16  ;;  %324 = vmatprep.subr.bf16.mxu1 %v596_v17 }
  0x13   :  { %272 = vmatpush1.bf16.msra.mxu0 %v598_v18  ;;  %325 = vmatpush1.bf16.msra.mxu1 %v599_v19 }
  0x14   :  { %273 = vmatprep.subr.bf16.mxu0 %v600_v20  ;;  %326 = vmatprep.subr.bf16.mxu1 %v602_v21 }
  0x17   :  { %274 = vmatpush1.bf16.msra.mxu0 %v604_v22  ;;  %327 = vmatpush1.bf16.msra.mxu1 %v605_v23 }
  0x18   :  { %275 = vmatprep.subr.bf16.mxu0 %v606_v24  ;;  %328 = vmatprep.subr.bf16.mxu1 %v608_v25 }
  0x1b   :  { %276 = vmatpush1.bf16.msra.mxu0 %v610_v26  ;;  %329 = vmatpush1.bf16.msra.mxu1 %v611_v27 }
  0x1c   :  { %277 = vmatprep.subr.bf16.mxu0 %v612_v28  ;;  %330 = vmatprep.subr.bf16.mxu1 %v614_v29 }
  0x1f   :  { %278 = vmatpush1.bf16.msra.mxu0 %v616_v31  ;;  %331 = vmatpush1.bf16.msra.mxu1 %v617_v32  ;;  %v632_v32 = vmov 0  }
  0x20   :  { %279 = vmatprep.subr.bf16.mxu0 %v618_v33  ;;  %332 = vmatprep.subr.bf16.mxu1 %v620_v34 }
  0x21   :  { %568 = vset.pattern.permute.xlu0 %v632_v32  ;;  %569 = vset.pattern.permute.xlu1 %v632_v32 }
  0x23   :  { %280 = vmatpush1.bf16.msra.mxu0 %v622_v35  ;;  %333 = vmatpush1.bf16.msra.mxu1 %v623_v36 }
  0x26   :  { %296 = vmatmul.mubr.bf16.vlgmr.msra.gmra.mrb[0].mxu0 %v624_v37  ;;  %349 = vmatmul.mubr.bf16.vlgmr.msra.gmra.mrb[0].mxu1 %v624_v37 }
  0x27   :  { %564 = vmatprep.mubr.msk.bf16.mxu0 %vm256_vm0, %v627_v38  ;;  %566 = vmatprep.mubr.msk.bf16.mxu1 %vm256_vm0, %v627_v38 }
  0x2e   :  { %306 = vmatmul.mubr.bf16.gmra.mrb[4].mxu0 %v629_v39  ;;  %359 = vmatmul.mubr.bf16.gmra.mrb[4].mxu1 %v629_v39 }
  0xf9   :  { %v782_v40 = vpop.f32.mrb[0].mxu0  ;;  %v784_v41 = vpop.f32.mrb[0].mxu1 }
  0xfa   :  { %v375_v42 = vmul.f32 %v782_v40, %v782_v40  ;;  %v788_v43 = vpop.f32.mrb[1].mxu0  ;;  %v790_v44 = vpop.f32.mrb[1].mxu1  ;;  %v377_v45 = vmul.f32 %v784_v41, %v784_v41 }
  0xfb   :  { %v369_v46 = vadd.f32 %v788_v43, %v782_v40  ;;  %v376_v47 = vmul.f32 %v788_v43, %v788_v43  ;;  %v798_v48 = vpop.f32.mrb[2].mxu0  ;;  %v800_v49 = vpop.f32.mrb[2].mxu1  ;;  %v378_v58 = vmul.f32 %v790_v44, %v790_v44 }
  0xfc   :  { %v391_v50 = vmul.f32 %v798_v48, %v798_v48  ;;  %v804_v51 = vpop.f32.mrb[3].mxu0  ;;  %v806_v52 = vpop.f32.mrb[3].mxu1  ;;  %v393_v57 = vmul.f32 %v800_v49, %v800_v49 }
  0xfd   :  { %v385_v53 = vadd.f32 %v804_v51, %v798_v48  ;;  %v392_v54 = vmul.f32 %v804_v51, %v804_v51  ;;  %v370_v55 = vadd.f32 %v369_v46, %v784_v41  ;;  %v379_v56 = vadd.f32 %v376_v47, %v375_v42 }
  0xfe   :  { %v394_v3 = vmul.f32 %v806_v52, %v806_v52 }
  0xff   :  { %v371_v59 = vadd.f32 %v370_v55, %v790_v44  ;;  %v380_v60 = vadd.f32 %v379_v56, %v377_v45  ;;  %v386_v61 = vadd.f32 %v385_v53, %v800_v49  ;;  %v395_v62 = vadd.f32 %v392_v54, %v391_v50 }
 0x101   :  { %v819_v63 = vpop.f32.mrb[4].mxu1  ;;  %372 = vadd.xlane.f32.xlu0 %v371_v59  ;;  %v821_v0 = vpop.f32.mrb[4].mxu0  ;;  %v381_v1 = vadd.f32 %v380_v60, %v378_v58  ;;  %v387_v2 = vadd.f32 %v386_v61, %v806_v52  ;;  %v396_v4 = vadd.f32 %v395_v62, %v393_v57  ;;  %v438_v61 = vld [vmem:[%s934_s2] sm:$0xff] }
 0x102   :  { %v407_v5 = vmul.f32 %v821_v0, %v821_v0  ;;  %v828_v6 = vpop.f32.mrb[5].mxu0  ;;  %v830_v7 = vpop.f32.mrb[5].mxu1  ;;  %v409_v13 = vmul.f32 %v819_v63, %v819_v63 }
 0x103   :  { %v401_v8 = vadd.f32 %v828_v6, %v821_v0  ;;  %v408_v9 = vmul.f32 %v828_v6, %v828_v6  ;;  %v836_v10 = vpop.f32.mrb[6].mxu1  ;;  %382 = vadd.xlane.f32.xlu1 %v381_v1  ;;  %v838_v11 = vpop.f32.mrb[6].mxu0  ;;  %v397_v12 = vadd.f32 %v396_v4, %v394_v3  ;;  %v410_v25 = vmul.f32 %v830_v7, %v830_v7 }
 0x104   :  { %v423_v14 = vmul.f32 %v838_v11, %v838_v11  ;;  %v844_v15 = vpop.f32.mrb[7].mxu0  ;;  %v846_v16 = vpop.f32.mrb[7].mxu1  ;;  %v425_v21 = vmul.f32 %v836_v10, %v836_v10 }
 0x105   :  { %v417_v17 = vadd.f32 %v844_v15, %v838_v11  ;;  %v424_v18 = vmul.f32 %v844_v15, %v844_v15  ;;  %388 = vadd.xlane.f32.xlu0 %v387_v2  ;;  %v402_v19 = vadd.f32 %v401_v8, %v819_v63  ;;  %v411_v20 = vadd.f32 %v408_v9, %v407_v5  ;;  %v442_v2 = vld [vmem:[%s935_s3] sm:$0xff] }
 0x106   :  { %v426_v27 = vmul.f32 %v846_v16, %v846_v16 }
 0x107   :  { %v427_v22 = vadd.f32 %v424_v18, %v423_v14  ;;  %398 = vadd.xlane.f32.xlu1 %v397_v12  ;;  %v403_v23 = vadd.f32 %v402_v19, %v830_v7  ;;  %v418_v24 = vadd.f32 %v417_v17, %v836_v10  ;;  %v412_v26 = vadd.f32 %v411_v20, %v409_v13 }
 0x109   :  { %404 = vadd.xlane.f32.xlu0 %v403_v23  ;;  %v419_v28 = vadd.f32 %v418_v24, %v846_v16  ;;  %v428_v29 = vadd.f32 %v427_v22, %v425_v21  ;;  %v413_v30 = vadd.f32 %v412_v26, %v410_v25 }
 0x10b   :  { %v429_v31 = vadd.f32 %v428_v29, %v426_v27  ;;  %414 = vadd.xlane.f32.xlu1 %v413_v30 }
 0x10d   :  { %420 = vadd.xlane.f32.xlu0 %v419_v28 }
 0x10f   :  { %430 = vadd.xlane.f32.xlu1 %v429_v31 }
 0x18e   :  { %v373_v33 = vpop.xlane.xlu0 %372 }
 0x190   :  { %v383_v34 = vpop.xlane.xlu1 %382 }
 0x192   :  { %v389_v35 = vpop.xlane.xlu0 %388 }
 0x193   :  { %v390_v38 = vadd.f32 %v389_v35, %v373_v33 }
 0x194   :  { %v399_v36 = vpop.xlane.xlu1 %398 }
 0x195   :  { %v400_v45 = vadd.f32 %v399_v36, %v383_v34 }
 0x196   :  { %v405_v37 = vpop.xlane.xlu0 %404 }
 0x197   :  { %v406_v39 = vadd.f32 %v405_v37, %v390_v38 }
 0x198   :  { %v415_v42 = vpop.xlane.xlu1 %414 }
 0x199   :  { %v416_v50 = vadd.f32 %v415_v42, %v400_v45 }
 0x19a   :  { %v421_v46 = vpop.xlane.xlu0 %420 }
 0x19b   :  { %v422_v47 = vadd.f32 %v421_v46, %v406_v39 }
 0x19c   :  { %v431_v54 = vpop.xlane.xlu1 %430 }
 0x19d   :  { %v433_v53 = vmul.f32 0.00048828125, %v422_v47  ;;  %v432_v55 = vadd.f32 %v431_v54, %v416_v50 }
 0x19f   :  { %v435_v56 = vmul.f32 %v433_v53, %v433_v53  ;;  %v434_v57 = vmul.f32 0.00048828125, %v432_v55 }
 0x1a1   :  { %v436_v58 = vsub.f32 %v434_v57, %v435_v56 }
 0x1a3   :  { %v437_v59 = vmax.f32 %v436_v58, 0.0 }
 0x1a5   :  { %v439_v60 = vadd.f32 1e-05, %v437_v59 }
 0x1a7   :  { %630 = vrsqrt.f32 %v439_v60 }
 0x1b1   :  { %v631_v62 = vpop.eup %630 }
 0x1b2   :  { %v441_v1 = vmul.f32 %v631_v62, %v438_v61 }
 0x1b4   :  { %447 = vperm.xlu0 %568, %v441_v1   ;;  %v443_v3 = vmul.f32 %v441_v1, %v433_v53 }
 0x1b6   :  { %v444_v4 = vsub.f32 %v442_v2, %v443_v3 }
 0x1b8   :  { %456 = vperm.xlu1 %569, %v444_v4  }
 0x233   :  { %v448_v5 = vpop.permute.xlu0 %447 }
 0x234   :  { %v450_v8 = vmul.f32 %v448_v5, %v782_v40  ;;  %v451_v9 = vmul.f32 %v448_v5, %v788_v43  ;;  %v452_v12 = vmul.f32 %v448_v5, %v784_v41  ;;  %v453_v13 = vmul.f32 %v448_v5, %v790_v44 }
 0x235   :  { %v471_v14 = vmul.f32 %v448_v5, %v798_v48  ;;  %v472_v17 = vmul.f32 %v448_v5, %v804_v51  ;;  %v473_v18 = vmul.f32 %v448_v5, %v800_v49  ;;  %v474_v19 = vmul.f32 %v448_v5, %v806_v52 }
 0x236   :  { %v487_v20 = vmul.f32 %v448_v5, %v821_v0  ;;  %v488_v21 = vmul.f32 %v448_v5, %v828_v6  ;;  %v489_v40 = vmul.f32 %v448_v5, %v819_v63  ;;  %v490_v43 = vmul.f32 %v448_v5, %v830_v7 }
 0x237   :  { %v503_v41 = vmul.f32 %v448_v5, %v838_v11  ;;  %v504_v44 = vmul.f32 %v448_v5, %v844_v15  ;;  %v505_v48 = vmul.f32 %v448_v5, %v836_v10  ;;  %v506_v51 = vmul.f32 %v448_v5, %v846_v16  ;;  %v457_v22 = vpop.permute.xlu1 %456 }
 0x238   :  { %v459_v49 = vadd.f32 %v457_v22, %v450_v8  ;;  %v460_v23 = vadd.f32 %v457_v22, %v451_v9  ;;  %v461_v52 = vadd.f32 %v457_v22, %v452_v12  ;;  %v462_v24 = vadd.f32 %v457_v22, %v453_v13 }
 0x239   :  { %v475_v0 = vadd.f32 %v471_v14, %v457_v22  ;;  %v476_v25 = vadd.f32 %v472_v17, %v457_v22  ;;  %v477_v6 = vadd.f32 %v473_v18, %v457_v22  ;;  %v478_v26 = vadd.f32 %v474_v19, %v457_v22 }
 0x23a   :  { %v463_v63 = vmax.f32 %v459_v49, 0.0  ;;  %v464_v27 = vmax.f32 %v460_v23, 0.0  ;;  %v465_v7 = vmax.f32 %v461_v52, 0.0  ;;  %v466_v28 = vmax.f32 %v462_v24, 0.0 }
 0x23b   :  { %v479_v11 = vmax.f32 %v475_v0, 0.0  ;;  %v480_v29 = vmax.f32 %v476_v25, 0.0  ;;  %v481_v15 = vmax.f32 %v477_v6, 0.0  ;;  %v482_v30 = vmax.f32 %v478_v26, 0.0 }
 0x23c   :  { %467 = vst [vmem:[%s936_s4] sm:$0xff] %v463_v63  ;;  %468 = vst [vmem:[%s936_s4 + $0x8] sm:$0xff] %v464_v27  ;;  %v491_v10 = vadd.f32 %v487_v20, %v457_v22  ;;  %v492_v16 = vadd.f32 %v488_v21, %v457_v22  ;;  %v493_v31 = vadd.f32 %v489_v40, %v457_v22 }
 0x23d   :  { %469 = vst [vmem:[%s936_s4 + $0x10] sm:$0xff] %v465_v7  ;;  %470 = vst [vmem:[%s936_s4 + $0x18] sm:$0xff] %v466_v28  ;;  %v494_v32 = vadd.f32 %v490_v43, %v457_v22  ;;  %v507_v33 = vadd.f32 %v503_v41, %v457_v22  ;;  %v508_v34 = vadd.f32 %v504_v44, %v457_v22 }
 0x23e   :  { %483 = vst [vmem:[%s936_s4 + $0x20] sm:$0xff] %v479_v11  ;;  %484 = vst [vmem:[%s936_s4 + $0x28] sm:$0xff] %v480_v29  ;;  %v509_v35 = vadd.f32 %v505_v48, %v457_v22  ;;  %v510_v36 = vadd.f32 %v506_v51, %v457_v22  ;;  %v495_v37 = vmax.f32 %v491_v10, 0.0  ;;  %v496_v38 = vmax.f32 %v492_v16, 0.0 }
 0x23f   :  { %485 = vst [vmem:[%s936_s4 + $0x30] sm:$0xff] %v481_v15  ;;  %486 = vst [vmem:[%s936_s4 + $0x38] sm:$0xff] %v482_v30  ;;  %v497_v39 = vmax.f32 %v493_v31, 0.0  ;;  %v498_v42 = vmax.f32 %v494_v32, 0.0  ;;  %v511_v45 = vmax.f32 %v507_v33, 0.0  ;;  %v512_v46 = vmax.f32 %v508_v34, 0.0 }
 0x240   :  { %v513_v47 = vmax.f32 %v509_v35, 0.0  ;;  %v514_v50 = vmax.f32 %v510_v36, 0.0  ;;  %499 = vst [vmem:[%s936_s4 + $0x40] sm:$0xff] %v495_v37  ;;  %500 = vst [vmem:[%s936_s4 + $0x48] sm:$0xff] %v496_v38 }
 0x241   :  { %501 = vst [vmem:[%s936_s4 + $0x50] sm:$0xff] %v497_v39  ;;  %502 = vst [vmem:[%s936_s4 + $0x58] sm:$0xff] %v498_v42 }
 0x242   :  { %515 = vst [vmem:[%s936_s4 + $0x60] sm:$0xff] %v511_v45  ;;  %516 = vst [vmem:[%s936_s4 + $0x68] sm:$0xff] %v512_v46 }
 0x243   :  { %517 = vst [vmem:[%s936_s4 + $0x70] sm:$0xff] %v513_v47  ;;  %518 = vst [vmem:[%s936_s4 + $0x78] sm:$0xff] %v514_v50 }

// kernel: generator_forward.9
= control target key start
LH: loop header
LB: loop body
LE: loop exit
PB: predicated region body
PF: predicated region fallthrough
CT: control target
= control target key end

     0   :  { %v1095_v3 = vmov 0   ;;  %vm455_vm0 = vcmask 1043456   ;;  %vm451_vm1 = vcmask 588800   ;;  %s1468_s1 = inlined_call_operand.vmem [shape: bf16[72,2048], index: 1, kind: input, shape index: {}]   ;;  %s1469_s0 = inlined_call_operand.vmem [shape: bf16[12,72], index: 0, kind: input, shape index: {}]   ;;  %s1470_s2 = inlined_call_operand.vmem [shape: f32[12,2048], index: 2, kind: output, shape index: {}]  }
   0x1   :  { %v14_v0 = vld [vmem:[%s1468_s1] sm:$0xff]  ;;  %v15_v2 = vld [vmem:[%s1468_s1 + $0x8] sm:$0xff]  ;;  %536 = vmatprep.mubr.bf16.mxu0 %v1095_v3  ;;  %579 = vmatprep.mubr.bf16.mxu1 %v1095_v3  ;;  %v16_v39 = vld [vmem:[%s1468_s1 + $0x10] sm:$0xff] }
   0x2   :  { %v22_v1 = vld [vmem:[%s1468_s1 + $0x40] sm:$0xff]  ;;  %v23_v5 = vld [vmem:[%s1468_s1 + $0x48] sm:$0xff]  ;;  %v24_v40 = vld [vmem:[%s1468_s1 + $0x50] sm:$0xff] }
   0x3   :  { %v918_v4 = vcombine.high %v14_v0, %v22_v1  ;;  %v917_v6 = vcombine.low %v14_v0, %v22_v1  ;;  %v30_v7 = vld [vmem:[%s1468_s1 + $0x80] sm:$0xff]  ;;  %v920_v9 = vcombine.high %v15_v2, %v23_v5  ;;  %v919_v10 = vcombine.low %v15_v2, %v23_v5  ;;  %v31_v12 = vld [vmem:[%s1468_s1 + $0x88] sm:$0xff]  ;;  %v17_v41 = vld [vmem:[%s1468_s1 + $0x18] sm:$0xff] }
   0x4   :  { %v38_v8 = vld [vmem:[%s1468_s1 + $0xc0] sm:$0xff]  ;;  %v39_v13 = vld [vmem:[%s1468_s1 + $0xc8] sm:$0xff]  ;;  %v25_v42 = vld [vmem:[%s1468_s1 + $0x58] sm:$0xff]  ;;  %v922_v44 = vcombine.high %v16_v39, %v24_v40  ;;  %v921_v52 = vcombine.low %v16_v39, %v24_v40 }
   0x5   :  { %v934_v11 = vcombine.high %v30_v7, %v38_v8  ;;  %v46_v14 = vld [vmem:[%s1468_s1 + $0x100] sm:$0xff]  ;;  %504 = vmatprep.subr.bf16.mxu0 %v918_v4  ;;  %v936_v15 = vcombine.high %v31_v12, %v39_v13  ;;  %v47_v17 = vld [vmem:[%s1468_s1 + $0x108] sm:$0xff]  ;;  %547 = vmatprep.subr.bf16.mxu1 %v920_v9  ;;  %v933_v19 = vcombine.low %v30_v7, %v38_v8  ;;  %v32_v47 = vld [vmem:[%s1468_s1 + $0x90] sm:$0xff] }
   0x6   :  { %v54_v16 = vld [vmem:[%s1468_s1 + $0x140] sm:$0xff]  ;;  %v55_v18 = vld [vmem:[%s1468_s1 + $0x148] sm:$0xff]  ;;  %505 = vmatpush1.bf16.msra.mxu0 %v917_v6  ;;  %548 = vmatpush1.bf16.msra.mxu1 %v919_v10  ;;  %v935_v20 = vcombine.low %v31_v12, %v39_v13  ;;  %v924_v46 = vcombine.high %v17_v41, %v25_v42  ;;  %v40_v48 = vld [vmem:[%s1468_s1 + $0xd0] sm:$0xff]  ;;  %v923_v53 = vcombine.low %v17_v41, %v25_v42 }
   0x7   :  { %506 = vmatprep.subr.bf16.mxu0 %v934_v11  ;;  %v950_v21 = vcombine.high %v46_v14, %v54_v16  ;;  %v62_v22 = vld [vmem:[%s1468_s1 + $0x180] sm:$0xff]  ;;  %549 = vmatprep.subr.bf16.mxu1 %v936_v15  ;;  %v952_v23 = vcombine.high %v47_v17, %v55_v18  ;;  %v63_v25 = vld [vmem:[%s1468_s1 + $0x188] sm:$0xff]  ;;  %v949_v27 = vcombine.low %v46_v14, %v54_v16  ;;  %v33_v50 = vld [vmem:[%s1468_s1 + $0x98] sm:$0xff] }
   0x8   :  { %v70_v24 = vld [vmem:[%s1468_s1 + $0x1c0] sm:$0xff]  ;;  %v71_v26 = vld [vmem:[%s1468_s1 + $0x1c8] sm:$0xff]  ;;  %v951_v28 = vcombine.low %v47_v17, %v55_v18  ;;  %v41_v51 = vld [vmem:[%s1468_s1 + $0xd8] sm:$0xff]  ;;  %v938_v54 = vcombine.high %v32_v47, %v40_v48  ;;  %v937_v60 = vcombine.low %v32_v47, %v40_v48 }
   0x9   :  { %v966_v29 = vcombine.high %v62_v22, %v70_v24  ;;  %v968_v30 = vcombine.high %v63_v25, %v71_v26  ;;  %v78_v31 = vld [vmem:[%s1468_s1 + $0x200] sm:$0xff]  ;;  %v79_v32 = vld [vmem:[%s1468_s1 + $0x208] sm:$0xff]  ;;  %v965_v33 = vcombine.low %v62_v22, %v70_v24  ;;  %v967_v34 = vcombine.low %v63_v25, %v71_v26  ;;  %v48_v56 = vld [vmem:[%s1468_s1 + $0x110] sm:$0xff] }
   0xa   :  { %507 = vmatpush1.bf16.msra.mxu0 %v933_v19  ;;  %550 = vmatpush1.bf16.msra.mxu1 %v935_v20  ;;  %v982_v35 = vcombine.high %v78_v31, %v78_v31  ;;  %v981_v36 = vcombine.low %v78_v31, %v78_v31  ;;  %v984_v37 = vcombine.high %v79_v32, %v79_v32  ;;  %v1192_v49 = vld [vmem:[%s1469_s0] sm:$0x3f]   ;;  %v56_v57 = vld [vmem:[%s1468_s1 + $0x150] sm:$0xff]  ;;  %v49_v58 = vld [vmem:[%s1468_s1 + $0x118] sm:$0xff] }
   0xb   :  { %508 = vmatprep.subr.bf16.mxu0 %v950_v21  ;;  %551 = vmatprep.subr.bf16.mxu1 %v952_v23  ;;  %v983_v38 = vcombine.low %v79_v32, %v79_v32  ;;  %v940_v55 = vcombine.high %v33_v50, %v41_v51  ;;  %v57_v59 = vld [vmem:[%s1468_s1 + $0x158] sm:$0xff]  ;;  %v939_v61 = vcombine.low %v33_v50, %v41_v51  ;;  %v64_v0 = vld [vmem:[%s1468_s1 + $0x190] sm:$0xff]  ;;  %v18_v17 = vld [vmem:[%s1468_s1 + $0x20] sm:$0xff] }
   0xc   :  { %v457_v43 = vsel %vm455_vm0, %v981_v36, 0  ;;  %v954_v62 = vcombine.high %v48_v56, %v56_v57  ;;  %v956_v63 = vcombine.high %v49_v58, %v57_v59  ;;  %v72_v1 = vld [vmem:[%s1468_s1 + $0x1d0] sm:$0xff]  ;;  %v65_v2 = vld [vmem:[%s1468_s1 + $0x198] sm:$0xff]  ;;  %v953_v5 = vcombine.low %v48_v56, %v56_v57  ;;  %v26_v18 = vld [vmem:[%s1468_s1 + $0x60] sm:$0xff] }
   0xd   :  { %v463_v45 = vsel %vm455_vm0, %v983_v38, 0  ;;  %v73_v4 = vld [vmem:[%s1468_s1 + $0x1d8] sm:$0xff]  ;;  %v955_v6 = vcombine.low %v49_v58, %v57_v59  ;;  %v970_v7 = vcombine.high %v64_v0, %v72_v1  ;;  %v80_v9 = vld [vmem:[%s1468_s1 + $0x210] sm:$0xff]  ;;  %v969_v11 = vcombine.low %v64_v0, %v72_v1  ;;  %v19_v19 = vld [vmem:[%s1468_s1 + $0x28] sm:$0xff] }
   0xe   :  { %509 = vmatpush1.bf16.msra.mxu0 %v949_v27  ;;  %552 = vmatpush1.bf16.msra.mxu1 %v951_v28  ;;  %v972_v8 = vcombine.high %v65_v2, %v73_v4  ;;  %v81_v10 = vld [vmem:[%s1468_s1 + $0x218] sm:$0xff]  ;;  %v971_v12 = vcombine.low %v65_v2, %v73_v4  ;;  %v986_v13 = vcombine.high %v80_v9, %v80_v9  ;;  %v27_v20 = vld [vmem:[%s1468_s1 + $0x68] sm:$0xff]  ;;  %v34_v25 = vld [vmem:[%s1468_s1 + $0xa0] sm:$0xff] }
   0xf   :  { %510 = vmatprep.subr.bf16.mxu0 %v966_v29  ;;  %553 = vmatprep.subr.bf16.mxu1 %v968_v30  ;;  %v985_v14 = vcombine.low %v80_v9, %v80_v9  ;;  %v988_v15 = vcombine.high %v81_v10, %v81_v10  ;;  %v987_v16 = vcombine.low %v81_v10, %v81_v10  ;;  %v42_v26 = vld [vmem:[%s1468_s1 + $0xe0] sm:$0xff]  ;;  %v35_v27 = vld [vmem:[%s1468_s1 + $0xa8] sm:$0xff]  ;;  %v20_v58 = vld [vmem:[%s1468_s1 + $0x30] sm:$0xff] }
  0x10   :  { %v926_v22 = vcombine.high %v18_v17, %v26_v18  ;;  %v928_v24 = vcombine.high %v19_v19, %v27_v20  ;;  %v43_v28 = vld [vmem:[%s1468_s1 + $0xe8] sm:$0xff]  ;;  %v925_v29 = vcombine.low %v18_v17, %v26_v18  ;;  %v927_v30 = vcombine.low %v19_v19, %v27_v20  ;;  %v66_v41 = vld [vmem:[%s1468_s1 + $0x1a0] sm:$0xff]  ;;  %v28_v59 = vld [vmem:[%s1468_s1 + $0x70] sm:$0xff] }
  0x11   :  { %v469_v21 = vsel %vm455_vm0, %v985_v14, 0  ;;  %v475_v23 = vsel %vm455_vm0, %v987_v16, 0  ;;  %v942_v31 = vcombine.high %v34_v25, %v42_v26  ;;  %v944_v32 = vcombine.high %v35_v27, %v43_v28  ;;  %v59_v36 = vld [vmem:[%s1468_s1 + $0x168] sm:$0xff]  ;;  %v74_v42 = vld [vmem:[%s1468_s1 + $0x1e0] sm:$0xff]  ;;  %v36_v2 = vld [vmem:[%s1468_s1 + $0xb0] sm:$0xff] }
  0x12   :  { %511 = vmatpush1.bf16.msra.mxu0 %v965_v33  ;;  %554 = vmatpush1.bf16.msra.mxu1 %v967_v34  ;;  %v50_v33 = vld [vmem:[%s1468_s1 + $0x120] sm:$0xff]  ;;  %v943_v38 = vcombine.low %v35_v27, %v43_v28  ;;  %v974_v47 = vcombine.high %v66_v41, %v74_v42  ;;  %v83_v51 = vld [vmem:[%s1468_s1 + $0x228] sm:$0xff]  ;;  %v44_v4 = vld [vmem:[%s1468_s1 + $0xf0] sm:$0xff] }
  0x13   :  { %997 = vmatprep.subr.msk.bf16.mxu0 %vm455_vm0, %v982_v35  ;;  %999 = vmatprep.subr.msk.bf16.mxu1 %vm455_vm0, %v984_v37  ;;  %v58_v34 = vld [vmem:[%s1468_s1 + $0x160] sm:$0xff]  ;;  %v51_v35 = vld [vmem:[%s1468_s1 + $0x128] sm:$0xff]  ;;  %v941_v37 = vcombine.low %v34_v25, %v42_v26  ;;  %v992_v56 = vcombine.high %v83_v51, %v83_v51  ;;  %v991_v57 = vcombine.low %v83_v51, %v83_v51  ;;  %v61_v14 = vld [vmem:[%s1468_s1 + $0x178] sm:$0xff] }
  0x14   :  { %v958_v39 = vcombine.high %v50_v33, %v58_v34  ;;  %v960_v40 = vcombine.high %v51_v35, %v59_v36  ;;  %v82_v50 = vld [vmem:[%s1468_s1 + $0x220] sm:$0xff]  ;;  %v946_v9 = vcombine.high %v36_v2, %v44_v4  ;;  %v68_v19 = vld [vmem:[%s1468_s1 + $0x1b0] sm:$0xff]  ;;  %v85_v28 = vld [vmem:[%s1468_s1 + $0x238] sm:$0xff] }
  0x15   :  { %v487_v0 = vsel %vm455_vm0, %v991_v57, 0  ;;  %v76_v20 = vld [vmem:[%s1468_s1 + $0x1f0] sm:$0xff] }
  0x16   :  { %513 = vmatpush1.bf16.msra.mxu0 %v457_v43  ;;  %556 = vmatpush1.bf16.msra.mxu1 %v463_v45  ;;  %v67_v43 = vld [vmem:[%s1468_s1 + $0x1a8] sm:$0xff]  ;;  %v957_v45 = vcombine.low %v50_v33, %v58_v34  ;;  %v978_v25 = vcombine.high %v68_v19, %v76_v20  ;;  %v84_v27 = vld [vmem:[%s1468_s1 + $0x230] sm:$0xff]  ;;  %v995_v33 = vcombine.low %v85_v28, %v85_v28 }
  0x17   :  { %590 = vmatprep.subr.bf16.mxu0 %v922_v44  ;;  %633 = vmatprep.subr.bf16.mxu1 %v924_v46  ;;  %v75_v44 = vld [vmem:[%s1468_s1 + $0x1e8] sm:$0xff]  ;;  %v959_v46 = vcombine.low %v51_v35, %v59_v36 }
  0x18   :  { %v976_v48 = vcombine.high %v67_v43, %v75_v44  ;;  %v499_v35 = vsel %vm455_vm0, %v995_v33, 0 }
  0x19   :  { %998 = vmatmul.mubr.msk.bf16.vlgmr.msra.gmra.mrb[0].mxu0 %vm451_vm1, %v1192_v49  ;;  %1000 = vmatmul.mubr.msk.bf16.vlgmr.msra.gmra.mrb[0].mxu1 %vm451_vm1, %v1192_v49 }
  0x1a   :  { %591 = vmatpush1.bf16.msra.mxu0 %v921_v52  ;;  %634 = vmatpush1.bf16.msra.mxu1 %v923_v53  ;;  %v973_v52 = vcombine.low %v66_v41, %v74_v42  ;;  %v975_v53 = vcombine.low %v67_v43, %v75_v44 }
  0x1b   :  { %592 = vmatprep.subr.bf16.mxu0 %v938_v54  ;;  %635 = vmatprep.subr.bf16.mxu1 %v940_v55  ;;  %v990_v54 = vcombine.high %v82_v50, %v82_v50  ;;  %v989_v55 = vcombine.low %v82_v50, %v82_v50 }
  0x1c   :  { %622 = vmatprep.mubr.bf16.mxu0 %v1095_v3  ;;  %665 = vmatprep.mubr.bf16.mxu1 %v1095_v3 }
  0x1e   :  { %593 = vmatpush1.bf16.msra.mxu0 %v937_v60  ;;  %636 = vmatpush1.bf16.msra.mxu1 %v939_v61  ;;  %v21_v60 = vld [vmem:[%s1468_s1 + $0x38] sm:$0xff] }
  0x1f   :  { %594 = vmatprep.subr.bf16.mxu0 %v954_v62  ;;  %637 = vmatprep.subr.bf16.mxu1 %v956_v63  ;;  %v29_v61 = vld [vmem:[%s1468_s1 + $0x78] sm:$0xff]  ;;  %v481_v62 = vsel %vm455_vm0, %v989_v55, 0  ;;  %v930_v63 = vcombine.high %v20_v58, %v28_v59 }
  0x20   :  { %v932_v1 = vcombine.high %v21_v60, %v29_v61 }
  0x22   :  { %595 = vmatpush1.bf16.msra.mxu0 %v953_v5  ;;  %638 = vmatpush1.bf16.msra.mxu1 %v955_v6  ;;  %v37_v5 = vld [vmem:[%s1468_s1 + $0xb8] sm:$0xff] }
  0x23   :  { %596 = vmatprep.subr.bf16.mxu0 %v970_v7  ;;  %639 = vmatprep.subr.bf16.mxu1 %v972_v8  ;;  %v45_v6 = vld [vmem:[%s1468_s1 + $0xf8] sm:$0xff]  ;;  %v929_v7 = vcombine.low %v20_v58, %v28_v59  ;;  %v931_v8 = vcombine.low %v21_v60, %v29_v61 }
  0x24   :  { %v948_v10 = vcombine.high %v37_v5, %v45_v6  ;;  %v947_v16 = vcombine.low %v37_v5, %v45_v6 }
  0x26   :  { %597 = vmatpush1.bf16.msra.mxu0 %v969_v11  ;;  %640 = vmatpush1.bf16.msra.mxu1 %v971_v12  ;;  %v52_v11 = vld [vmem:[%s1468_s1 + $0x130] sm:$0xff] }
  0x27   :  { %1001 = vmatprep.subr.msk.bf16.mxu0 %vm455_vm0, %v986_v13  ;;  %1003 = vmatprep.subr.msk.bf16.mxu1 %vm455_vm0, %v988_v15  ;;  %v60_v12 = vld [vmem:[%s1468_s1 + $0x170] sm:$0xff]  ;;  %v53_v13 = vld [vmem:[%s1468_s1 + $0x138] sm:$0xff]  ;;  %v945_v15 = vcombine.low %v36_v2, %v44_v4 }
  0x28   :  { %v962_v17 = vcombine.high %v52_v11, %v60_v12  ;;  %v964_v18 = vcombine.high %v53_v13, %v61_v14 }
  0x2a   :  { %599 = vmatpush1.bf16.msra.mxu0 %v469_v21  ;;  %642 = vmatpush1.bf16.msra.mxu1 %v475_v23  ;;  %v69_v21 = vld [vmem:[%s1468_s1 + $0x1b8] sm:$0xff]  ;;  %v961_v23 = vcombine.low %v52_v11, %v60_v12 }
  0x2b   :  { %676 = vmatprep.subr.bf16.mxu0 %v926_v22  ;;  %719 = vmatprep.subr.bf16.mxu1 %v928_v24  ;;  %v77_v22 = vld [vmem:[%s1468_s1 + $0x1f8] sm:$0xff]  ;;  %v963_v24 = vcombine.low %v53_v13, %v61_v14 }
  0x2c   :  { %v980_v26 = vcombine.high %v69_v21, %v77_v22 }
  0x2d   :  { %1002 = vmatmul.mubr.msk.bf16.vlgmr.msra.gmra.mrb[4].mxu0 %vm451_vm1, %v1192_v49  ;;  %1004 = vmatmul.mubr.msk.bf16.vlgmr.msra.gmra.mrb[4].mxu1 %vm451_vm1, %v1192_v49 }
  0x2e   :  { %677 = vmatpush1.bf16.msra.mxu0 %v925_v29  ;;  %720 = vmatpush1.bf16.msra.mxu1 %v927_v30  ;;  %v977_v29 = vcombine.low %v68_v19, %v76_v20  ;;  %v994_v30 = vcombine.high %v84_v27, %v84_v27 }
  0x2f   :  { %678 = vmatprep.subr.bf16.mxu0 %v942_v31  ;;  %721 = vmatprep.subr.bf16.mxu1 %v944_v32  ;;  %v993_v31 = vcombine.low %v84_v27, %v84_v27  ;;  %v996_v32 = vcombine.high %v85_v28, %v85_v28 }
  0x30   :  { %708 = vmatprep.mubr.bf16.mxu0 %v1095_v3  ;;  %751 = vmatprep.mubr.bf16.mxu1 %v1095_v3 }
  0x31   :  { %v493_v34 = vsel %vm455_vm0, %v993_v31, 0 }
  0x32   :  { %679 = vmatpush1.bf16.msra.mxu0 %v941_v37  ;;  %722 = vmatpush1.bf16.msra.mxu1 %v943_v38 }
  0x33   :  { %680 = vmatprep.subr.bf16.mxu0 %v958_v39  ;;  %723 = vmatprep.subr.bf16.mxu1 %v960_v40 }
  0x36   :  { %681 = vmatpush1.bf16.msra.mxu0 %v957_v45  ;;  %724 = vmatpush1.bf16.msra.mxu1 %v959_v46 }
  0x37   :  { %682 = vmatprep.subr.bf16.mxu0 %v974_v47  ;;  %725 = vmatprep.subr.bf16.mxu1 %v976_v48 }
  0x3a   :  { %683 = vmatpush1.bf16.msra.mxu0 %v973_v52  ;;  %726 = vmatpush1.bf16.msra.mxu1 %v975_v53 }
  0x3b   :  { %1005 = vmatprep.subr.msk.bf16.mxu0 %vm455_vm0, %v990_v54  ;;  %1007 = vmatprep.subr.msk.bf16.mxu1 %vm455_vm0, %v992_v56 }
  0x3e   :  { %685 = vmatpush1.bf16.msra.mxu0 %v481_v62  ;;  %728 = vmatpush1.bf16.msra.mxu1 %v487_v0 }
  0x3f   :  { %762 = vmatprep.subr.bf16.mxu0 %v930_v63  ;;  %805 = vmatprep.subr.bf16.mxu1 %v932_v1 }
  0x41   :  { %1006 = vmatmul.mubr.msk.bf16.vlgmr.msra.gmra.mrb[8].mxu0 %vm451_vm1, %v1192_v49  ;;  %1008 = vmatmul.mubr.msk.bf16.vlgmr.msra.gmra.mrb[8].mxu1 %vm451_vm1, %v1192_v49 }
  0x42   :  { %763 = vmatpush1.bf16.msra.mxu0 %v929_v7  ;;  %806 = vmatpush1.bf16.msra.mxu1 %v931_v8 }
  0x43   :  { %764 = vmatprep.subr.bf16.mxu0 %v946_v9  ;;  %807 = vmatprep.subr.bf16.mxu1 %v948_v10 }
  0x44   :  { %794 = vmatprep.mubr.bf16.mxu0 %v1095_v3  ;;  %837 = vmatprep.mubr.bf16.mxu1 %v1095_v3  ;;  %v979_v3 = vcombine.low %v69_v21, %v77_v22 }
  0x46   :  { %765 = vmatpush1.bf16.msra.mxu0 %v945_v15  ;;  %808 = vmatpush1.bf16.msra.mxu1 %v947_v16 }
  0x47   :  { %766 = vmatprep.subr.bf16.mxu0 %v962_v17  ;;  %809 = vmatprep.subr.bf16.mxu1 %v964_v18 }
  0x4a   :  { %767 = vmatpush1.bf16.msra.mxu0 %v961_v23  ;;  %810 = vmatpush1.bf16.msra.mxu1 %v963_v24 }
  0x4b   :  { %768 = vmatprep.subr.bf16.mxu0 %v978_v25  ;;  %811 = vmatprep.subr.bf16.mxu1 %v980_v26 }
  0x4e   :  { %769 = vmatpush1.bf16.msra.mxu0 %v977_v29  ;;  %812 = vmatpush1.bf16.msra.mxu1 %v979_v3 }
  0x4f   :  { %1009 = vmatprep.subr.msk.bf16.mxu0 %vm455_vm0, %v994_v30  ;;  %1011 = vmatprep.subr.msk.bf16.mxu1 %vm455_vm0, %v996_v32 }
  0x52   :  { %771 = vmatpush1.bf16.msra.mxu0 %v493_v34  ;;  %814 = vmatpush1.bf16.msra.mxu1 %v499_v35 }
  0x55   :  { %1010 = vmatmul.mubr.msk.bf16.vlgmr.msra.gmra.mrb[12].mxu0 %vm451_vm1, %v1192_v49  ;;  %1012 = vmatmul.mubr.msk.bf16.vlgmr.msra.gmra.mrb[12].mxu1 %vm451_vm1, %v1192_v49 }
  0xec   :  { %v538_v36 = vpop.f32.mrb[0].mxu0  ;;  %v581_v37 = vpop.f32.mrb[0].mxu1 }
  0xed   :  { %1031 = vtanh.f32 %v538_v36  ;;  %v540_v38 = vpop.f32.mrb[1].mxu0  ;;  %v583_v39 = vpop.f32.mrb[1].mxu1 }
  0xee   :  { %1033 = vtanh.f32 %v581_v37  ;;  %v542_v40 = vpop.f32.mrb[2].mxu0  ;;  %v585_v41 = vpop.f32.mrb[2].mxu1 }
  0xef   :  { %1035 = vtanh.f32 %v540_v38  ;;  %v544_v42 = vpop.f32.mrb[3].mxu0  ;;  %v587_v43 = vpop.f32.mrb[3].mxu1 }
  0xf0   :  { %1037 = vtanh.f32 %v583_v39 }
  0xf1   :  { %1039 = vtanh.f32 %v542_v40 }
  0xf2   :  { %1041 = vtanh.f32 %v585_v41 }
  0xf3   :  { %1043 = vtanh.f32 %v544_v42 }
  0xf4   :  { %1045 = vtanh.f32 %v587_v43 }
  0xf7   :  { %v1032_v44 = vpop.eup %1031 }
  0xf8   :  { %v1034_v45 = vpop.eup %1033  ;;  %880 = vst [vmem:[%s1470_s2] sm:$0xff] %v1032_v44 }
  0xf9   :  { %v1036_v49 = vpop.eup %1035  ;;  %882 = vst [vmem:[%s1470_s2 + $0x10] sm:$0xff] %v1034_v45 }
  0xfa   :  { %v1038_v46 = vpop.eup %1037  ;;  %881 = vst [vmem:[%s1470_s2 + $0x8] sm:$0xff] %v1036_v49 }
  0xfb   :  { %v1040_v47 = vpop.eup %1039  ;;  %883 = vst [vmem:[%s1470_s2 + $0x18] sm:$0xff] %v1038_v46 }
  0xfc   :  { %v1042_v48 = vpop.eup %1041  ;;  %896 = vst [vmem:[%s1470_s2 + $0x80] sm:$0xf] %v1040_v47 }
  0xfd   :  { %v1044_v50 = vpop.eup %1043  ;;  %898 = vst [vmem:[%s1470_s2 + $0x90] sm:$0xf] %v1042_v48 }
  0xfe   :  { %v1046_v51 = vpop.eup %1045  ;;  %897 = vst [vmem:[%s1470_s2 + $0x88] sm:$0xf] %v1044_v50 }
  0xff   :  { %899 = vst [vmem:[%s1470_s2 + $0x98] sm:$0xf] %v1046_v51 }
 0x100   :  { %v624_v52 = vpop.f32.mrb[4].mxu0  ;;  %v667_v53 = vpop.f32.mrb[4].mxu1 }
 0x101   :  { %1047 = vtanh.f32 %v624_v52  ;;  %v626_v54 = vpop.f32.mrb[5].mxu0  ;;  %v669_v55 = vpop.f32.mrb[5].mxu1 }
 0x102   :  { %1049 = vtanh.f32 %v667_v53  ;;  %v628_v56 = vpop.f32.mrb[6].mxu0  ;;  %v671_v57 = vpop.f32.mrb[6].mxu1 }
 0x103   :  { %1051 = vtanh.f32 %v626_v54  ;;  %v630_v58 = vpop.f32.mrb[7].mxu0  ;;  %v673_v59 = vpop.f32.mrb[7].mxu1 }
 0x104   :  { %1053 = vtanh.f32 %v669_v55 }
 0x105   :  { %1055 = vtanh.f32 %v628_v56 }
 0x106   :  { %1057 = vtanh.f32 %v671_v57 }
 0x107   :  { %1059 = vtanh.f32 %v630_v58 }
 0x108   :  { %1061 = vtanh.f32 %v673_v59 }
 0x10b   :  { %v1048_v60 = vpop.eup %1047 }
 0x10c   :  { %v1050_v61 = vpop.eup %1049  ;;  %884 = vst [vmem:[%s1470_s2 + $0x20] sm:$0xff] %v1048_v60 }
 0x10d   :  { %v1052_v62 = vpop.eup %1051  ;;  %886 = vst [vmem:[%s1470_s2 + $0x30] sm:$0xff] %v1050_v61 }
 0x10e   :  { %v1054_v63 = vpop.eup %1053  ;;  %885 = vst [vmem:[%s1470_s2 + $0x28] sm:$0xff] %v1052_v62 }
 0x10f   :  { %v1056_v0 = vpop.eup %1055  ;;  %887 = vst [vmem:[%s1470_s2 + $0x38] sm:$0xff] %v1054_v63 }
 0x110   :  { %v1058_v1 = vpop.eup %1057  ;;  %900 = vst [vmem:[%s1470_s2 + $0xa0] sm:$0xf] %v1056_v0 }
 0x111   :  { %v1060_v2 = vpop.eup %1059  ;;  %902 = vst [vmem:[%s1470_s2 + $0xb0] sm:$0xf] %v1058_v1 }
 0x112   :  { %v1062_v4 = vpop.eup %1061  ;;  %901 = vst [vmem:[%s1470_s2 + $0xa8] sm:$0xf] %v1060_v2 }
 0x113   :  { %903 = vst [vmem:[%s1470_s2 + $0xb8] sm:$0xf] %v1062_v4 }
 0x114   :  { %v710_v5 = vpop.f32.mrb[8].mxu0  ;;  %v753_v6 = vpop.f32.mrb[8].mxu1 }
 0x115   :  { %1063 = vtanh.f32 %v710_v5  ;;  %v712_v7 = vpop.f32.mrb[9].mxu0  ;;  %v755_v8 = vpop.f32.mrb[9].mxu1 }
 0x116   :  { %1065 = vtanh.f32 %v753_v6  ;;  %v714_v9 = vpop.f32.mrb[10].mxu0  ;;  %v757_v10 = vpop.f32.mrb[10].mxu1 }
 0x117   :  { %1067 = vtanh.f32 %v712_v7  ;;  %v716_v11 = vpop.f32.mrb[11].mxu0  ;;  %v759_v12 = vpop.f32.mrb[11].mxu1 }
 0x118   :  { %1069 = vtanh.f32 %v755_v8 }
 0x119   :  { %1071 = vtanh.f32 %v714_v9 }
 0x11a   :  { %1073 = vtanh.f32 %v757_v10 }
 0x11b   :  { %1075 = vtanh.f32 %v716_v11 }
 0x11c   :  { %1077 = vtanh.f32 %v759_v12 }
 0x11f   :  { %v1064_v13 = vpop.eup %1063 }
 0x120   :  { %v1066_v14 = vpop.eup %1065  ;;  %888 = vst [vmem:[%s1470_s2 + $0x40] sm:$0xff] %v1064_v13 }
 0x121   :  { %v1068_v15 = vpop.eup %1067  ;;  %890 = vst [vmem:[%s1470_s2 + $0x50] sm:$0xff] %v1066_v14 }
 0x122   :  { %v1070_v16 = vpop.eup %1069  ;;  %889 = vst [vmem:[%s1470_s2 + $0x48] sm:$0xff] %v1068_v15 }
 0x123   :  { %v1072_v17 = vpop.eup %1071  ;;  %891 = vst [vmem:[%s1470_s2 + $0x58] sm:$0xff] %v1070_v16 }
 0x124   :  { %v1074_v18 = vpop.eup %1073  ;;  %904 = vst [vmem:[%s1470_s2 + $0xc0] sm:$0xf] %v1072_v17 }
 0x125   :  { %v1076_v19 = vpop.eup %1075  ;;  %906 = vst [vmem:[%s1470_s2 + $0xd0] sm:$0xf] %v1074_v18 }
 0x126   :  { %v1078_v20 = vpop.eup %1077  ;;  %905 = vst [vmem:[%s1470_s2 + $0xc8] sm:$0xf] %v1076_v19 }
 0x127   :  { %907 = vst [vmem:[%s1470_s2 + $0xd8] sm:$0xf] %v1078_v20 }
 0x128   :  { %v796_v21 = vpop.f32.mrb[12].mxu0  ;;  %v839_v22 = vpop.f32.mrb[12].mxu1 }
 0x129   :  { %1079 = vtanh.f32 %v796_v21  ;;  %v798_v23 = vpop.f32.mrb[13].mxu0  ;;  %v841_v24 = vpop.f32.mrb[13].mxu1 }
 0x12a   :  { %1081 = vtanh.f32 %v839_v22  ;;  %v800_v25 = vpop.f32.mrb[14].mxu0  ;;  %v843_v26 = vpop.f32.mrb[14].mxu1 }
 0x12b   :  { %1083 = vtanh.f32 %v798_v23  ;;  %v802_v27 = vpop.f32.mrb[15].mxu0  ;;  %v845_v28 = vpop.f32.mrb[15].mxu1 }
 0x12c   :  { %1085 = vtanh.f32 %v841_v24 }
 0x12d   :  { %1087 = vtanh.f32 %v800_v25 }
 0x12e   :  { %1089 = vtanh.f32 %v843_v26 }
 0x12f   :  { %1091 = vtanh.f32 %v802_v27 }
 0x130   :  { %1093 = vtanh.f32 %v845_v28 }
 0x133   :  { %v1080_v29 = vpop.eup %1079 }
 0x134   :  { %v1082_v3 = vpop.eup %1081  ;;  %892 = vst [vmem:[%s1470_s2 + $0x60] sm:$0xff] %v1080_v29 }
 0x135   :  { %v1084_v30 = vpop.eup %1083  ;;  %894 = vst [vmem:[%s1470_s2 + $0x70] sm:$0xff] %v1082_v3 }
 0x136   :  { %v1086_v31 = vpop.eup %1085  ;;  %893 = vst [vmem:[%s1470_s2 + $0x68] sm:$0xff] %v1084_v30 }
 0x137   :  { %v1088_v32 = vpop.eup %1087  ;;  %895 = vst [vmem:[%s1470_s2 + $0x78] sm:$0xff] %v1086_v31 }
 0x138   :  { %v1090_v33 = vpop.eup %1089  ;;  %908 = vst [vmem:[%s1470_s2 + $0xe0] sm:$0xf] %v1088_v32 }
 0x139   :  { %v1092_v34 = vpop.eup %1091  ;;  %910 = vst [vmem:[%s1470_s2 + $0xf0] sm:$0xf] %v1090_v33 }
 0x13a   :  { %v1094_v35 = vpop.eup %1093  ;;  %909 = vst [vmem:[%s1470_s2 + $0xe8] sm:$0xf] %v1092_v34 }
 0x13b   :  { %911 = vst [vmem:[%s1470_s2 + $0xf8] sm:$0xf] %v1094_v35 }

</bundles_post_ra>
